<compile_context>
chip_gen: v6e
topology: v6e:2x2x1
jax: 0.10.0
libtpu: 0.0.40
codegen_flags: <defaults>
</compile_context>

<pallas_src>
import numpy as np
import jax
import jax.numpy as jnp
from jax.experimental import pallas as pl
from jax.experimental.pallas import tpu as pltpu

BN_EPS = 1e-5


def _basic_block_kernel(x_ref, w1_ref, b1_ref, w2_ref, b2_ref, out_ref,
                        hpad_ref):
    # x_ref:    (1, H+2, W+2, C)  spatially zero-padded input (NHWC)
    # w1_ref:   (9, C, C)         conv1 taps (HWIO flattened), BN1 scale folded
    # b1_ref:   (1, C)            BN1 bias (beta - mean*scale)
    # w2_ref:   (9, C, C)         conv2 taps, BN2 scale folded
    # b2_ref:   (1, C)            BN2 bias
    # out_ref:  (1, H, W, C)
    # hpad_ref: (H+2, W+2, C)     VMEM scratch for padded intermediate
    H = out_ref.shape[1]
    W = out_ref.shape[2]
    C = out_ref.shape[3]

    x = x_ref[0]  # (H+2, W+2, C)

    # ---- conv1 (+ folded BN1) as 9 shifted MXU matmuls, then ReLU ----------
    acc = jnp.zeros((H * W, C), jnp.float32)
    for k in range(9):
        dy, dx = k // 3, k % 3
        xs = x[dy:dy + H, dx:dx + W, :].reshape(H * W, C)
        acc = acc + jnp.dot(xs, w1_ref[k],
                            preferred_element_type=jnp.float32)
    h = jnp.maximum(acc + b1_ref[...], 0.0)          # (H*W, C)

    # ---- zero-pad intermediate into VMEM scratch for conv2 ----------------
    hpad_ref[...] = jnp.zeros_like(hpad_ref)
    hpad_ref[1:H + 1, 1:W + 1, :] = h.reshape(H, W, C)
    hp = hpad_ref[...]

    # ---- conv2 (+ folded BN2) ----------------------------------------------
    acc2 = jnp.zeros((H * W, C), jnp.float32)
    for k in range(9):
        dy, dx = k // 3, k % 3
        hs = hp[dy:dy + H, dx:dx + W, :].reshape(H * W, C)
        acc2 = acc2 + jnp.dot(hs, w2_ref[k],
                              preferred_element_type=jnp.float32)

    # ---- residual add + final ReLU -----------------------------------------
    res = x[1:H + 1, 1:W + 1, :].reshape(H * W, C)
    y = jnp.maximum(acc2 + b2_ref[...] + res, 0.0)
    out_ref[0] = y.reshape(H, W, C).astype(out_ref.dtype)


def basic_block_pallas(x, params):
    """x: [B, C, H, W] NCHW float32; params: conv/bn params (eval mode)."""
    (w1, g1, beta1, m1, v1, w2, g2, beta2, m2, v2) = params
    B, Cin, H, W = x.shape
    Cout = w1.shape[0]
    assert Cin == Cout, "downsample=None path requires inplanes == planes"

    # Fold BN (eval) into conv: y = conv(x, W*scale) + (beta - mean*scale)
    s1 = g1 * jax.lax.rsqrt(v1 + BN_EPS)
    b1 = beta1 - m1 * s1
    s2 = g2 * jax.lax.rsqrt(v2 + BN_EPS)
    b2 = beta2 - m2 * s2

    # OIHW -> HWIO, scale on output channels, flatten the 3x3 taps.
    w1_f = (jnp.transpose(w1, (2, 3, 1, 0)) * s1).reshape(9, Cin, Cout)
    w2_f = (jnp.transpose(w2, (2, 3, 1, 0)) * s2).reshape(9, Cout, Cout)
    w1_f = w1_f.astype(jnp.float32)
    w2_f = w2_f.astype(jnp.float32)
    b1_2d = b1.reshape(1, Cout).astype(jnp.float32)
    b2_2d = b2.reshape(1, Cout).astype(jnp.float32)

    # NCHW -> NHWC (channels on lanes) + spatial zero pad for the 3x3 window.
    x_nhwc = jnp.transpose(x, (0, 2, 3, 1)).astype(jnp.float32)
    x_pad = jnp.pad(x_nhwc, ((0, 0), (1, 1), (1, 1), (0, 0)))

    out_nhwc = pl.pallas_call(
        _basic_block_kernel,
        out_shape=jax.ShapeDtypeStruct((B, H, W, Cout), jnp.float32),
        grid=(B,),
        in_specs=[
            pl.BlockSpec((1, H + 2, W + 2, Cin), lambda b: (b, 0, 0, 0)),
            pl.BlockSpec((9, Cin, Cout), lambda b: (0, 0, 0)),
            pl.BlockSpec((1, Cout), lambda b: (0, 0)),
            pl.BlockSpec((9, Cout, Cout), lambda b: (0, 0, 0)),
            pl.BlockSpec((1, Cout), lambda b: (0, 0)),
        ],
        out_specs=pl.BlockSpec((1, H, W, Cout), lambda b: (b, 0, 0, 0)),
        scratch_shapes=[pltpu.VMEM((H + 2, W + 2, Cout), jnp.float32)],
        compiler_params=pltpu.CompilerParams(
            dimension_semantics=("parallel",)),
    )(x_pad, w1_f, b1_2d, w2_f, b2_2d)

    # back to NCHW to match the PyTorch module's output layout
    return jnp.transpose(out_nhwc, (0, 3, 1, 2))


def basic_block_reference(x, params):
    """Pure-JAX mirror of BasicBlock.forward (eval-mode BN), for verification."""
    (w1, g1, beta1, m1, v1, w2, g2, beta2, m2, v2) = params

    def conv3x3(y, w):
        return jax.lax.conv_general_dilated(
            y, w, window_strides=(1, 1), padding="SAME",
            dimension_numbers=("NCHW", "OIHW", "NCHW"))

    def bn(y, g, b, m, v):
        g = g.reshape(1, -1, 1, 1)
        b = b.reshape(1, -1, 1, 1)
        m = m.reshape(1, -1, 1, 1)
        v = v.reshape(1, -1, 1, 1)
        return (y - m) * jax.lax.rsqrt(v + BN_EPS) * g + b

    out = jax.nn.relu(bn(conv3x3(x, w1), g1, beta1, m1, v1))
    out = bn(conv3x3(out, w2), g2, beta2, m2, v2)
    return jax.nn.relu(out + x)


if __name__ == "__main__":
    key = jax.random.PRNGKey(0)
    B, C, H, W = 2, 128, 16, 16          # e.g. ResNet layer2 block (no downsample)

    ks = jax.random.split(key, 12)
    fan = 9 * C
    x = jax.random.normal(ks[0], (B, C, H, W), jnp.float32)
    w1 = jax.random.normal(ks[1], (C, C, 3, 3), jnp.float32) * (2.0 / fan) ** 0.5
    w2 = jax.random.normal(ks[2], (C, C, 3, 3), jnp.float32) * (2.0 / fan) ** 0.5
    g1 = 1.0 + 0.1 * jax.random.normal(ks[3], (C,), jnp.float32)
    beta1 = 0.1 * jax.random.normal(ks[4], (C,), jnp.float32)
    m1 = 0.1 * jax.random.normal(ks[5], (C,), jnp.float32)
    v1 = jnp.abs(jax.random.normal(ks[6], (C,), jnp.float32)) + 0.5
    g2 = 1.0 + 0.1 * jax.random.normal(ks[7], (C,), jnp.float32)
    beta2 = 0.1 * jax.random.normal(ks[8], (C,), jnp.float32)
    m2 = 0.1 * jax.random.normal(ks[9], (C,), jnp.float32)
    v2 = jnp.abs(jax.random.normal(ks[10], (C,), jnp.float32)) + 0.5

    params = (w1, g1, beta1, m1, v1, w2, g2, beta2, m2, v2)

    out = basic_block_pallas(x, params)
    out = jax.block_until_ready(out)

    ref = basic_block_reference(x, params)
    ref = jax.block_until_ready(ref)

    np.testing.assert_allclose(np.array(out), np.array(ref),
                               rtol=2e-3, atol=2e-3)
    print("KERNEL_OK")
</pallas_src>

<mosaic_0001>
module attributes {stable_mosaic.version = 11 : i64} {
  func.func @_basic_block_kernel(%arg0: i32, %arg1: memref<1x18x18x128xf32, #tpu.memory_space<vmem>>, %arg2: memref<9x128x128xf32, #tpu.memory_space<vmem>>, %arg3: memref<1x128xf32, #tpu.memory_space<vmem>>, %arg4: memref<9x128x128xf32, #tpu.memory_space<vmem>>, %arg5: memref<1x128xf32, #tpu.memory_space<vmem>>, %arg6: memref<1x16x16x128xf32, #tpu.memory_space<vmem>>, %arg7: memref<18x18x128xf32, #tpu.memory_space<vmem>>) attributes {dimension_semantics = [#tpu.dimension_semantics<parallel>], iteration_bounds = array<i64: 2>, scalar_prefetch = 0 : i64, scratch_operands = 1 : i64, tpu.core_type = #tpu.core_type<tc>, window_params = [{transform_indices = @transform_0, window_bounds = array<i64: 1, 18, 18, 128>}, {pipeline_mode = #tpu.pipeline_mode<synchronous>, transform_indices = @transform_1, window_bounds = array<i64: 9, 128, 128>}, {pipeline_mode = #tpu.pipeline_mode<synchronous>, transform_indices = @transform_2, window_bounds = array<i64: 1, 128>}, {pipeline_mode = #tpu.pipeline_mode<synchronous>, transform_indices = @transform_3, window_bounds = array<i64: 9, 128, 128>}, {pipeline_mode = #tpu.pipeline_mode<synchronous>, transform_indices = @transform_4, window_bounds = array<i64: 1, 128>}, {transform_indices = @transform_5, window_bounds = array<i64: 1, 16, 16, 128>}]} {
    %c0 = arith.constant 0 : index
    %c0_0 = arith.constant 0 : index
    %c0_1 = arith.constant 0 : index
    %c0_2 = arith.constant 0 : index
    %0 = vector.load %arg1[%c0, %c0_0, %c0_1, %c0_2] : memref<1x18x18x128xf32, #tpu.memory_space<vmem>>, vector<1x18x18x128xf32>
    %1 = vector.shape_cast %0 : vector<1x18x18x128xf32> to vector<18x18x128xf32>
    %cst = arith.constant 0.000000e+00 : f32
    %2 = vector.broadcast %cst : f32 to vector<256x128xf32>
    %3 = vector.extract_strided_slice %1 {offsets = [0, 0, 0], sizes = [16, 16, 128], strides = [1, 1, 1]} : vector<18x18x128xf32> to vector<16x16x128xf32>
    %4 = vector.shape_cast %3 : vector<16x16x128xf32> to vector<256x128xf32>
    %c0_3 = arith.constant 0 : index
    %c0_4 = arith.constant 0 : index
    %c0_5 = arith.constant 0 : index
    %5 = vector.load %arg2[%c0_3, %c0_4, %c0_5] : memref<9x128x128xf32, #tpu.memory_space<vmem>>, vector<1x128x128xf32>
    %6 = vector.shape_cast %5 : vector<1x128x128xf32> to vector<128x128xf32>
    %cst_6 = arith.constant dense<0.000000e+00> : vector<256x128xf32>
    %7 = tpu.matmul %4, %6, %cst_6 {dimension_numbers = #tpu.dot_dimension_numbers<[1], [0], [0], [1], [0, 0, 1, 1], [], []>} : vector<256x128xf32>, vector<128x128xf32>, vector<256x128xf32> -> vector<256x128xf32>
    %8 = arith.addf %2, %7 : vector<256x128xf32>
    %9 = vector.extract_strided_slice %1 {offsets = [0, 1, 0], sizes = [16, 16, 128], strides = [1, 1, 1]} : vector<18x18x128xf32> to vector<16x16x128xf32>
    %10 = vector.shape_cast %9 : vector<16x16x128xf32> to vector<256x128xf32>
    %c1 = arith.constant 1 : index
    %c0_7 = arith.constant 0 : index
    %c0_8 = arith.constant 0 : index
    %11 = vector.load %arg2[%c1, %c0_7, %c0_8] : memref<9x128x128xf32, #tpu.memory_space<vmem>>, vector<1x128x128xf32>
    %12 = vector.shape_cast %11 : vector<1x128x128xf32> to vector<128x128xf32>
    %cst_9 = arith.constant dense<0.000000e+00> : vector<256x128xf32>
    %13 = tpu.matmul %10, %12, %cst_9 {dimension_numbers = #tpu.dot_dimension_numbers<[1], [0], [0], [1], [0, 0, 1, 1], [], []>} : vector<256x128xf32>, vector<128x128xf32>, vector<256x128xf32> -> vector<256x128xf32>
    %14 = arith.addf %8, %13 : vector<256x128xf32>
    %15 = vector.extract_strided_slice %1 {offsets = [0, 2, 0], sizes = [16, 16, 128], strides = [1, 1, 1]} : vector<18x18x128xf32> to vector<16x16x128xf32>
    %16 = vector.shape_cast %15 : vector<16x16x128xf32> to vector<256x128xf32>
    %c2 = arith.constant 2 : index
    %c0_10 = arith.constant 0 : index
    %c0_11 = arith.constant 0 : index
    %17 = vector.load %arg2[%c2, %c0_10, %c0_11] : memref<9x128x128xf32, #tpu.memory_space<vmem>>, vector<1x128x128xf32>
    %18 = vector.shape_cast %17 : vector<1x128x128xf32> to vector<128x128xf32>
    %cst_12 = arith.constant dense<0.000000e+00> : vector<256x128xf32>
    %19 = tpu.matmul %16, %18, %cst_12 {dimension_numbers = #tpu.dot_dimension_numbers<[1], [0], [0], [1], [0, 0, 1, 1], [], []>} : vector<256x128xf32>, vector<128x128xf32>, vector<256x128xf32> -> vector<256x128xf32>
    %20 = arith.addf %14, %19 : vector<256x128xf32>
    %21 = vector.extract_strided_slice %1 {offsets = [1, 0, 0], sizes = [16, 16, 128], strides = [1, 1, 1]} : vector<18x18x128xf32> to vector<16x16x128xf32>
    %22 = vector.shape_cast %21 : vector<16x16x128xf32> to vector<256x128xf32>
    %c3 = arith.constant 3 : index
    %c0_13 = arith.constant 0 : index
    %c0_14 = arith.constant 0 : index
    %23 = vector.load %arg2[%c3, %c0_13, %c0_14] : memref<9x128x128xf32, #tpu.memory_space<vmem>>, vector<1x128x128xf32>
    %24 = vector.shape_cast %23 : vector<1x128x128xf32> to vector<128x128xf32>
    %cst_15 = arith.constant dense<0.000000e+00> : vector<256x128xf32>
    %25 = tpu.matmul %22, %24, %cst_15 {dimension_numbers = #tpu.dot_dimension_numbers<[1], [0], [0], [1], [0, 0, 1, 1], [], []>} : vector<256x128xf32>, vector<128x128xf32>, vector<256x128xf32> -> vector<256x128xf32>
    %26 = arith.addf %20, %25 : vector<256x128xf32>
    %27 = vector.extract_strided_slice %1 {offsets = [1, 1, 0], sizes = [16, 16, 128], strides = [1, 1, 1]} : vector<18x18x128xf32> to vector<16x16x128xf32>
    %28 = vector.shape_cast %27 : vector<16x16x128xf32> to vector<256x128xf32>
    %c4 = arith.constant 4 : index
    %c0_16 = arith.constant 0 : index
    %c0_17 = arith.constant 0 : index
    %29 = vector.load %arg2[%c4, %c0_16, %c0_17] : memref<9x128x128xf32, #tpu.memory_space<vmem>>, vector<1x128x128xf32>
    %30 = vector.shape_cast %29 : vector<1x128x128xf32> to vector<128x128xf32>
    %cst_18 = arith.constant dense<0.000000e+00> : vector<256x128xf32>
    %31 = tpu.matmul %28, %30, %cst_18 {dimension_numbers = #tpu.dot_dimension_numbers<[1], [0], [0], [1], [0, 0, 1, 1], [], []>} : vector<256x128xf32>, vector<128x128xf32>, vector<256x128xf32> -> vector<256x128xf32>
    %32 = arith.addf %26, %31 : vector<256x128xf32>
    %33 = vector.extract_strided_slice %1 {offsets = [1, 2, 0], sizes = [16, 16, 128], strides = [1, 1, 1]} : vector<18x18x128xf32> to vector<16x16x128xf32>
    %34 = vector.shape_cast %33 : vector<16x16x128xf32> to vector<256x128xf32>
    %c5 = arith.constant 5 : index
    %c0_19 = arith.constant 0 : index
    %c0_20 = arith.constant 0 : index
    %35 = vector.load %arg2[%c5, %c0_19, %c0_20] : memref<9x128x128xf32, #tpu.memory_space<vmem>>, vector<1x128x128xf32>
    %36 = vector.shape_cast %35 : vector<1x128x128xf32> to vector<128x128xf32>
    %cst_21 = arith.constant dense<0.000000e+00> : vector<256x128xf32>
    %37 = tpu.matmul %34, %36, %cst_21 {dimension_numbers = #tpu.dot_dimension_numbers<[1], [0], [0], [1], [0, 0, 1, 1], [], []>} : vector<256x128xf32>, vector<128x128xf32>, vector<256x128xf32> -> vector<256x128xf32>
    %38 = arith.addf %32, %37 : vector<256x128xf32>
    %39 = vector.extract_strided_slice %1 {offsets = [2, 0, 0], sizes = [16, 16, 128], strides = [1, 1, 1]} : vector<18x18x128xf32> to vector<16x16x128xf32>
    %40 = vector.shape_cast %39 : vector<16x16x128xf32> to vector<256x128xf32>
    %c6 = arith.constant 6 : index
    %c0_22 = arith.constant 0 : index
    %c0_23 = arith.constant 0 : index
    %41 = vector.load %arg2[%c6, %c0_22, %c0_23] : memref<9x128x128xf32, #tpu.memory_space<vmem>>, vector<1x128x128xf32>
    %42 = vector.shape_cast %41 : vector<1x128x128xf32> to vector<128x128xf32>
    %cst_24 = arith.constant dense<0.000000e+00> : vector<256x128xf32>
    %43 = tpu.matmul %40, %42, %cst_24 {dimension_numbers = #tpu.dot_dimension_numbers<[1], [0], [0], [1], [0, 0, 1, 1], [], []>} : vector<256x128xf32>, vector<128x128xf32>, vector<256x128xf32> -> vector<256x128xf32>
    %44 = arith.addf %38, %43 : vector<256x128xf32>
    %45 = vector.extract_strided_slice %1 {offsets = [2, 1, 0], sizes = [16, 16, 128], strides = [1, 1, 1]} : vector<18x18x128xf32> to vector<16x16x128xf32>
    %46 = vector.shape_cast %45 : vector<16x16x128xf32> to vector<256x128xf32>
    %c7 = arith.constant 7 : index
    %c0_25 = arith.constant 0 : index
    %c0_26 = arith.constant 0 : index
    %47 = vector.load %arg2[%c7, %c0_25, %c0_26] : memref<9x128x128xf32, #tpu.memory_space<vmem>>, vector<1x128x128xf32>
    %48 = vector.shape_cast %47 : vector<1x128x128xf32> to vector<128x128xf32>
    %cst_27 = arith.constant dense<0.000000e+00> : vector<256x128xf32>
    %49 = tpu.matmul %46, %48, %cst_27 {dimension_numbers = #tpu.dot_dimension_numbers<[1], [0], [0], [1], [0, 0, 1, 1], [], []>} : vector<256x128xf32>, vector<128x128xf32>, vector<256x128xf32> -> vector<256x128xf32>
    %50 = arith.addf %44, %49 : vector<256x128xf32>
    %51 = vector.extract_strided_slice %1 {offsets = [2, 2, 0], sizes = [16, 16, 128], strides = [1, 1, 1]} : vector<18x18x128xf32> to vector<16x16x128xf32>
    %52 = vector.shape_cast %51 : vector<16x16x128xf32> to vector<256x128xf32>
    %c8 = arith.constant 8 : index
    %c0_28 = arith.constant 0 : index
    %c0_29 = arith.constant 0 : index
    %53 = vector.load %arg2[%c8, %c0_28, %c0_29] : memref<9x128x128xf32, #tpu.memory_space<vmem>>, vector<1x128x128xf32>
    %54 = vector.shape_cast %53 : vector<1x128x128xf32> to vector<128x128xf32>
    %cst_30 = arith.constant dense<0.000000e+00> : vector<256x128xf32>
    %55 = tpu.matmul %52, %54, %cst_30 {dimension_numbers = #tpu.dot_dimension_numbers<[1], [0], [0], [1], [0, 0, 1, 1], [], []>} : vector<256x128xf32>, vector<128x128xf32>, vector<256x128xf32> -> vector<256x128xf32>
    %56 = arith.addf %50, %55 : vector<256x128xf32>
    %c0_31 = arith.constant 0 : index
    %c0_32 = arith.constant 0 : index
    %57 = vector.load %arg3[%c0_31, %c0_32] : memref<1x128xf32, #tpu.memory_space<vmem>>, vector<1x128xf32>
    %58 = vector.broadcast %57 : vector<1x128xf32> to vector<256x128xf32>
    %59 = arith.addf %56, %58 : vector<256x128xf32>
    %cst_33 = arith.constant 0.000000e+00 : f32
    %60 = vector.broadcast %cst_33 : f32 to vector<256x128xf32>
    %61 = arith.maximumf %59, %60 : vector<256x128xf32>
    %cst_34 = arith.constant 0.000000e+00 : f32
    %62 = vector.broadcast %cst_34 : f32 to vector<18x18x128xf32>
    %c0_35 = arith.constant 0 : index
    %c0_36 = arith.constant 0 : index
    %c0_37 = arith.constant 0 : index
    %63 = vector.load %arg7[%c0_35, %c0_36, %c0_37] : memref<18x18x128xf32, #tpu.memory_space<vmem>>, vector<18x18x128xf32>
    tpu.vector_store %arg7[%c0_35, %c0_36, %c0_37], %62 {strides = array<i32>} : memref<18x18x128xf32, #tpu.memory_space<vmem>>, vector<18x18x128xf32>,
    %64 = vector.shape_cast %61 : vector<256x128xf32> to vector<16x16x128xf32>
    %c1_38 = arith.constant 1 : index
    %c1_39 = arith.constant 1 : index
    %c0_40 = arith.constant 0 : index
    %65 = vector.load %arg7[%c1_38, %c1_39, %c0_40] : memref<18x18x128xf32, #tpu.memory_space<vmem>>, vector<16x16x128xf32>
    tpu.vector_store %arg7[%c1_38, %c1_39, %c0_40], %64 {strides = array<i32>} : memref<18x18x128xf32, #tpu.memory_space<vmem>>, vector<16x16x128xf32>,
    %c0_41 = arith.constant 0 : index
    %c0_42 = arith.constant 0 : index
    %c0_43 = arith.constant 0 : index
    %66 = vector.load %arg7[%c0_41, %c0_42, %c0_43] : memref<18x18x128xf32, #tpu.memory_space<vmem>>, vector<18x18x128xf32>
    %cst_44 = arith.constant 0.000000e+00 : f32
    %67 = vector.broadcast %cst_44 : f32 to vector<256x128xf32>
    %68 = vector.extract_strided_slice %66 {offsets = [0, 0, 0], sizes = [16, 16, 128], strides = [1, 1, 1]} : vector<18x18x128xf32> to vector<16x16x128xf32>
    %69 = vector.shape_cast %68 : vector<16x16x128xf32> to vector<256x128xf32>
    %c0_45 = arith.constant 0 : index
    %c0_46 = arith.constant 0 : index
    %c0_47 = arith.constant 0 : index
    %70 = vector.load %arg4[%c0_45, %c0_46, %c0_47] : memref<9x128x128xf32, #tpu.memory_space<vmem>>, vector<1x128x128xf32>
    %71 = vector.shape_cast %70 : vector<1x128x128xf32> to vector<128x128xf32>
    %cst_48 = arith.constant dense<0.000000e+00> : vector<256x128xf32>
    %72 = tpu.matmul %69, %71, %cst_48 {dimension_numbers = #tpu.dot_dimension_numbers<[1], [0], [0], [1], [0, 0, 1, 1], [], []>} : vector<256x128xf32>, vector<128x128xf32>, vector<256x128xf32> -> vector<256x128xf32>
    %73 = arith.addf %67, %72 : vector<256x128xf32>
    %74 = vector.extract_strided_slice %66 {offsets = [0, 1, 0], sizes = [16, 16, 128], strides = [1, 1, 1]} : vector<18x18x128xf32> to vector<16x16x128xf32>
    %75 = vector.shape_cast %74 : vector<16x16x128xf32> to vector<256x128xf32>
    %c1_49 = arith.constant 1 : index
    %c0_50 = arith.constant 0 : index
    %c0_51 = arith.constant 0 : index
    %76 = vector.load %arg4[%c1_49, %c0_50, %c0_51] : memref<9x128x128xf32, #tpu.memory_space<vmem>>, vector<1x128x128xf32>
    %77 = vector.shape_cast %76 : vector<1x128x128xf32> to vector<128x128xf32>
    %cst_52 = arith.constant dense<0.000000e+00> : vector<256x128xf32>
    %78 = tpu.matmul %75, %77, %cst_52 {dimension_numbers = #tpu.dot_dimension_numbers<[1], [0], [0], [1], [0, 0, 1, 1], [], []>} : vector<256x128xf32>, vector<128x128xf32>, vector<256x128xf32> -> vector<256x128xf32>
    %79 = arith.addf %73, %78 : vector<256x128xf32>
    %80 = vector.extract_strided_slice %66 {offsets = [0, 2, 0], sizes = [16, 16, 128], strides = [1, 1, 1]} : vector<18x18x128xf32> to vector<16x16x128xf32>
    %81 = vector.shape_cast %80 : vector<16x16x128xf32> to vector<256x128xf32>
    %c2_53 = arith.constant 2 : index
    %c0_54 = arith.constant 0 : index
    %c0_55 = arith.constant 0 : index
    %82 = vector.load %arg4[%c2_53, %c0_54, %c0_55] : memref<9x128x128xf32, #tpu.memory_space<vmem>>, vector<1x128x128xf32>
    %83 = vector.shape_cast %82 : vector<1x128x128xf32> to vector<128x128xf32>
    %cst_56 = arith.constant dense<0.000000e+00> : vector<256x128xf32>
    %84 = tpu.matmul %81, %83, %cst_56 {dimension_numbers = #tpu.dot_dimension_numbers<[1], [0], [0], [1], [0, 0, 1, 1], [], []>} : vector<256x128xf32>, vector<128x128xf32>, vector<256x128xf32> -> vector<256x128xf32>
    %85 = arith.addf %79, %84 : vector<256x128xf32>
    %86 = vector.extract_strided_slice %66 {offsets = [1, 0, 0], sizes = [16, 16, 128], strides = [1, 1, 1]} : vector<18x18x128xf32> to vector<16x16x128xf32>
    %87 = vector.shape_cast %86 : vector<16x16x128xf32> to vector<256x128xf32>
    %c3_57 = arith.constant 3 : index
    %c0_58 = arith.constant 0 : index
    %c0_59 = arith.constant 0 : index
    %88 = vector.load %arg4[%c3_57, %c0_58, %c0_59] : memref<9x128x128xf32, #tpu.memory_space<vmem>>, vector<1x128x128xf32>
    %89 = vector.shape_cast %88 : vector<1x128x128xf32> to vector<128x128xf32>
    %cst_60 = arith.constant dense<0.000000e+00> : vector<256x128xf32>
    %90 = tpu.matmul %87, %89, %cst_60 {dimension_numbers = #tpu.dot_dimension_numbers<[1], [0], [0], [1], [0, 0, 1, 1], [], []>} : vector<256x128xf32>, vector<128x128xf32>, vector<256x128xf32> -> vector<256x128xf32>
    %91 = arith.addf %85, %90 : vector<256x128xf32>
    %92 = vector.extract_strided_slice %66 {offsets = [1, 1, 0], sizes = [16, 16, 128], strides = [1, 1, 1]} : vector<18x18x128xf32> to vector<16x16x128xf32>
    %93 = vector.shape_cast %92 : vector<16x16x128xf32> to vector<256x128xf32>
    %c4_61 = arith.constant 4 : index
    %c0_62 = arith.constant 0 : index
    %c0_63 = arith.constant 0 : index
    %94 = vector.load %arg4[%c4_61, %c0_62, %c0_63] : memref<9x128x128xf32, #tpu.memory_space<vmem>>, vector<1x128x128xf32>
    %95 = vector.shape_cast %94 : vector<1x128x128xf32> to vector<128x128xf32>
    %cst_64 = arith.constant dense<0.000000e+00> : vector<256x128xf32>
    %96 = tpu.matmul %93, %95, %cst_64 {dimension_numbers = #tpu.dot_dimension_numbers<[1], [0], [0], [1], [0, 0, 1, 1], [], []>} : vector<256x128xf32>, vector<128x128xf32>, vector<256x128xf32> -> vector<256x128xf32>
    %97 = arith.addf %91, %96 : vector<256x128xf32>
    %98 = vector.extract_strided_slice %66 {offsets = [1, 2, 0], sizes = [16, 16, 128], strides = [1, 1, 1]} : vector<18x18x128xf32> to vector<16x16x128xf32>
    %99 = vector.shape_cast %98 : vector<16x16x128xf32> to vector<256x128xf32>
    %c5_65 = arith.constant 5 : index
    %c0_66 = arith.constant 0 : index
    %c0_67 = arith.constant 0 : index
    %100 = vector.load %arg4[%c5_65, %c0_66, %c0_67] : memref<9x128x128xf32, #tpu.memory_space<vmem>>, vector<1x128x128xf32>
    %101 = vector.shape_cast %100 : vector<1x128x128xf32> to vector<128x128xf32>
    %cst_68 = arith.constant dense<0.000000e+00> : vector<256x128xf32>
    %102 = tpu.matmul %99, %101, %cst_68 {dimension_numbers = #tpu.dot_dimension_numbers<[1], [0], [0], [1], [0, 0, 1, 1], [], []>} : vector<256x128xf32>, vector<128x128xf32>, vector<256x128xf32> -> vector<256x128xf32>
    %103 = arith.addf %97, %102 : vector<256x128xf32>
    %104 = vector.extract_strided_slice %66 {offsets = [2, 0, 0], sizes = [16, 16, 128], strides = [1, 1, 1]} : vector<18x18x128xf32> to vector<16x16x128xf32>
    %105 = vector.shape_cast %104 : vector<16x16x128xf32> to vector<256x128xf32>
    %c6_69 = arith.constant 6 : index
    %c0_70 = arith.constant 0 : index
    %c0_71 = arith.constant 0 : index
    %106 = vector.load %arg4[%c6_69, %c0_70, %c0_71] : memref<9x128x128xf32, #tpu.memory_space<vmem>>, vector<1x128x128xf32>
    %107 = vector.shape_cast %106 : vector<1x128x128xf32> to vector<128x128xf32>
    %cst_72 = arith.constant dense<0.000000e+00> : vector<256x128xf32>
    %108 = tpu.matmul %105, %107, %cst_72 {dimension_numbers = #tpu.dot_dimension_numbers<[1], [0], [0], [1], [0, 0, 1, 1], [], []>} : vector<256x128xf32>, vector<128x128xf32>, vector<256x128xf32> -> vector<256x128xf32>
    %109 = arith.addf %103, %108 : vector<256x128xf32>
    %110 = vector.extract_strided_slice %66 {offsets = [2, 1, 0], sizes = [16, 16, 128], strides = [1, 1, 1]} : vector<18x18x128xf32> to vector<16x16x128xf32>
    %111 = vector.shape_cast %110 : vector<16x16x128xf32> to vector<256x128xf32>
    %c7_73 = arith.constant 7 : index
    %c0_74 = arith.constant 0 : index
    %c0_75 = arith.constant 0 : index
    %112 = vector.load %arg4[%c7_73, %c0_74, %c0_75] : memref<9x128x128xf32, #tpu.memory_space<vmem>>, vector<1x128x128xf32>
    %113 = vector.shape_cast %112 : vector<1x128x128xf32> to vector<128x128xf32>
    %cst_76 = arith.constant dense<0.000000e+00> : vector<256x128xf32>
    %114 = tpu.matmul %111, %113, %cst_76 {dimension_numbers = #tpu.dot_dimension_numbers<[1], [0], [0], [1], [0, 0, 1, 1], [], []>} : vector<256x128xf32>, vector<128x128xf32>, vector<256x128xf32> -> vector<256x128xf32>
    %115 = arith.addf %109, %114 : vector<256x128xf32>
    %116 = vector.extract_strided_slice %66 {offsets = [2, 2, 0], sizes = [16, 16, 128], strides = [1, 1, 1]} : vector<18x18x128xf32> to vector<16x16x128xf32>
    %117 = vector.shape_cast %116 : vector<16x16x128xf32> to vector<256x128xf32>
    %c8_77 = arith.constant 8 : index
    %c0_78 = arith.constant 0 : index
    %c0_79 = arith.constant 0 : index
    %118 = vector.load %arg4[%c8_77, %c0_78, %c0_79] : memref<9x128x128xf32, #tpu.memory_space<vmem>>, vector<1x128x128xf32>
    %119 = vector.shape_cast %118 : vector<1x128x128xf32> to vector<128x128xf32>
    %cst_80 = arith.constant dense<0.000000e+00> : vector<256x128xf32>
    %120 = tpu.matmul %117, %119, %cst_80 {dimension_numbers = #tpu.dot_dimension_numbers<[1], [0], [0], [1], [0, 0, 1, 1], [], []>} : vector<256x128xf32>, vector<128x128xf32>, vector<256x128xf32> -> vector<256x128xf32>
    %121 = arith.addf %115, %120 : vector<256x128xf32>
    %122 = vector.extract_strided_slice %1 {offsets = [1, 1, 0], sizes = [16, 16, 128], strides = [1, 1, 1]} : vector<18x18x128xf32> to vector<16x16x128xf32>
    %123 = vector.shape_cast %122 : vector<16x16x128xf32> to vector<256x128xf32>
    %c0_81 = arith.constant 0 : index
    %c0_82 = arith.constant 0 : index
    %124 = vector.load %arg5[%c0_81, %c0_82] : memref<1x128xf32, #tpu.memory_space<vmem>>, vector<1x128xf32>
    %125 = vector.broadcast %124 : vector<1x128xf32> to vector<256x128xf32>
    %126 = arith.addf %121, %125 : vector<256x128xf32>
    %127 = arith.addf %126, %123 : vector<256x128xf32>
    %cst_83 = arith.constant 0.000000e+00 : f32
    %128 = vector.broadcast %cst_83 : f32 to vector<256x128xf32>
    %129 = arith.maximumf %127, %128 : vector<256x128xf32>
    %130 = vector.shape_cast %129 : vector<256x128xf32> to vector<16x16x128xf32>
    %c0_84 = arith.constant 0 : index
    %c0_85 = arith.constant 0 : index
    %c0_86 = arith.constant 0 : index
    %c0_87 = arith.constant 0 : index
    %131 = vector.load %arg6[%c0_84, %c0_85, %c0_86, %c0_87] : memref<1x16x16x128xf32, #tpu.memory_space<vmem>>, vector<1x16x16x128xf32>
    %132 = vector.shape_cast %131 : vector<1x16x16x128xf32> to vector<16x16x128xf32>
    %133 = vector.shape_cast %130 : vector<16x16x128xf32> to vector<1x16x16x128xf32>
    tpu.vector_store %arg6[%c0_84, %c0_85, %c0_86, %c0_87], %133 {strides = array<i32>} : memref<1x16x16x128xf32, #tpu.memory_space<vmem>>, vector<1x16x16x128xf32>,
    return
  }
  func.func @transform_0(%arg0: i32) -> (i32, i32, i32, i32) {
    %c0_i32 = arith.constant 0 : i32
    %c0_i32_0 = arith.constant 0 : i32
    %c0_i32_1 = arith.constant 0 : i32
    %c0_i32_2 = arith.constant 0 : i32
    return %arg0, %c0_i32, %c0_i32_0, %c0_i32_1 : i32, i32, i32, i32
  }
  func.func @transform_1(%arg0: i32) -> (i32, i32, i32) {
    %c0_i32 = arith.constant 0 : i32
    %c0_i32_0 = arith.constant 0 : i32
    %c0_i32_1 = arith.constant 0 : i32
    %c0_i32_2 = arith.constant 0 : i32
    return %c0_i32, %c0_i32_0, %c0_i32_1 : i32, i32, i32
  }
  func.func @transform_2(%arg0: i32) -> (i32, i32) {
    %c0_i32 = arith.constant 0 : i32
    %c0_i32_0 = arith.constant 0 : i32
    %c0_i32_1 = arith.constant 0 : i32
    return %c0_i32, %c0_i32_0 : i32, i32
  }
  func.func @transform_3(%arg0: i32) -> (i32, i32, i32) {
    %c0_i32 = arith.constant 0 : i32
    %c0_i32_0 = arith.constant 0 : i32
    %c0_i32_1 = arith.constant 0 : i32
    %c0_i32_2 = arith.constant 0 : i32
    return %c0_i32, %c0_i32_0, %c0_i32_1 : i32, i32, i32
  }
  func.func @transform_4(%arg0: i32) -> (i32, i32) {
    %c0_i32 = arith.constant 0 : i32
    %c0_i32_0 = arith.constant 0 : i32
    %c0_i32_1 = arith.constant 0 : i32
    return %c0_i32, %c0_i32_0 : i32, i32
  }
  func.func @transform_5(%arg0: i32) -> (i32, i32, i32, i32) {
    %c0_i32 = arith.constant 0 : i32
    %c0_i32_0 = arith.constant 0 : i32
    %c0_i32_1 = arith.constant 0 : i32
    %c0_i32_2 = arith.constant 0 : i32
    return %arg0, %c0_i32, %c0_i32_0, %c0_i32_1 : i32, i32, i32, i32
  }
}

</mosaic_0001>

<bundles_post_ra>
// kernel: tpu_custom_call.1
= control target key start
LH: loop header
LB: loop body
LE: loop exit
PB: predicated region body
PF: predicated region fallthrough
CT: control target
= control target key end

     0   :  { %10 = vsyncpa [#allocation4], 0  ;;  %s12232_s0 = inlined_call_operand.vmem [shape: f32[2,18,18,128], index: 0, kind: input, shape index: {}]   ;;  %s12233_s1 = inlined_call_operand.vmem [shape: f32[9,128,128], index: 1, kind: input, shape index: {}]   ;;  %s12234_s2 = inlined_call_operand.vmem [shape: f32[1,128], index: 2, kind: input, shape index: {}]   ;;  %s12235_s3 = inlined_call_operand.hbm [shape: f32[9,128,128], index: 3, kind: input, shape index: {}]   ;;  %s12236_s4 = inlined_call_operand.vmem [shape: f32[1,128], index: 4, kind: input, shape index: {}]   ;;  %s12237_s5 = inlined_call_operand.hbm [shape: f32[2,16,16,128], index: 5, kind: output, shape index: {}]  }
   0x1   :  { %11 = vsyncpa [#allocation5], 0 }
   0x2   :  { %13 = vsyncpa [#allocation5 + $0x1], 0  ;;  %s8837_s18 = smov 0   ;;  %s8839_s19 = smov 0  }
   0x3   :  { %s8841_s20 = smov 0   ;;  %s8843_s21 = smov 0  }
   0x4 LB: > { %s8858_s22 = sadd.s32 4294967295, %s8798_s21   ;;  %s6143_s23 = sadd.s32 4294967294, %s8798_s21   ;;  %s8798_s21 = sphi %s8843_s21, %s12888_s21   ;;  %s8794_s20 = sphi %s8841_s20, %s12887_s20   ;;  %s8790_s19 = sphi %s8839_s19, %s12886_s19   ;;  %s8786_s18 = sphi %s8837_s18, %s12885_s18  }
   0x5   : > { %s8862_s24 = sadd.s32 1, %s8798_s21   ;;  %s136_s25 = sadd.s32 1, %s8794_s20 }
   0x6   : > { %s133_s26 = ssub.s32 %s8798_s21, %s8862_s24  ;;  %p146_p0 = scmp.ne.s32.totalorder %s8794_s20, %s8790_s19 }
   0x7   : > { %p134_p1 = scmp.eq.s32.totalorder %s133_s26, 0  ;;  %p147_p2 = scmp.eq.s32.totalorder %s8858_s22, 1 }
   0x8   : > { %p152_p3 = scmp.ne.s32.totalorder %s8790_s19, %s8786_s18  ;;  %p153_p4 = scmp.eq.s32.totalorder %s6143_s23, 1 }
   0x9   : > { %s8873_s27 = scalar_select %p134_p1, %s8794_s20, %s136_s25  }
   0xa   : > { %p8875_p5 = por %p147_p2, %p146_p0  ;;  %p8879_p6 = por %p153_p4, %p152_p3 }
   0xb   : > { %p6144_p7 = scmp.ge.s32.totalorder %s8798_s21, 1  ;;  %p160_p8 = scmp.lt.s32.totalorder %s8798_s21, 3 }
   0xc   : > { %s12387_s29 = scalar_select %p8879_p6, 1, 0 }
   0xd   : > { %p8606_p9 = scmp.eq.s32.totalorder %s8858_s22, 0  ;;  %p8886_p10 = pnand %p6144_p7, %p160_p8 }
   0xe   : > { %s8800_s6 = smov [#allocation3]  }
   0xf   : > { %s178_s7 = sshll.u32 %s8800_s6, 4  ;;  %p8598_p11 = pneg %p8886_p10  ;;  %s179_s7 = int_to_ptr.vmem [resolvable:$true] %s178_s7 }
  0x10   : > { %s8719_s8 = scalar_lea.vmem %s179_s7, 18432  ;;  %p8727_p3 = scmp.lt.s32.totalorder %s179_s7, %s179_s7 }
  0x11   : > { %p8599_p12 = pnand %p8606_p9, %p8598_p11  ;;  %p8720_p0 = scmp.ne.s32.totalorder %s179_s7, %s8719_s8 }
  0x12   : > { %p8728_p4 = scmp.lt.s32.totalorder %s8719_s8, %s8719_s8 }
  0x13   : > { %p8710_p13 = pneg %p8599_p12 }
  0x14   : > { %p8729_p6 = por %p8728_p4, %p8727_p3 }
  0x15   : > { %p8722_p1 = pnand %p8720_p0, %p8710_p13 }
  0x17   : > { %p8723_p2 = pneg %p8722_p1 }
  0x19   : > { %p8730_p7 = pnand %p8729_p6, %p8723_p2 }
  0x1b   : > { %8733 = shalt.err (!%p8730_p7)
}
  0x1c   : > { %s8801_s9 = smov 128   ;;  %s8802_s10 = smov 8  }
  0x1d   : > { %8601 = dma.hbm_to_vmem [thread:$0]  (!%p8599_p12), %s12235_s3, 18432, %s179_s7, [#allocation4], %s8801_s9, %s8801_s9, %s8802_s10  }
  0x1e   : > { %205 = sbr.rel (%p8886_p10) target bundleno = 1083 (0x43b), region = 40 }
  0x23   : > { %8777 = dma.done.wait (%p8606_p9), [#allocation4], 18432  }
  0x24   : > { %8779 = vsyncadd (%p8606_p9), [#allocation4], 4294948864  ;;  %v6166_v0 = vld [vmem:[%s12233_s1 + $0xf8] sm:$0xff]  ;;  %v6165_v2 = vld [vmem:[%s12233_s1 + $0xf0] sm:$0xff]  ;;  %p233_p6 = scmp.lt.s32.totalorder %s8858_s22, 1  ;;  %vm356_vm0 = vcmask 1046528  }
  0x25   : > { %v307_v1 = vld [vmem:[%s12233_s1 + $0x78] sm:$0xff]  ;;  %7151 = vmatprep.subr.mxu0 %v6166_v0  ;;  %v306_v3 = vld [vmem:[%s12233_s1 + $0x70] sm:$0xff]  ;;  %v6164_v4 = vld [vmem:[%s12233_s1 + $0xe8] sm:$0xff]  ;;  %vm936_vm1 = vcmask 1045504   ;;  %s230_s26 = sand.u32 1, %s8790_s19   ;;  %s6286_s8 = sshll.u32 %s8858_s22, 12 }
  0x26   : > { %7231 = vmatprep.subr.mxu1 %v307_v1  ;;  %7152 = vmatpush3.msra.mxu0 %v6166_v0  ;;  %v305_v5 = vld [vmem:[%s12233_s1 + $0x68] sm:$0xff]  ;;  %v6163_v6 = vld [vmem:[%s12233_s1 + $0xe0] sm:$0xff]  ;;  %v6162_v8 = vld [vmem:[%s12233_s1 + $0xd8] sm:$0xff]  ;;  %s234_s9 = scalar_select %p233_p6, %s8858_s22, 1 }
  0x27   : > { %7232 = vmatpush3.msra.mxu1 %v307_v1  ;;  %7153 = vmatprep.subr.mxu0 %v6165_v2  ;;  %v304_v7 = vld [vmem:[%s12233_s1 + $0x60] sm:$0xff]  ;;  %v303_v9 = vld [vmem:[%s12233_s1 + $0x58] sm:$0xff]  ;;  %v6161_v10 = vld [vmem:[%s12233_s1 + $0xd0] sm:$0xff]  ;;  %s6149_s6 = sshll.u32 %s230_s26, 8  ;;  %s12184_s12 = scalar_lea.hbm %s12237_s5, %s6286_s8 }
  0x28   : > { %7233 = vmatprep.subr.mxu1 %v306_v3  ;;  %7154 = vmatpush3.msra.mxu0 %v6165_v2  ;;  %v302_v11 = vld [vmem:[%s12233_s1 + $0x50] sm:$0xff]  ;;  %v6160_v12 = vld [vmem:[%s12233_s1 + $0xc8] sm:$0xff]  ;;  %v6159_v14 = vld [vmem:[%s12233_s1 + $0xc0] sm:$0xff]  ;;  %s8591_s23 = smul.u32 432, %s234_s9  ;;  %s11984_s7 = scalar_lea.vmem [#allocation6], %s6149_s6 }
  0x29   : > { %7234 = vmatpush3.msra.mxu1 %v306_v3  ;;  %7155 = vmatprep.subr.mxu0 %v6164_v4  ;;  %v301_v13 = vld [vmem:[%s12233_s1 + $0x48] sm:$0xff]  ;;  %v300_v15 = vld [vmem:[%s12233_s1 + $0x40] sm:$0xff]  ;;  %v6158_v16 = vld [vmem:[%s12233_s1 + $0xb8] sm:$0xff]  ;;  %s6069_s10 = sshll.u32 %s11984_s7, 4  ;;  %s12192_s22 = scalar_lea.sflag [#allocation5], %s230_s26  ;;  %s12186_s10 = int_to_ptr.vmem [resolvable:$true] %s6069_s10 }
  0x2a   : > { %7235 = vmatprep.subr.mxu1 %v305_v5  ;;  %7156 = vmatpush3.msra.mxu0 %v6164_v4  ;;  %v299_v17 = vld [vmem:[%s12233_s1 + $0x38] sm:$0xff]  ;;  %v6157_v18 = vld [vmem:[%s12233_s1 + $0xb0] sm:$0xff]  ;;  %v6156_v20 = vld [vmem:[%s12233_s1 + $0xa8] sm:$0xff]  ;;  %s8974_s13 = scalar_lea.vmem %s12232_s0, %s8591_s23  ;;  %s8734_s14 = scalar_lea.vmem %s12186_s10, 4096 }
  0x2b   : > { %7236 = vmatpush3.msra.mxu1 %v305_v5  ;;  %7157 = vmatprep.subr.mxu0 %v6163_v6  ;;  %v298_v19 = vld [vmem:[%s12233_s1 + $0x30] sm:$0xff]  ;;  %v297_v21 = vld [vmem:[%s12233_s1 + $0x28] sm:$0xff]  ;;  %v6155_v22 = vld [vmem:[%s12233_s1 + $0xa0] sm:$0xff]  ;;  %p8735_p8 = scmp.ne.s32.totalorder %s12186_s10, %s8734_s14  ;;  %s8804_s15 = smov [#allocation6]  }
  0x2c   : > { %7237 = vmatprep.subr.mxu1 %v304_v7  ;;  %7158 = vmatpush3.msra.mxu0 %v6163_v6  ;;  %v296_v23 = vld [vmem:[%s12233_s1 + $0x20] sm:$0xff]  ;;  %v6154_v24 = vld [vmem:[%s12233_s1 + $0x98] sm:$0xff]  ;;  %v8992_v27 = vld [vmem:[%s8974_s13 + $0x8] sm:$0xff]  ;;  %s8738_s16 = sshll.u32 %s8804_s15, 4  ;;  %s8739_s16 = int_to_ptr.vmem [resolvable:$false] %s8738_s16 }
  0x2d   : > { %7238 = vmatpush3.msra.mxu1 %v304_v7  ;;  %7159 = vmatprep.subr.mxu0 %v6162_v8  ;;  %v295_v25 = vld [vmem:[%s12233_s1 + $0x18] sm:$0xff]  ;;  %v8989_v26 = vld [vmem:[%s8974_s13] sm:$0xff]  ;;  %v6153_v28 = vld [vmem:[%s12233_s1 + $0x90] sm:$0xff]  ;;  %v358_v32 = vrot.slane %v8992_v27, 1  ;;  %p8736_p9 = pnand %p8735_p8, %p8875_p5  ;;  %s8740_s17 = scalar_lea.vmem %s8739_s16, 8192 }
  0x2e   : > { %7239 = vmatprep.subr.mxu1 %v303_v9  ;;  %7160 = vmatpush3.msra.mxu0 %v6162_v8  ;;  %v294_v29 = vld [vmem:[%s12233_s1 + $0x10] sm:$0xff]  ;;  %v357_v31 = vrot.slane %v8989_v26, 1  ;;  %v9006_v33 = vld [vmem:[%s8974_s13 + $0x18] sm:$0xff]  ;;  %v9009_v34 = vld [vmem:[%s8974_s13 + $0x20] sm:$0xff]  ;;  %p8741_p11 = scmp.lt.s32.totalorder %s12186_s10, %s8739_s16  ;;  %p8742_p12 = scmp.lt.s32.totalorder %s8740_s17, %s8734_s14 }
  0x2f   : > { %7240 = vmatpush3.msra.mxu1 %v303_v9  ;;  %7161 = vmatprep.subr.mxu0 %v6161_v10  ;;  %v9001_v30 = vld [vmem:[%s8974_s13 + $0x10] sm:$0x3]  ;;  %v6152_v35 = vld [vmem:[%s12233_s1 + $0x88] sm:$0xff]  ;;  %v6151_v38 = vld [vmem:[%s12233_s1 + $0x80] sm:$0xff]  ;;  %v362_v40 = vrot.slane %v9006_v33, 1  ;;  %v363_v41 = vrot.slane %v9009_v34, 1  ;;  %p8737_p10 = pneg %p8736_p9 }
  0x30   : > { %7241 = vmatprep.subr.mxu1 %v302_v11  ;;  %7162 = vmatpush3.msra.mxu0 %v6161_v10  ;;  %v293_v36 = vld [vmem:[%s12233_s1 + $0x8] sm:$0xff]  ;;  %v360_v37 = vrot.slane %v9001_v30, 1  ;;  %v292_v39 = vld [vmem:[%s12233_s1] sm:$0xff]  ;;  %v359_v43 = vsel %vm356_vm0, %v357_v31, %v358_v32  ;;  %v9031_v44 = vld [vmem:[%s8974_s13 + $0x30] sm:$0xff]  ;;  %p8743_p13 = por %p8742_p12, %p8741_p11 }
  0x31   : > { %7242 = vmatpush3.msra.mxu1 %v302_v11  ;;  %7163 = vmatprep.subr.mxu0 %v6160_v12  ;;  %v9027_v42 = vld [vmem:[%s8974_s13 + $0x28] sm:$0x3]  ;;  %v9034_v45 = vld [vmem:[%s8974_s13 + $0x38] sm:$0xff]  ;;  %v9042_v49 = vsel %vm356_vm0, %v362_v40, %v363_v41  ;;  %v367_v50 = vrot.slane %v9031_v44, 1  ;;  %v9047_v52 = vld [vmem:[%s8974_s13 + $0x40] sm:$0x3] }
  0x32   : > { %7243 = vmatprep.subr.mxu1 %v301_v13  ;;  %7164 = vmatpush3.msra.mxu0 %v6160_v12  ;;  %v361_v46 = vsel %vm356_vm0, %v358_v32, %v360_v37  ;;  %v365_v47 = vrot.slane %v9027_v42, 1  ;;  %v6182_v48 = vld [vmem:[%s12233_s1 + $0x178] sm:$0xff]  ;;  %12389 = vst [vmem:[#allocation9_spill] sm:$0xff] %v9042_v49  ;;  %v368_v51 = vrot.slane %v9034_v45, 1  ;;  %v9051_v53 = vld [vmem:[%s8974_s13 + $0x48] sm:$0xff]  ;;  %v9054_v54 = vld [vmem:[%s8974_s13 + $0x50] sm:$0xff]  ;;  %p8744_p0 = pnand %p8743_p13, %p8737_p10 }
  0x33   : > { %7244 = vmatpush3.msra.mxu1 %v301_v13  ;;  %7165 = vmatprep.subr.mxu0 %v6159_v14  ;;  %v6181_v55 = vld [vmem:[%s12233_s1 + $0x170] sm:$0xff]  ;;  %v6198_v56 = vld [vmem:[%s12233_s1 + $0x1f8] sm:$0xff]  ;;  %v370_v58 = vrot.slane %v9047_v52, 1  ;;  %v372_v60 = vrot.slane %v9051_v53, 1  ;;  %v373_v61 = vrot.slane %v9054_v54, 1  ;;  %v6180_v63 = vld [vmem:[%s12233_s1 + $0x168] sm:$0xff] }
  0x34   : > { %7245 = vmatprep.subr.mxu1 %v300_v15  ;;  %7166 = vmatpush3.msra.mxu0 %v6159_v14  ;;  %v9065_v57 = vsel %vm356_vm0, %v363_v41, %v365_v47  ;;  %v9070_v59 = vsel %vm356_vm0, %v367_v50, %v368_v51  ;;  %v9075_v62 = vld [vmem:[%s8974_s13 + $0x58] sm:$0x3]  ;;  %v9081_v0 = vld [vmem:[%s8974_s13 + $0x60] sm:$0xff]  ;;  %v9084_v1 = vld [vmem:[%s8974_s13 + $0x68] sm:$0xff] }
  0x35   : > { %7246 = vmatpush3.msra.mxu1 %v300_v15  ;;  %7167 = vmatprep.subr.mxu0 %v6158_v16  ;;  %12390 = vst [vmem:[#allocation10_spill] sm:$0xff] %v9065_v57  ;;  %12391 = vst [vmem:[#allocation11_spill] sm:$0xff] %v9070_v59  ;;  %v9090_v2 = vsel %vm356_vm0, %v368_v51, %v370_v58  ;;  %v375_v3 = vrot.slane %v9075_v62, 1  ;;  %v9095_v4 = vsel %vm356_vm0, %v372_v60, %v373_v61  ;;  %v6179_v5 = vld [vmem:[%s12233_s1 + $0x160] sm:$0xff]  ;;  %v9103_v8 = vld [vmem:[%s8974_s13 + $0x70] sm:$0x3] }
  0x36   : > { %7247 = vmatprep.subr.mxu1 %v299_v17  ;;  %7168 = vmatpush3.msra.mxu0 %v6158_v16  ;;  %12392 = vst [vmem:[#allocation12_spill] sm:$0xff] %v9090_v2  ;;  %12393 = vst [vmem:[#allocation13_spill] sm:$0xff] %v9095_v4  ;;  %v377_v6 = vrot.slane %v9081_v0, 1  ;;  %v378_v7 = vrot.slane %v9084_v1, 1  ;;  %v9106_v9 = vld [vmem:[%s8974_s13 + $0x78] sm:$0xff]  ;;  %v9109_v10 = vld [vmem:[%s8974_s13 + $0x80] sm:$0xff] }
  0x37   : > { %7248 = vmatpush3.msra.mxu1 %v299_v17  ;;  %7169 = vmatprep.subr.mxu0 %v6157_v18  ;;  %v6197_v11 = vld [vmem:[%s12233_s1 + $0x1f0] sm:$0xff]  ;;  %v9119_v12 = vsel %vm356_vm0, %v373_v61, %v375_v3  ;;  %v380_v13 = vrot.slane %v9103_v8, 1  ;;  %v6178_v15 = vld [vmem:[%s12233_s1 + $0x158] sm:$0xff]  ;;  %v382_v16 = vrot.slane %v9106_v9, 1  ;;  %v383_v17 = vrot.slane %v9109_v10, 1  ;;  %v9162_v32 = vld [vmem:[%s8974_s13 + $0xa8] sm:$0xff] }
  0x38   : > { %7249 = vmatprep.subr.mxu1 %v298_v19  ;;  %7170 = vmatpush3.msra.mxu0 %v6157_v18  ;;  %12394 = vst [vmem:[#allocation14_spill] sm:$0xff] %v9119_v12  ;;  %v9123_v14 = vsel %vm356_vm0, %v377_v6, %v378_v7  ;;  %v9131_v18 = vld [vmem:[%s8974_s13 + $0x88] sm:$0x3]  ;;  %v9159_v31 = vld [vmem:[%s8974_s13 + $0xa0] sm:$0x3]  ;;  %v392_v41 = vrot.slane %v9162_v32, 1 }
  0x39   : > { %7250 = vmatpush3.msra.mxu1 %v298_v19  ;;  %7171 = vmatprep.subr.mxu0 %v6156_v20  ;;  %12395 = vst [vmem:[#allocation15_spill] sm:$0xff] %v9123_v14  ;;  %v9134_v19 = vld [vmem:[%s8974_s13 + $0x90] sm:$0xff]  ;;  %v6176_v40 = vld [vmem:[%s12233_s1 + $0x148] sm:$0xff]  ;;  %v9190_v47 = vld [vmem:[%s8974_s13 + $0xc0] sm:$0xff] }
  0x3a   : > { %7251 = vmatprep.subr.mxu1 %v297_v21  ;;  %7172 = vmatpush3.msra.mxu0 %v6156_v20  ;;  %v9137_v20 = vld [vmem:[%s8974_s13 + $0x98] sm:$0xff]  ;;  %v6175_v58 = vld [vmem:[%s12233_s1 + $0x140] sm:$0xff]  ;;  %v397_v60 = vrot.slane %v9190_v47, 1  ;;  %v6193_v6 = vld [vmem:[%s12233_s1 + $0x1d0] sm:$0xff] }
  0x3b   : > { %7252 = vmatpush3.msra.mxu1 %v297_v21  ;;  %7173 = vmatprep.subr.mxu0 %v6155_v22  ;;  %v6196_v21 = vld [vmem:[%s12233_s1 + $0x1e8] sm:$0xff]  ;;  %v6194_v50 = vld [vmem:[%s12233_s1 + $0x1d8] sm:$0xff] }
  0x3c   : > { %7253 = vmatprep.subr.mxu1 %v296_v23  ;;  %7174 = vmatpush3.msra.mxu0 %v6155_v22  ;;  %v9147_v22 = vsel %vm356_vm0, %v378_v7, %v380_v13  ;;  %v9218_v3 = vld [vmem:[%s8974_s13 + $0xd8] sm:$0xff] }
  0x3d   : > { %7254 = vmatpush3.msra.mxu1 %v296_v23  ;;  %7175 = vmatprep.subr.mxu0 %v6154_v24  ;;  %12396 = vst [vmem:[#allocation16_spill] sm:$0xff] %v9147_v22  ;;  %v385_v23 = vrot.slane %v9131_v18, 1 }
  0x3e   : > { %7255 = vmatprep.subr.mxu1 %v295_v25  ;;  %7176 = vmatpush3.msra.mxu0 %v6154_v24  ;;  %v9151_v24 = vsel %vm356_vm0, %v382_v16, %v383_v17  ;;  %v402_v16 = vrot.slane %v9218_v3, 1 }
  0x3f   : > { %7256 = vmatpush3.msra.mxu1 %v295_v25  ;;  %7177 = vmatprep.subr.mxu0 %v6153_v28  ;;  %12397 = vst [vmem:[#allocation17_spill] sm:$0xff] %v9151_v24  ;;  %v6177_v25 = vld [vmem:[%s12233_s1 + $0x150] sm:$0xff]  ;;  %v9175_v37 = vsel %vm356_vm0, %v383_v17, %v385_v23 }
  0x40   : > { %7257 = vmatprep.subr.mxu1 %v294_v29  ;;  %7178 = vmatpush3.msra.mxu0 %v6153_v28  ;;  %v387_v28 = vrot.slane %v9134_v19, 1  ;;  %12398 = vst [vmem:[#allocation18_spill] sm:$0xff] %v9175_v37  ;;  %v9246_v23 = vld [vmem:[%s8974_s13 + $0xf0] sm:$0xff] }
  0x41   : > { %7258 = vmatpush3.msra.mxu1 %v294_v29  ;;  %7179 = vmatprep.subr.mxu0 %v6152_v35  ;;  %v388_v29 = vrot.slane %v9137_v20, 1 }
  0x42   : > { %7259 = vmatprep.subr.mxu1 %v293_v36  ;;  %7180 = vmatpush3.msra.mxu0 %v6152_v35  ;;  %v9165_v35 = vld [vmem:[%s8974_s13 + $0xb0] sm:$0xff] }
  0x43   : > { %7260 = vmatpush3.msra.mxu1 %v293_v36  ;;  %7181 = vmatprep.subr.mxu0 %v6151_v38  ;;  %v6195_v36 = vld [vmem:[%s12233_s1 + $0x1e0] sm:$0xff] }
  0x44   : > { %7261 = vmatprep.subr.mxu1 %v292_v39  ;;  %7182 = vmatpush3.msra.mxu0 %v6151_v38  ;;  %v390_v38 = vrot.slane %v9159_v31, 1 }
  0x45   : > { %7183 = vmatprep.mubr.f32.mxu0 %v359_v43  ;;  %7262 = vmatpush3.msra.mxu1 %v292_v39  ;;  %v9179_v39 = vsel %vm356_vm0, %v387_v28, %v388_v29  ;;  %v393_v43 = vrot.slane %v9165_v35, 1  ;;  %v6192_v28 = vld [vmem:[%s12233_s1 + $0x1c8] sm:$0xff] }
  0x46   : > { %7263 = vmatprep.mubr.f32.mxu1 %v8989_v26  ;;  %7184 = vmatmul.mubr.f32.vlgmr.msra.gmra.mxu0 %v361_v46  ;;  %12399 = vst [vmem:[#allocation19_spill] sm:$0xff] %v9179_v39  ;;  %v9187_v46 = vld [vmem:[%s8974_s13 + $0xb8] sm:$0x3]  ;;  %v9203_v51 = vsel %vm356_vm0, %v388_v29, %v390_v38 }
  0x47   : > { %7264 = vmatmul.mubr.f32.vlgmr.msra.gmra.mxu1 %v8992_v27  ;;  %7311 = vmatprep.subr.mxu0 %v6182_v48  ;;  %12400 = vst [vmem:[#allocation20_spill] sm:$0xff] %v9203_v51 }
  0x48   : > { %7186 = vmatprep.mubr.f32.mxu0 %v9042_v49  ;;  %7312 = vmatpush3.msra.mxu0 %v6182_v48  ;;  %v9193_v48 = vld [vmem:[%s8974_s13 + $0xc8] sm:$0xff] }
  0x49   : > { %7266 = vmatprep.mubr.f32.mxu1 %v9006_v33  ;;  %7313 = vmatprep.subr.mxu0 %v6181_v55  ;;  %v398_v61 = vrot.slane %v9193_v48, 1 }
  0x4a   : > { %7391 = vmatprep.subr.mxu1 %v6198_v56  ;;  %7187 = vmatmul.mubr.f32.gmra.mxu0 %v9065_v57 }
  0x4b   : > { %7267 = vmatmul.mubr.f32.gmra.mxu1 %v9009_v34  ;;  %7314 = vmatpush3.msra.mxu0 %v6181_v55  ;;  %v395_v55 = vrot.slane %v9187_v46, 1  ;;  %v9235_v13 = vsel %vm356_vm0, %v397_v60, %v398_v61  ;;  %v6191_v60 = vld [vmem:[%s12233_s1 + $0x1c0] sm:$0xff] }
  0x4c   : > { %7189 = vmatprep.mubr.f32.mxu0 %v9070_v59  ;;  %7269 = vmatprep.mubr.f32.mxu1 %v9031_v44  ;;  %12403 = vst [vmem:[#allocation23_spill] sm:$0xff] %v9235_v13 }
  0x4d   : > { %7315 = vmatprep.subr.mxu0 %v6180_v63  ;;  %7392 = vmatpush3.msra.mxu1 %v6198_v56  ;;  %v9207_v56 = vsel %vm356_vm0, %v392_v41, %v393_v43  ;;  %v9231_v7 = vsel %vm356_vm0, %v393_v43, %v395_v55  ;;  %v407_v41 = vrot.slane %v9246_v23, 1  ;;  %v9274_v55 = vld [vmem:[%s8974_s13 + $0x108] sm:$0xff] }
  0x4e   : > { %7316 = vmatpush3.msra.mxu0 %v6180_v63  ;;  %7393 = vmatprep.subr.mxu1 %v6197_v11  ;;  %12401 = vst [vmem:[#allocation21_spill] sm:$0xff] %v9207_v56  ;;  %v9215_v63 = vld [vmem:[%s8974_s13 + $0xd0] sm:$0x3]  ;;  %12402 = vst [vmem:[#allocation22_spill] sm:$0xff] %v9231_v7 }
  0x4f   : > { %7190 = vmatmul.mubr.f32.gmra.mxu0 %v9090_v2  ;;  %7270 = vmatmul.mubr.f32.gmra.mxu1 %v9034_v45 }
  0x50   : > { %7192 = vmatprep.mubr.f32.mxu0 %v9095_v4  ;;  %7272 = vmatprep.mubr.f32.mxu1 %v9051_v53  ;;  %v9408_v4 = vld [vmem:[%s8974_s13 + $0x178] sm:$0x3] }
  0x51   : > { %7317 = vmatprep.subr.mxu0 %v6179_v5  ;;  %7394 = vmatpush3.msra.mxu1 %v6197_v11  ;;  %v400_v11 = vrot.slane %v9215_v63, 1 }
  0x52   : > { %7318 = vmatpush3.msra.mxu0 %v6179_v5  ;;  %7395 = vmatprep.subr.mxu1 %v6196_v21  ;;  %v9221_v5 = vld [vmem:[%s8974_s13 + $0xe0] sm:$0xff] }
  0x53   : > { %7193 = vmatmul.mubr.f32.gmra.mxu0 %v9119_v12  ;;  %7273 = vmatmul.mubr.f32.gmra.mxu1 %v9054_v54  ;;  %v403_v17 = vrot.slane %v9221_v5, 1  ;;  %v9259_v29 = vsel %vm356_vm0, %v398_v61, %v400_v11 }
  0x54   : > { %7195 = vmatprep.mubr.f32.mxu0 %v9123_v14  ;;  %7275 = vmatprep.mubr.f32.mxu1 %v9081_v0  ;;  %12404 = vst [vmem:[#allocation24_spill] sm:$0xff] %v9259_v29 }
  0x55   : > { %7319 = vmatprep.subr.mxu0 %v6178_v15  ;;  %7396 = vmatpush3.msra.mxu1 %v6196_v21  ;;  %v9243_v21 = vld [vmem:[%s8974_s13 + $0xe8] sm:$0x3]  ;;  %v9263_v38 = vsel %vm356_vm0, %v402_v16, %v403_v17  ;;  %v412_v16 = vrot.slane %v9274_v55, 1 }
  0x56   : > { %7320 = vmatpush3.msra.mxu0 %v6178_v15  ;;  %7397 = vmatprep.subr.mxu1 %v6195_v36  ;;  %v6174_v15 = vld [vmem:[%s12233_s1 + $0x138] sm:$0xff]  ;;  %12405 = vst [vmem:[#allocation25_spill] sm:$0xff] %v9263_v38 }
  0x57   : > { %7196 = vmatmul.mubr.f32.gmra.mxu0 %v9147_v22  ;;  %7276 = vmatmul.mubr.f32.gmra.mxu1 %v9084_v1  ;;  %v9383_v22 = vld [vmem:[%s8974_s13 + $0x160] sm:$0x3] }
  0x58   : > { %7198 = vmatprep.mubr.f32.mxu0 %v9151_v24  ;;  %7278 = vmatprep.mubr.f32.mxu1 %v9106_v9 }
  0x59   : > { %7321 = vmatprep.subr.mxu0 %v6177_v25  ;;  %7398 = vmatpush3.msra.mxu1 %v6195_v36  ;;  %v405_v36 = vrot.slane %v9243_v21, 1 }
  0x5a   : > { %7322 = vmatpush3.msra.mxu0 %v6177_v25  ;;  %7399 = vmatprep.subr.mxu1 %v6194_v50  ;;  %v9249_v25 = vld [vmem:[%s8974_s13 + $0xf8] sm:$0xff] }
  0x5b   : > { %7199 = vmatmul.mubr.f32.gmra.mxu0 %v9175_v37  ;;  %7279 = vmatmul.mubr.f32.gmra.mxu1 %v9109_v10  ;;  %v408_v43 = vrot.slane %v9249_v25, 1  ;;  %v9287_v61 = vsel %vm356_vm0, %v403_v17, %v405_v36  ;;  %v9302_v17 = vld [vmem:[%s8974_s13 + $0x120] sm:$0xff]  ;;  %v9305_v36 = vld [vmem:[%s8974_s13 + $0x128] sm:$0xff] }
  0x5c   : > { %7201 = vmatprep.mubr.f32.mxu0 %v9179_v39  ;;  %7281 = vmatprep.mubr.f32.mxu1 %v9134_v19  ;;  %12406 = vst [vmem:[#allocation26_spill] sm:$0xff] %v9287_v61 }
  0x5d   : > { %7323 = vmatprep.subr.mxu0 %v6176_v40  ;;  %7400 = vmatpush3.msra.mxu1 %v6194_v50  ;;  %v9271_v50 = vld [vmem:[%s8974_s13 + $0x100] sm:$0x3]  ;;  %v9291_v11 = vsel %vm356_vm0, %v407_v41, %v408_v43  ;;  %v6190_v41 = vld [vmem:[%s12233_s1 + $0x1b8] sm:$0xff] }
  0x5e   : > { %7324 = vmatpush3.msra.mxu0 %v6176_v40  ;;  %7401 = vmatprep.subr.mxu1 %v6193_v6  ;;  %v6173_v40 = vld [vmem:[%s12233_s1 + $0x130] sm:$0xff]  ;;  %12407 = vst [vmem:[#allocation27_spill] sm:$0xff] %v9291_v11 }
  0x5f   : > { %7202 = vmatmul.mubr.f32.gmra.mxu0 %v9203_v51  ;;  %7282 = vmatmul.mubr.f32.gmra.mxu1 %v9137_v20 }
  0x60   : > { %7204 = vmatprep.mubr.f32.mxu0 %v9207_v56  ;;  %7284 = vmatprep.mubr.f32.mxu1 %v9162_v32 }
  0x61   : > { %7325 = vmatprep.subr.mxu0 %v6175_v58  ;;  %7402 = vmatpush3.msra.mxu1 %v6193_v6  ;;  %v410_v6 = vrot.slane %v9271_v50, 1 }
  0x62   : > { %7326 = vmatpush3.msra.mxu0 %v6175_v58  ;;  %7403 = vmatprep.subr.mxu1 %v6192_v28  ;;  %v9277_v58 = vld [vmem:[%s8974_s13 + $0x110] sm:$0xff] }
  0x63   : > { %7205 = vmatmul.mubr.f32.gmra.mxu0 %v9231_v7  ;;  %7285 = vmatmul.mubr.f32.gmra.mxu1 %v9165_v35  ;;  %v418_v7 = vrot.slane %v9305_v36, 1 }
  0x64   : > { %7207 = vmatprep.mubr.f32.mxu0 %v9235_v13  ;;  %7287 = vmatprep.mubr.f32.mxu1 %v9190_v47  ;;  %v6171_v13 = vld [vmem:[%s12233_s1 + $0x120] sm:$0xff] }
  0x65   : > { %7327 = vmatprep.subr.mxu0 %v6174_v15  ;;  %7404 = vmatpush3.msra.mxu1 %v6192_v28  ;;  %v413_v28 = vrot.slane %v9277_v58, 1 }
  0x66   : > { %7328 = vmatpush3.msra.mxu0 %v6174_v15  ;;  %v6172_v15 = vld [vmem:[%s12233_s1 + $0x128] sm:$0xff]  ;;  %7405 = vmatprep.subr.mxu1 %v6191_v60 }
  0x67   : > { %7208 = vmatmul.mubr.f32.gmra.mxu0 %v9259_v29  ;;  %7288 = vmatmul.mubr.f32.gmra.mxu1 %v9193_v48 }
  0x68   : > { %7210 = vmatprep.mubr.f32.mxu0 %v9263_v38  ;;  %7290 = vmatprep.mubr.f32.mxu1 %v9218_v3  ;;  %v9299_v38 = vld [vmem:[%s8974_s13 + $0x118] sm:$0x3] }
  0x69   : > { %7329 = vmatprep.subr.mxu0 %v6173_v40  ;;  %7406 = vmatpush3.msra.mxu1 %v6191_v60  ;;  %v415_v29 = vrot.slane %v9299_v38, 1  ;;  %v9319_v60 = vsel %vm356_vm0, %v412_v16, %v413_v28  ;;  %v6189_v16 = vld [vmem:[%s12233_s1 + $0x1b0] sm:$0xff] }
  0x6a   : > { %7330 = vmatpush3.msra.mxu0 %v6173_v40  ;;  %v9315_v40 = vsel %vm356_vm0, %v408_v43, %v410_v6  ;;  %12409 = vst [vmem:[#allocation29_spill] sm:$0xff] %v9319_v60  ;;  %7407 = vmatprep.subr.mxu1 %v6190_v41  ;;  %v9330_v43 = vld [vmem:[%s8974_s13 + $0x138] sm:$0xff]  ;;  %v9333_v6 = vld [vmem:[%s8974_s13 + $0x140] sm:$0xff] }
  0x6b   : > { %7211 = vmatmul.mubr.f32.gmra.mxu0 %v9287_v61  ;;  %7291 = vmatmul.mubr.f32.gmra.mxu1 %v9221_v5  ;;  %12408 = vst [vmem:[#allocation28_spill] sm:$0xff] %v9315_v40  ;;  %v417_v61 = vrot.slane %v9302_v17, 1  ;;  %v422_v51 = vrot.slane %v9330_v43, 1  ;;  %v423_v39 = vrot.slane %v9333_v6, 1 }
  0x6c   : > { %7213 = vmatprep.mubr.f32.mxu0 %v9291_v11  ;;  %7293 = vmatprep.mubr.f32.mxu1 %v9246_v23  ;;  %v9327_v11 = vld [vmem:[%s8974_s13 + $0x130] sm:$0x3] }
  0x6d   : > { %7331 = vmatprep.subr.mxu0 %v6172_v15  ;;  %7408 = vmatpush3.msra.mxu1 %v6190_v41  ;;  %v420_v56 = vrot.slane %v9327_v11, 1  ;;  %v9347_v41 = vsel %vm356_vm0, %v417_v61, %v418_v7  ;;  %v9361_v61 = vld [vmem:[%s8974_s13 + $0x150] sm:$0xff]  ;;  %v9375_v37 = vsel %vm356_vm0, %v422_v51, %v423_v39  ;;  %v9389_v51 = vld [vmem:[%s8974_s13 + $0x168] sm:$0xff] }
  0x6e   : > { %7332 = vmatpush3.msra.mxu0 %v6172_v15  ;;  %v9343_v15 = vsel %vm356_vm0, %v413_v28, %v415_v29  ;;  %12411 = vst [vmem:[#allocation31_spill] sm:$0xff] %v9347_v41  ;;  %7409 = vmatprep.subr.mxu1 %v6189_v16  ;;  %v6188_v29 = vld [vmem:[%s12233_s1 + $0x1a8] sm:$0xff]  ;;  %v9364_v28 = vld [vmem:[%s8974_s13 + $0x158] sm:$0xff]  ;;  %12413 = vst [vmem:[#allocation33_spill] sm:$0xff] %v9375_v37  ;;  %v427_v24 = vrot.slane %v9361_v61, 1  ;;  %v432_v12 = vrot.slane %v9389_v51, 1 }
  0x6f   : > { %7214 = vmatmul.mubr.f32.gmra.mxu0 %v9315_v40  ;;  %7294 = vmatmul.mubr.f32.gmra.mxu1 %v9249_v25  ;;  %12410 = vst [vmem:[#allocation30_spill] sm:$0xff] %v9343_v15  ;;  %v6170_v40 = vld [vmem:[%s12233_s1 + $0x118] sm:$0xff] }
  0x70   : > { %7216 = vmatprep.mubr.f32.mxu0 %v9319_v60  ;;  %7296 = vmatprep.mubr.f32.mxu1 %v9274_v55  ;;  %v9355_v60 = vld [vmem:[%s8974_s13 + $0x148] sm:$0x3] }
  0x71   : > { %7333 = vmatprep.subr.mxu0 %v6171_v13  ;;  %7410 = vmatpush3.msra.mxu1 %v6189_v16  ;;  %v425_v16 = vrot.slane %v9355_v60, 1 }
  0x72   : > { %7334 = vmatpush3.msra.mxu0 %v6171_v13  ;;  %v9371_v13 = vsel %vm356_vm0, %v418_v7, %v420_v56  ;;  %7411 = vmatprep.subr.mxu1 %v6188_v29  ;;  %v6187_v56 = vld [vmem:[%s12233_s1 + $0x1a0] sm:$0xff]  ;;  %v9392_v7 = vld [vmem:[%s8974_s13 + $0x170] sm:$0xff] }
  0x73   : > { %7217 = vmatmul.mubr.f32.gmra.mxu0 %v9343_v15  ;;  %7297 = vmatmul.mubr.f32.gmra.mxu1 %v9277_v58  ;;  %12412 = vst [vmem:[#allocation32_spill] sm:$0xff] %v9371_v13  ;;  %v6169_v15 = vld [vmem:[%s12233_s1 + $0x110] sm:$0xff] }
  0x74   : > { %7219 = vmatprep.mubr.f32.mxu0 %v9347_v41  ;;  %7299 = vmatprep.mubr.f32.mxu1 %v9302_v17  ;;  %v428_v41 = vrot.slane %v9364_v28, 1 }
  0x75   : > { %7335 = vmatprep.subr.mxu0 %v6170_v40  ;;  %7412 = vmatpush3.msra.mxu1 %v6188_v29  ;;  %v430_v29 = vrot.slane %v9383_v22, 1 }
  0x76   : > { %7336 = vmatpush3.msra.mxu0 %v6170_v40  ;;  %v9399_v40 = vsel %vm356_vm0, %v423_v39, %v425_v16  ;;  %v9403_v14 = vsel %vm356_vm0, %v427_v24, %v428_v41  ;;  %7413 = vmatprep.subr.mxu1 %v6187_v56  ;;  %v6186_v39 = vld [vmem:[%s12233_s1 + $0x198] sm:$0xff] }
  0x77   : > { %7220 = vmatmul.mubr.f32.gmra.mxu0 %v9371_v13  ;;  %7300 = vmatmul.mubr.f32.gmra.mxu1 %v9305_v36  ;;  %12414 = vst [vmem:[#allocation34_spill] sm:$0xff] %v9399_v40  ;;  %12415 = vst [vmem:[#allocation35_spill] sm:$0xff] %v9403_v14  ;;  %v433_v13 = vrot.slane %v9392_v7, 1  ;;  %v9421_v24 = vsel %vm356_vm0, %v428_v41, %v430_v29  ;;  %v6185_v41 = vld [vmem:[%s12233_s1 + $0x190] sm:$0xff]  ;;  %v942_v29 = vrot.slane %v9006_v33, 2 }
  0x78   : > { %7222 = vmatprep.mubr.f32.mxu0 %v9375_v37  ;;  %7302 = vmatprep.mubr.f32.mxu1 %v9330_v43  ;;  %v6168_v37 = vld [vmem:[%s12233_s1 + $0x108] sm:$0xff]  ;;  %12416 = vst [vmem:[#allocation36_spill] sm:$0xff] %v9421_v24 }
  0x79   : > { %7337 = vmatprep.subr.mxu0 %v6169_v15  ;;  %7414 = vmatpush3.msra.mxu1 %v6187_v56  ;;  %v9425_v16 = vsel %vm356_vm0, %v432_v12, %v433_v13  ;;  %v937_v56 = vrot.slane %v8989_v26, 2  ;;  %v940_v12 = vrot.slane %v9001_v30, 2  ;;  %v6214_v30 = vld [vmem:[%s12233_s1 + $0x278] sm:$0xff] }
  0x7a   : > { %7338 = vmatpush3.msra.mxu0 %v6169_v15  ;;  %v435_v15 = vrot.slane %v9408_v4, 1  ;;  %7415 = vmatprep.subr.mxu1 %v6186_v39  ;;  %12417 = vst [vmem:[#allocation37_spill] sm:$0xff] %v9425_v16 }
  0x7b   : > { %7223 = vmatmul.mubr.f32.gmra.mxu0 %v9399_v40  ;;  %7303 = vmatmul.mubr.f32.gmra.mxu1 %v9333_v6  ;;  %v938_v40 = vrot.slane %v8992_v27, 2  ;;  %v6184_v27 = vld [vmem:[%s12233_s1 + $0x188] sm:$0xff] }
  0x7c   : > { %7225 = vmatprep.mubr.f32.mxu0 %v9403_v14  ;;  %7305 = vmatprep.mubr.f32.mxu1 %v9361_v61  ;;  %v6167_v14 = vld [vmem:[%s12233_s1 + $0x100] sm:$0xff]  ;;  %v9441_v26 = vsel %vm356_vm0, %v433_v13, %v435_v15  ;;  %v945_v15 = vrot.slane %v9027_v42, 2 }
  0x7d   : > { %7339 = vmatprep.subr.mxu0 %v6168_v37  ;;  %7416 = vmatpush3.msra.mxu1 %v6186_v39  ;;  %12418 = vst [vmem:[#allocation38_spill] sm:$0xff] %v9441_v26  ;;  %v943_v39 = vrot.slane %v9009_v34, 2  ;;  %v6183_v13 = vld [vmem:[%s12233_s1 + $0x180] sm:$0xff] }
  0x7e   : > { %7340 = vmatpush3.msra.mxu0 %v6168_v37  ;;  %7417 = vmatprep.subr.mxu1 %v6185_v41  ;;  %v939_v37 = vsel %vm936_vm1, %v937_v56, %v938_v40  ;;  %v947_v56 = vrot.slane %v9031_v44, 2 }
  0x7f   : > { %7226 = vmatmul.mubr.f32.gmra.mxu0 %v9421_v24  ;;  %7306 = vmatmul.mubr.f32.gmra.mxu1 %v9364_v28  ;;  %v9470_v42 = vsel %vm936_vm1, %v943_v39, %v945_v15  ;;  %v960_v15 = vrot.slane %v9103_v8, 2 }
  0x80   : > { %7228 = vmatprep.mubr.f32.mxu0 %v9425_v16  ;;  %7308 = vmatprep.mubr.f32.mxu1 %v9389_v51 }
  0x81   : > { %7341 = vmatprep.subr.mxu0 %v6167_v14  ;;  %7418 = vmatpush3.msra.mxu1 %v6185_v41  ;;  %v948_v41 = vrot.slane %v9034_v45, 2 }
  0x82   : > { %7342 = vmatpush3.msra.mxu0 %v6167_v14  ;;  %7419 = vmatprep.subr.mxu1 %v6184_v27  ;;  %v941_v14 = vsel %vm936_vm1, %v938_v40, %v940_v12  ;;  %v950_v40 = vrot.slane %v9047_v52, 2  ;;  %v6230_v52 = vld [vmem:[%s12233_s1 + $0x2f8] sm:$0xff] }
  0x83   : > { %7229 = vmatmul.mubr.f32.gmra.mxu0 %v9441_v26  ;;  %7309 = vmatmul.mubr.f32.gmra.mxu1 %v9392_v7  ;;  %v9463_v26 = vsel %vm936_vm1, %v942_v29, %v943_v39  ;;  %v9478_v12 = vsel %vm936_vm1, %v947_v56, %v948_v41 }
  0x84   : > { %7343 = vmatprep.mubr.f32.mxu0 %v939_v37  ;;  %7420 = vmatpush3.msra.mxu1 %v6184_v27  ;;  %v6213_v37 = vld [vmem:[%s12233_s1 + $0x270] sm:$0xff]  ;;  %v952_v27 = vrot.slane %v9051_v53, 2  ;;  %v9493_v29 = vsel %vm936_vm1, %v948_v41, %v950_v40  ;;  %v962_v41 = vrot.slane %v9106_v9, 2  ;;  %v965_v40 = vrot.slane %v9131_v18, 2 }
  0x85   : > { %7471 = vmatprep.subr.mxu0 %v6214_v30  ;;  %7421 = vmatprep.subr.mxu1 %v6183_v13 }
  0x86   : > { %7423 = vmatprep.mubr.f32.mxu1 %v9006_v33  ;;  %7422 = vmatpush3.msra.mxu1 %v6183_v13  ;;  %v6212_v33 = vld [vmem:[%s12233_s1 + $0x268] sm:$0xff]  ;;  %v957_v13 = vrot.slane %v9081_v0, 2 }
  0x87   : > { %7344 = vmatmul.mubr.f32.vlgmr.msra.gmra.mxu0 %v941_v14  ;;  %7424 = vmatmul.mubr.f32.vlgmr.msra.gmra.mxu1 %v9009_v34  ;;  %v6211_v34 = vld [vmem:[%s12233_s1 + $0x260] sm:$0xff]  ;;  %v958_v14 = vrot.slane %v9084_v1, 2 }
  0x88   : > { %7472 = vmatpush3.msra.mxu0 %v6214_v30  ;;  %7346 = vmatprep.mubr.f32.mxu0 %v9463_v26  ;;  %v953_v30 = vrot.slane %v9054_v54, 2 }
  0x89   : > { %7473 = vmatprep.subr.mxu0 %v6213_v37  ;;  %7426 = vmatprep.mubr.f32.mxu1 %v9031_v44  ;;  %v955_v44 = vrot.slane %v9075_v62, 2  ;;  %v9517_v56 = vsel %vm936_vm1, %v957_v13, %v958_v14  ;;  %v9531_v8 = vsel %vm936_vm1, %v958_v14, %v960_v15  ;;  %v973_v13 = vrot.slane %v9165_v35, 2 }
  0x8a   : > { %7474 = vmatpush3.msra.mxu0 %v6213_v37  ;;  %v9498_v39 = vsel %vm936_vm1, %v952_v27, %v953_v30  ;;  %7551 = vmatprep.subr.mxu1 %v6230_v52  ;;  %v963_v37 = vrot.slane %v9109_v10, 2  ;;  %v967_v27 = vrot.slane %v9134_v19, 2  ;;  %v975_v14 = vrot.slane %v9187_v46, 2 }
  0x8b   : > { %7347 = vmatmul.mubr.f32.gmra.mxu0 %v9470_v42  ;;  %7475 = vmatprep.subr.mxu0 %v6212_v33  ;;  %v9512_v62 = vsel %vm936_vm1, %v953_v30, %v955_v44  ;;  %v968_v30 = vrot.slane %v9137_v20, 2  ;;  %v972_v44 = vrot.slane %v9162_v32, 2  ;;  %v978_v15 = vrot.slane %v9193_v48, 2 }
  0x8c   : > { %7427 = vmatmul.mubr.f32.gmra.mxu1 %v9034_v45  ;;  %7349 = vmatprep.mubr.f32.mxu0 %v9478_v12  ;;  %v6210_v45 = vld [vmem:[%s12233_s1 + $0x258] sm:$0xff]  ;;  %v9550_v18 = vsel %vm936_vm1, %v963_v37, %v965_v40  ;;  %v9588_v46 = vsel %vm936_vm1, %v973_v13, %v975_v14  ;;  %v985_v40 = vrot.slane %v9243_v21, 2  ;;  %v997_v14 = vrot.slane %v9302_v17, 2 }
  0x8d   : > { %7429 = vmatprep.mubr.f32.mxu1 %v9051_v53  ;;  %7476 = vmatpush3.msra.mxu0 %v6212_v33  ;;  %v6229_v53 = vld [vmem:[%s12233_s1 + $0x2f0] sm:$0xff]  ;;  %v9536_v33 = vsel %vm936_vm1, %v962_v41, %v963_v37  ;;  %v980_v41 = vrot.slane %v9215_v63, 2 }
  0x8e   : > { %7477 = vmatprep.subr.mxu0 %v6211_v34  ;;  %7552 = vmatpush3.msra.mxu1 %v6230_v52  ;;  %v9555_v52 = vsel %vm936_vm1, %v967_v27, %v968_v30 }
  0x8f   : > { %7350 = vmatmul.mubr.f32.gmra.mxu0 %v9493_v29  ;;  %7553 = vmatprep.subr.mxu1 %v6229_v53  ;;  %v9607_v63 = vsel %vm936_vm1, %v978_v15, %v980_v41  ;;  %v1003_v41 = vrot.slane %v9333_v6, 2 }
  0x90   : > { %7430 = vmatmul.mubr.f32.gmra.mxu1 %v9054_v54  ;;  %7352 = vmatprep.mubr.f32.mxu0 %v9498_v39  ;;  %v6209_v54 = vld [vmem:[%s12233_s1 + $0x250] sm:$0xff] }
  0x91   : > { %7432 = vmatprep.mubr.f32.mxu1 %v9081_v0  ;;  %7478 = vmatpush3.msra.mxu0 %v6211_v34  ;;  %v6228_v0 = vld [vmem:[%s12233_s1 + $0x2e8] sm:$0xff]  ;;  %v970_v34 = vrot.slane %v9159_v31, 2 }
  0x92   : > { %7479 = vmatprep.subr.mxu0 %v6210_v45  ;;  %7554 = vmatpush3.msra.mxu1 %v6229_v53  ;;  %v977_v53 = vrot.slane %v9190_v47, 2 }
  0x93   : > { %7353 = vmatmul.mubr.f32.gmra.mxu0 %v9512_v62  ;;  %7555 = vmatprep.subr.mxu1 %v6228_v0  ;;  %v9569_v31 = vsel %vm936_vm1, %v968_v30, %v970_v34  ;;  %v987_v30 = vrot.slane %v9246_v23, 2 }
  0x94   : > { %7433 = vmatmul.mubr.f32.gmra.mxu1 %v9084_v1  ;;  %7355 = vmatprep.mubr.f32.mxu0 %v9517_v56  ;;  %v6208_v1 = vld [vmem:[%s12233_s1 + $0x248] sm:$0xff]  ;;  %v9593_v37 = vsel %vm936_vm1, %v977_v53, %v978_v15  ;;  %v998_v53 = vrot.slane %v9305_v36, 2  ;;  %v1000_v15 = vrot.slane %v9327_v11, 2 }
  0x95   : > { %7435 = vmatprep.mubr.f32.mxu1 %v9106_v9  ;;  %7480 = vmatpush3.msra.mxu0 %v6210_v45  ;;  %v6227_v9 = vld [vmem:[%s12233_s1 + $0x2e0] sm:$0xff]  ;;  %v9574_v45 = vsel %vm936_vm1, %v972_v44, %v973_v13  ;;  %v992_v44 = vrot.slane %v9274_v55, 2  ;;  %v993_v13 = vrot.slane %v9277_v58, 2  ;;  %v6220_v11 = vld [vmem:[%s12233_s1 + $0x2a8] sm:$0xff] }
  0x96   : > { %7481 = vmatprep.subr.mxu0 %v6209_v54  ;;  %7556 = vmatpush3.msra.mxu1 %v6228_v0  ;;  %v983_v0 = vrot.slane %v9221_v5, 2 }
  0x97   : > { %7356 = vmatmul.mubr.f32.gmra.mxu0 %v9531_v8  ;;  %7557 = vmatprep.subr.mxu1 %v6227_v9 }
  0x98   : > { %7436 = vmatmul.mubr.f32.gmra.mxu1 %v9109_v10  ;;  %7358 = vmatprep.mubr.f32.mxu0 %v9536_v33  ;;  %v6207_v10 = vld [vmem:[%s12233_s1 + $0x240] sm:$0xff]  ;;  %v9626_v21 = vsel %vm936_vm1, %v983_v0, %v985_v40  ;;  %v1010_v40 = vrot.slane %v9383_v22, 2  ;;  %v6218_v22 = vld [vmem:[%s12233_s1 + $0x298] sm:$0xff] }
  0x99   : > { %7438 = vmatprep.mubr.f32.mxu1 %v9134_v19  ;;  %7482 = vmatpush3.msra.mxu0 %v6209_v54  ;;  %v6226_v19 = vld [vmem:[%s12233_s1 + $0x2d8] sm:$0xff]  ;;  %v982_v54 = vrot.slane %v9218_v3, 2 }
  0x9a   : > { %7483 = vmatprep.subr.mxu0 %v6208_v1  ;;  %7558 = vmatpush3.msra.mxu1 %v6227_v9  ;;  %v990_v9 = vrot.slane %v9271_v50, 2 }
  0x9b   : > { %7359 = vmatmul.mubr.f32.gmra.mxu0 %v9550_v18  ;;  %7559 = vmatprep.subr.mxu1 %v6226_v19  ;;  %v9612_v27 = vsel %vm936_vm1, %v982_v54, %v983_v0  ;;  %v1005_v54 = vrot.slane %v9355_v60, 2  ;;  %v6219_v60 = vld [vmem:[%s12233_s1 + $0x2a0] sm:$0xff] }
  0x9c   : > { %7439 = vmatmul.mubr.f32.gmra.mxu1 %v9137_v20  ;;  %7361 = vmatprep.mubr.f32.mxu0 %v9555_v52  ;;  %v6206_v20 = vld [vmem:[%s12233_s1 + $0x238] sm:$0xff] }
  0x9d   : > { %7441 = vmatprep.mubr.f32.mxu1 %v9162_v32  ;;  %7484 = vmatpush3.msra.mxu0 %v6208_v1  ;;  %v6225_v32 = vld [vmem:[%s12233_s1 + $0x2d0] sm:$0xff]  ;;  %v988_v1 = vrot.slane %v9249_v25, 2 }
  0x9e   : > { %7485 = vmatprep.subr.mxu0 %v6207_v10  ;;  %7560 = vmatpush3.msra.mxu1 %v6226_v19  ;;  %v9650_v19 = vsel %vm936_vm1, %v992_v44, %v993_v13  ;;  %v9732_v44 = vld [vmem:[%s8974_s13 + $0x180] sm:$0xff] }
  0x9f   : > { %7362 = vmatmul.mubr.f32.gmra.mxu0 %v9569_v31  ;;  %7561 = vmatprep.subr.mxu1 %v6225_v32  ;;  %v9631_v34 = vsel %vm936_vm1, %v987_v30, %v988_v1  ;;  %v9645_v50 = vsel %vm936_vm1, %v988_v1, %v990_v9  ;;  %v1012_v1 = vrot.slane %v9389_v51, 2 }
  0xa0   : > { %7442 = vmatmul.mubr.f32.gmra.mxu1 %v9165_v35  ;;  %7364 = vmatprep.mubr.f32.mxu0 %v9574_v45  ;;  %v6205_v35 = vld [vmem:[%s12233_s1 + $0x230] sm:$0xff] }
  0xa1   : > { %7444 = vmatprep.mubr.f32.mxu1 %v9190_v47  ;;  %7486 = vmatpush3.msra.mxu0 %v6207_v10  ;;  %v6224_v47 = vld [vmem:[%s12233_s1 + $0x2c8] sm:$0xff]  ;;  %v995_v10 = vrot.slane %v9299_v38, 2  ;;  %v6221_v38 = vld [vmem:[%s12233_s1 + $0x2b0] sm:$0xff] }
  0xa2   : > { %7487 = vmatprep.subr.mxu0 %v6206_v20  ;;  %7562 = vmatpush3.msra.mxu1 %v6225_v32  ;;  %v1002_v32 = vrot.slane %v9330_v43, 2 }
  0xa3   : > { %7365 = vmatmul.mubr.f32.gmra.mxu0 %v9588_v46  ;;  %7563 = vmatprep.subr.mxu1 %v6224_v47 }
  0xa4   : > { %7445 = vmatmul.mubr.f32.gmra.mxu1 %v9193_v48  ;;  %7367 = vmatprep.mubr.f32.mxu0 %v9593_v37  ;;  %v6204_v48 = vld [vmem:[%s12233_s1 + $0x228] sm:$0xff]  ;;  %v9688_v0 = vsel %vm936_vm1, %v1002_v32, %v1003_v41 }
  0xa5   : > { %7447 = vmatprep.mubr.f32.mxu1 %v9218_v3  ;;  %7488 = vmatpush3.msra.mxu0 %v6206_v20  ;;  %v6223_v3 = vld [vmem:[%s12233_s1 + $0x2c0] sm:$0xff]  ;;  %v9669_v20 = vsel %vm936_vm1, %v997_v14, %v998_v53  ;;  %12422 = vst [vmem:[#allocation42_spill] sm:$0xff] %v9688_v0  ;;  %v12427_v14 = vld [vmem:[#allocation13_spill] sm:$0xff]  ;;  %v12430_v32 = vld [vmem:[#allocation16_spill] sm:$0xff] }
  0xa6   : > { %7489 = vmatprep.subr.mxu0 %v6205_v35  ;;  %7564 = vmatpush3.msra.mxu1 %v6224_v47  ;;  %12420 = vst [vmem:[#allocation40_spill] sm:$0xff] %v9669_v20  ;;  %v1008_v47 = vrot.slane %v9364_v28, 2 }
  0xa7   : > { %7368 = vmatmul.mubr.f32.gmra.mxu0 %v9607_v63  ;;  %7565 = vmatprep.subr.mxu1 %v6223_v3 }
  0xa8   : > { %7448 = vmatmul.mubr.f32.gmra.mxu1 %v9221_v5  ;;  %7370 = vmatprep.mubr.f32.mxu0 %v9612_v27  ;;  %v6203_v5 = vld [vmem:[%s12233_s1 + $0x220] sm:$0xff] }
  0xa9   : > { %7450 = vmatprep.mubr.f32.mxu1 %v9246_v23  ;;  %7490 = vmatpush3.msra.mxu0 %v6205_v35  ;;  %v6222_v23 = vld [vmem:[%s12233_s1 + $0x2b8] sm:$0xff]  ;;  %v1007_v35 = vrot.slane %v9361_v61, 2 }
  0xaa   : > { %7491 = vmatprep.subr.mxu0 %v6204_v48  ;;  %7566 = vmatpush3.msra.mxu1 %v6223_v3  ;;  %v1015_v3 = vrot.slane %v9408_v4, 2 }
  0xab   : > { %7371 = vmatmul.mubr.f32.gmra.mxu0 %v9626_v21  ;;  %7567 = vmatprep.subr.mxu1 %v6222_v23  ;;  %v9707_v30 = vsel %vm936_vm1, %v1007_v35, %v1008_v47  ;;  %v6240_v35 = vld [vmem:[%s12233_s1 + $0x348] sm:$0xff] }
  0xac   : > { %7451 = vmatmul.mubr.f32.gmra.mxu1 %v9249_v25  ;;  %7373 = vmatprep.mubr.f32.mxu0 %v9631_v34  ;;  %v6202_v25 = vld [vmem:[%s12233_s1 + $0x218] sm:$0xff]  ;;  %12424 = vst [vmem:[#allocation44_spill] sm:$0xff] %v9707_v30 }
  0xad   : > { %7453 = vmatprep.mubr.f32.mxu1 %v9274_v55  ;;  %7492 = vmatpush3.msra.mxu0 %v6204_v48  ;;  %v9664_v55 = vsel %vm936_vm1, %v993_v13, %v995_v10  ;;  %v1013_v48 = vrot.slane %v9392_v7, 2  ;;  %v9745_v13 = vld [vmem:[%s8974_s13 + $0x188] sm:$0xff] }
  0xae   : > { %7493 = vmatprep.subr.mxu0 %v6203_v5  ;;  %7568 = vmatpush3.msra.mxu1 %v6222_v23  ;;  %12419 = vst [vmem:[#allocation39_spill] sm:$0xff] %v9664_v55  ;;  %v6245_v23 = vld [vmem:[%s12233_s1 + $0x370] sm:$0xff]  ;;  %v6244_v10 = vld [vmem:[%s12233_s1 + $0x368] sm:$0xff] }
  0xaf   : > { %7374 = vmatmul.mubr.f32.gmra.mxu0 %v9645_v50  ;;  %7569 = vmatprep.subr.mxu1 %v6221_v38  ;;  %v9726_v9 = vsel %vm936_vm1, %v1012_v1, %v1013_v48  ;;  %v9738_v4 = vsel %vm936_vm1, %v1013_v48, %v1015_v3  ;;  %v6258_v1 = vld [vmem:[%s12233_s1 + $0x3d8] sm:$0xff]  ;;  %v12435_v48 = vld [vmem:[#allocation21_spill] sm:$0xff] }
  0xb0   : > { %7454 = vmatmul.mubr.f32.gmra.mxu1 %v9277_v58  ;;  %7376 = vmatprep.mubr.f32.mxu0 %v9650_v19  ;;  %v6201_v58 = vld [vmem:[%s12233_s1 + $0x210] sm:$0xff]  ;;  %12426 = vst [vmem:[#allocation46_spill] sm:$0xff] %v9738_v4 }
  0xb1   : > { %7456 = vmatprep.mubr.f32.mxu1 %v9302_v17  ;;  %7494 = vmatpush3.msra.mxu0 %v6203_v5  ;;  %v9683_v17 = vsel %vm936_vm1, %v998_v53, %v1000_v15  ;;  %v6215_v5 = vld [vmem:[%s12233_s1 + $0x280] sm:$0xff]  ;;  %v12428_v53 = vld [vmem:[#allocation14_spill] sm:$0xff]  ;;  %v6257_v3 = vld [vmem:[%s12233_s1 + $0x3d0] sm:$0xff] }
  0xb2   : > { %7495 = vmatprep.subr.mxu0 %v6202_v25  ;;  %7570 = vmatpush3.msra.mxu1 %v6221_v38  ;;  %12421 = vst [vmem:[#allocation41_spill] sm:$0xff] %v9683_v17  ;;  %v6261_v38 = vld [vmem:[%s12233_s1 + $0x3f0] sm:$0xff]  ;;  %v12429_v15 = vld [vmem:[#allocation15_spill] sm:$0xff] }
  0xb3   : > { %7377 = vmatmul.mubr.f32.gmra.mxu0 %v9664_v55  ;;  %7571 = vmatprep.subr.mxu1 %v6220_v11 }
  0xb4   : > { %7457 = vmatmul.mubr.f32.gmra.mxu1 %v9305_v36  ;;  %7379 = vmatprep.mubr.f32.mxu0 %v9669_v20  ;;  %v6200_v36 = vld [vmem:[%s12233_s1 + $0x208] sm:$0xff] }
  0xb5   : > { %7459 = vmatprep.mubr.f32.mxu1 %v9330_v43  ;;  %7496 = vmatpush3.msra.mxu0 %v6202_v25  ;;  %v9702_v43 = vsel %vm936_vm1, %v1003_v41, %v1005_v54  ;;  %v6242_v25 = vld [vmem:[%s12233_s1 + $0x358] sm:$0xff]  ;;  %v6241_v41 = vld [vmem:[%s12233_s1 + $0x350] sm:$0xff] }
  0xb6   : > { %7497 = vmatprep.subr.mxu0 %v6201_v58  ;;  %7572 = vmatpush3.msra.mxu1 %v6220_v11  ;;  %12423 = vst [vmem:[#allocation43_spill] sm:$0xff] %v9702_v43  ;;  %v12431_v11 = vld [vmem:[#allocation17_spill] sm:$0xff]  ;;  %v12432_v54 = vld [vmem:[#allocation18_spill] sm:$0xff] }
  0xb7   : > { %7380 = vmatmul.mubr.f32.gmra.mxu0 %v9683_v17  ;;  %7573 = vmatprep.subr.mxu1 %v6219_v60 }
  0xb8   : > { %7460 = vmatmul.mubr.f32.gmra.mxu1 %v9333_v6  ;;  %7382 = vmatprep.mubr.f32.mxu0 %v9688_v0  ;;  %v6199_v6 = vld [vmem:[%s12233_s1 + $0x200] sm:$0xff] }
  0xb9   : > { %7462 = vmatprep.mubr.f32.mxu1 %v9361_v61  ;;  %7498 = vmatpush3.msra.mxu0 %v6201_v58  ;;  %v9721_v61 = vsel %vm936_vm1, %v1008_v47, %v1010_v40  ;;  %v6260_v58 = vld [vmem:[%s12233_s1 + $0x3e8] sm:$0xff]  ;;  %v6259_v47 = vld [vmem:[%s12233_s1 + $0x3e0] sm:$0xff] }
  0xba   : > { %7499 = vmatprep.subr.mxu0 %v6200_v36  ;;  %7574 = vmatpush3.msra.mxu1 %v6219_v60  ;;  %12425 = vst [vmem:[#allocation45_spill] sm:$0xff] %v9721_v61  ;;  %v12434_v60 = vld [vmem:[#allocation20_spill] sm:$0xff]  ;;  %v6239_v40 = vld [vmem:[%s12233_s1 + $0x340] sm:$0xff] }
  0xbb   : > { %7383 = vmatmul.mubr.f32.gmra.mxu0 %v9702_v43  ;;  %7575 = vmatprep.subr.mxu1 %v6218_v22 }
  0xbc   : > { %7463 = vmatmul.mubr.f32.gmra.mxu1 %v9364_v28  ;;  %7385 = vmatprep.mubr.f32.mxu0 %v9707_v30  ;;  %v6217_v28 = vld [vmem:[%s12233_s1 + $0x290] sm:$0xff] }
  0xbd   : > { %7465 = vmatprep.mubr.f32.mxu1 %v9389_v51  ;;  %7500 = vmatpush3.msra.mxu0 %v6200_v36  ;;  %v6216_v51 = vld [vmem:[%s12233_s1 + $0x288] sm:$0xff]  ;;  %v12433_v36 = vld [vmem:[#allocation19_spill] sm:$0xff] }
  0xbe   : > { %7501 = vmatprep.subr.mxu0 %v6199_v6  ;;  %7576 = vmatpush3.msra.mxu1 %v6218_v22  ;;  %v12436_v22 = vld [vmem:[#allocation22_spill] sm:$0xff] }
  0xbf   : > { %7386 = vmatmul.mubr.f32.gmra.mxu0 %v9721_v61  ;;  %7577 = vmatprep.subr.mxu1 %v6217_v28 }
  0xc0   : > { %7466 = vmatmul.mubr.f32.gmra.mxu1 %v9392_v7  ;;  %7388 = vmatprep.mubr.f32.mxu0 %v9726_v9  ;;  %v6246_v7 = vld [vmem:[%s12233_s1 + $0x378] sm:$0xff] }
  0xc1   : > { %7468 = vmatprep.mubr.f32.mxu1 %v9732_v44  ;;  %7502 = vmatpush3.msra.mxu0 %v6199_v6  ;;  %v6238_v6 = vld [vmem:[%s12233_s1 + $0x338] sm:$0xff] }
  0xc2   : > { %7578 = vmatpush3.msra.mxu1 %v6217_v28  ;;  %7631 = vmatprep.subr.mxu0 %v6246_v7  ;;  %v12437_v28 = vld [vmem:[#allocation23_spill] sm:$0xff] }
  0xc3   : > { %7389 = vmatmul.mubr.f32.gmra.mxu0 %v9738_v4  ;;  %7579 = vmatprep.subr.mxu1 %v6216_v51 }
  0xc4   : > { %7469 = vmatmul.mubr.f32.gmra.mxu1 %v9745_v13  ;;  %7503 = vmatprep.mubr.f32.mxu0 %v9042_v49  ;;  %v1601_v49 = vrot.slane %v9745_v13, 1 }
  0xc5   : > { %7580 = vmatpush3.msra.mxu1 %v6216_v51  ;;  %7583 = vmatprep.mubr.f32.mxu1 %v9463_v26  ;;  %v6243_v26 = vld [vmem:[%s12233_s1 + $0x360] sm:$0xff]  ;;  %v12438_v51 = vld [vmem:[#allocation24_spill] sm:$0xff] }
  0xc6   : > { %7581 = vmatprep.subr.mxu1 %v6215_v5 }
  0xc7   : > { %7504 = vmatmul.mubr.f32.vlgmr.msra.gmra.mxu0 %v9065_v57  ;;  %7582 = vmatpush3.msra.mxu1 %v6215_v5  ;;  %v6256_v5 = vld [vmem:[%s12233_s1 + $0x3c8] sm:$0xff]  ;;  %v1881_v57 = vrot.slane %v9732_v44, 2 }
  0xc8   : > { %7632 = vmatpush3.msra.mxu0 %v6246_v7  ;;  %7584 = vmatmul.mubr.f32.vlgmr.msra.gmra.mxu1 %v9470_v42  ;;  %v6262_v42 = vld [vmem:[%s12233_s1 + $0x3f8] sm:$0xff]  ;;  %v6237_v7 = vld [vmem:[%s12233_s1 + $0x330] sm:$0xff] }
  0xc9   : > { %7506 = vmatprep.mubr.f32.mxu0 %v9070_v59  ;;  %7633 = vmatprep.subr.mxu0 %v6245_v23 }
  0xca   : > { %7586 = vmatprep.mubr.f32.mxu1 %v9478_v12  ;;  %7634 = vmatpush3.msra.mxu0 %v6245_v23  ;;  %v12439_v23 = vld [vmem:[#allocation25_spill] sm:$0xff] }
  0xcb   : > { %7507 = vmatmul.mubr.f32.gmra.mxu0 %v9090_v2  ;;  %7635 = vmatprep.subr.mxu0 %v6244_v10 }
  0xcc   : > { %7587 = vmatmul.mubr.f32.gmra.mxu1 %v9493_v29  ;;  %7509 = vmatprep.mubr.f32.mxu0 %v12427_v14 }
  0xcd   : > { %7589 = vmatprep.mubr.f32.mxu1 %v9498_v39  ;;  %7636 = vmatpush3.msra.mxu0 %v6244_v10  ;;  %v12440_v10 = vld [vmem:[#allocation26_spill] sm:$0xff] }
  0xce   : > { %7637 = vmatprep.subr.mxu0 %v6243_v26  ;;  %7711 = vmatprep.subr.mxu1 %v6262_v42 }
  0xcf   : > { %7510 = vmatmul.mubr.f32.gmra.mxu0 %v12428_v53  ;;  %7712 = vmatpush3.msra.mxu1 %v6262_v42  ;;  %v6255_v42 = vld [vmem:[%s12233_s1 + $0x3c0] sm:$0xff] }
  0xd0   : > { %7590 = vmatmul.mubr.f32.gmra.mxu1 %v9512_v62  ;;  %7512 = vmatprep.mubr.f32.mxu0 %v12429_v15 }
  0xd1   : > { %7592 = vmatprep.mubr.f32.mxu1 %v9517_v56  ;;  %7638 = vmatpush3.msra.mxu0 %v6243_v26  ;;  %v6236_v26 = vld [vmem:[%s12233_s1 + $0x328] sm:$0xff] }
  0xd2   : > { %7639 = vmatprep.subr.mxu0 %v6242_v25  ;;  %7713 = vmatprep.subr.mxu1 %v6261_v38 }
  0xd3   : > { %7513 = vmatmul.mubr.f32.gmra.mxu0 %v12430_v32  ;;  %7714 = vmatpush3.msra.mxu1 %v6261_v38  ;;  %v12442_v38 = vld [vmem:[#allocation28_spill] sm:$0xff] }
  0xd4   : > { %7593 = vmatmul.mubr.f32.gmra.mxu1 %v9531_v8  ;;  %7515 = vmatprep.mubr.f32.mxu0 %v12431_v11 }
  0xd5   : > { %7595 = vmatprep.mubr.f32.mxu1 %v9536_v33  ;;  %7640 = vmatpush3.msra.mxu0 %v6242_v25  ;;  %v12441_v25 = vld [vmem:[#allocation27_spill] sm:$0xff] }
  0xd6   : > { %7641 = vmatprep.subr.mxu0 %v6241_v41  ;;  %7715 = vmatprep.subr.mxu1 %v6260_v58 }
  0xd7   : > { %7516 = vmatmul.mubr.f32.gmra.mxu0 %v12432_v54  ;;  %7716 = vmatpush3.msra.mxu1 %v6260_v58  ;;  %v6254_v58 = vld [vmem:[%s12233_s1 + $0x3b8] sm:$0xff] }
  0xd8   : > { %7596 = vmatmul.mubr.f32.gmra.mxu1 %v9550_v18  ;;  %7518 = vmatprep.mubr.f32.mxu0 %v12433_v36 }
  0xd9   : > { %7598 = vmatprep.mubr.f32.mxu1 %v9555_v52  ;;  %7642 = vmatpush3.msra.mxu0 %v6241_v41  ;;  %v6235_v41 = vld [vmem:[%s12233_s1 + $0x320] sm:$0xff] }
  0xda   : > { %7643 = vmatprep.subr.mxu0 %v6240_v35  ;;  %7717 = vmatprep.subr.mxu1 %v6259_v47 }
  0xdb   : > { %7519 = vmatmul.mubr.f32.gmra.mxu0 %v12434_v60  ;;  %7718 = vmatpush3.msra.mxu1 %v6259_v47  ;;  %v12444_v47 = vld [vmem:[#allocation30_spill] sm:$0xff] }
  0xdc   : > { %7599 = vmatmul.mubr.f32.gmra.mxu1 %v9569_v31  ;;  %7521 = vmatprep.mubr.f32.mxu0 %v12435_v48 }
  0xdd   : > { %7601 = vmatprep.mubr.f32.mxu1 %v9574_v45  ;;  %7644 = vmatpush3.msra.mxu0 %v6240_v35  ;;  %v12443_v35 = vld [vmem:[#allocation29_spill] sm:$0xff] }
  0xde   : > { %7645 = vmatprep.subr.mxu0 %v6239_v40  ;;  %7719 = vmatprep.subr.mxu1 %v6258_v1 }
  0xdf   : > { %7522 = vmatmul.mubr.f32.gmra.mxu0 %v12436_v22  ;;  %7720 = vmatpush3.msra.mxu1 %v6258_v1  ;;  %v6253_v1 = vld [vmem:[%s12233_s1 + $0x3b0] sm:$0xff] }
  0xe0   : > { %7602 = vmatmul.mubr.f32.gmra.mxu1 %v9588_v46  ;;  %7524 = vmatprep.mubr.f32.mxu0 %v12437_v28 }
  0xe1   : > { %7604 = vmatprep.mubr.f32.mxu1 %v9593_v37  ;;  %7646 = vmatpush3.msra.mxu0 %v6239_v40  ;;  %v6234_v40 = vld [vmem:[%s12233_s1 + $0x318] sm:$0xff] }
  0xe2   : > { %7647 = vmatprep.subr.mxu0 %v6238_v6  ;;  %7721 = vmatprep.subr.mxu1 %v6257_v3 }
  0xe3   : > { %7525 = vmatmul.mubr.f32.gmra.mxu0 %v12438_v51  ;;  %7722 = vmatpush3.msra.mxu1 %v6257_v3  ;;  %v12446_v3 = vld [vmem:[#allocation32_spill] sm:$0xff] }
  0xe4   : > { %7605 = vmatmul.mubr.f32.gmra.mxu1 %v9607_v63  ;;  %7527 = vmatprep.mubr.f32.mxu0 %v12439_v23 }
  0xe5   : > { %7607 = vmatprep.mubr.f32.mxu1 %v9612_v27  ;;  %7648 = vmatpush3.msra.mxu0 %v6238_v6  ;;  %v12445_v6 = vld [vmem:[#allocation31_spill] sm:$0xff] }
  0xe6   : > { %7649 = vmatprep.subr.mxu0 %v6237_v7  ;;  %7723 = vmatprep.subr.mxu1 %v6256_v5 }
  0xe7   : > { %7528 = vmatmul.mubr.f32.gmra.mxu0 %v12440_v10  ;;  %7724 = vmatpush3.msra.mxu1 %v6256_v5  ;;  %v6252_v5 = vld [vmem:[%s12233_s1 + $0x3a8] sm:$0xff] }
  0xe8   : > { %7608 = vmatmul.mubr.f32.gmra.mxu1 %v9626_v21  ;;  %7530 = vmatprep.mubr.f32.mxu0 %v12441_v25 }
  0xe9   : > { %7610 = vmatprep.mubr.f32.mxu1 %v9631_v34  ;;  %7650 = vmatpush3.msra.mxu0 %v6237_v7  ;;  %v6233_v7 = vld [vmem:[%s12233_s1 + $0x310] sm:$0xff] }
  0xea   : > { %7651 = vmatprep.subr.mxu0 %v6236_v26  ;;  %7725 = vmatprep.subr.mxu1 %v6255_v42 }
  0xeb   : > { %7531 = vmatmul.mubr.f32.gmra.mxu0 %v12442_v38  ;;  %7726 = vmatpush3.msra.mxu1 %v6255_v42  ;;  %v12448_v42 = vld [vmem:[#allocation34_spill] sm:$0xff] }
  0xec   : > { %7611 = vmatmul.mubr.f32.gmra.mxu1 %v9645_v50  ;;  %7533 = vmatprep.mubr.f32.mxu0 %v12443_v35 }
  0xed   : > { %7613 = vmatprep.mubr.f32.mxu1 %v9650_v19  ;;  %7652 = vmatpush3.msra.mxu0 %v6236_v26  ;;  %v12447_v26 = vld [vmem:[#allocation33_spill] sm:$0xff] }
  0xee   : > { %7653 = vmatprep.subr.mxu0 %v6235_v41  ;;  %7727 = vmatprep.subr.mxu1 %v6254_v58 }
  0xef   : > { %7534 = vmatmul.mubr.f32.gmra.mxu0 %v12444_v47  ;;  %7728 = vmatpush3.msra.mxu1 %v6254_v58  ;;  %v6251_v58 = vld [vmem:[%s12233_s1 + $0x3a0] sm:$0xff] }
  0xf0   : > { %7614 = vmatmul.mubr.f32.gmra.mxu1 %v9664_v55  ;;  %7536 = vmatprep.mubr.f32.mxu0 %v12445_v6 }
  0xf1   : > { %7616 = vmatprep.mubr.f32.mxu1 %v9669_v20  ;;  %7654 = vmatpush3.msra.mxu0 %v6235_v41  ;;  %v6232_v41 = vld [vmem:[%s12233_s1 + $0x308] sm:$0xff]  ;;  %v6249_v20 = vld [vmem:[%s12233_s1 + $0x390] sm:$0xff] }
  0xf2   : > { %7655 = vmatprep.subr.mxu0 %v6234_v40  ;;  %7729 = vmatprep.subr.mxu1 %v6253_v1 }
  0xf3   : > { %7537 = vmatmul.mubr.f32.gmra.mxu0 %v12446_v3  ;;  %7730 = vmatpush3.msra.mxu1 %v6253_v1  ;;  %v12449_v1 = vld [vmem:[#allocation35_spill] sm:$0xff] }
  0xf4   : > { %7617 = vmatmul.mubr.f32.gmra.mxu1 %v9683_v17  ;;  %7539 = vmatprep.mubr.f32.mxu0 %v12447_v26 }
  0xf5   : > { %7619 = vmatprep.mubr.f32.mxu1 %v9688_v0  ;;  %7656 = vmatpush3.msra.mxu0 %v6234_v40  ;;  %v1600_v40 = vrot.slane %v9732_v44, 1  ;;  %v1882_v0 = vrot.slane %v9745_v13, 2 }
  0xf6   : > { %7657 = vmatprep.subr.mxu0 %v6233_v7  ;;  %7731 = vmatprep.subr.mxu1 %v6252_v5 }
  0xf7   : > { %7540 = vmatmul.mubr.f32.gmra.mxu0 %v12448_v42  ;;  %7732 = vmatpush3.msra.mxu1 %v6252_v5  ;;  %v288_v5 = vld [vmem:[%s8974_s13 + $0x190] sm:$0x3]  ;;  %v9903_v17 = vsel %vm356_vm0, %v1600_v40, %v1601_v49  ;;  %v9909_v55 = vsel %vm936_vm1, %v1881_v57, %v1882_v0  ;;  %v6248_v40 = vld [vmem:[%s12233_s1 + $0x388] sm:$0xff] }
  0xf8   : > { %7620 = vmatmul.mubr.f32.gmra.mxu1 %v9702_v43  ;;  %7542 = vmatprep.mubr.f32.mxu0 %v12449_v1  ;;  %v6250_v43 = vld [vmem:[%s12233_s1 + $0x398] sm:$0xff]  ;;  %12450 = vst [vmem:[#allocation47_spill] sm:$0xff] %v9903_v17  ;;  %12451 = vst [vmem:[#allocation48_spill] sm:$0xff] %v9909_v55 }
  0xf9   : > { %7622 = vmatprep.mubr.f32.mxu1 %v9707_v30  ;;  %7658 = vmatpush3.msra.mxu0 %v6233_v7  ;;  %v6231_v7 = vld [vmem:[%s12233_s1 + $0x300] sm:$0xff]  ;;  %v1603_v30 = vrot.slane %v288_v5, 1 }
  0xfa   : > { %7659 = vmatprep.subr.mxu0 %v6232_v41  ;;  %7733 = vmatprep.subr.mxu1 %v6251_v58 }
  0xfb   : > { %7543 = vmatmul.mubr.f32.gmra.mxu0 %v9421_v24  ;;  %7734 = vmatpush3.msra.mxu1 %v6251_v58  ;;  %v1884_v58 = vrot.slane %v288_v5, 2 }
  0xfc   : > { %7623 = vmatmul.mubr.f32.gmra.mxu1 %v9721_v61  ;;  %7545 = vmatprep.mubr.f32.mxu0 %v9425_v16  ;;  %v12452_v61 = vld [vmem:[#allocation38_spill] sm:$0xff] }
  0xfd   : > { %7625 = vmatprep.mubr.f32.mxu1 %v9726_v9  ;;  %7660 = vmatpush3.msra.mxu0 %v6232_v41  ;;  %v9915_v41 = vsel %vm356_vm0, %v1601_v49, %v1603_v30  ;;  %v9922_v57 = vsel %vm936_vm1, %v1882_v0, %v1884_v58  ;;  %v6247_v49 = vld [vmem:[%s12233_s1 + $0x380] sm:$0xff]  ;;  %v8647_v30 = vld [vmem:[%s8974_s13 + $0x30] sm:$0xff] }
  0xfe   : > { %7735 = vmatprep.subr.mxu1 %v6250_v43  ;;  %7661 = vmatprep.subr.mxu0 %v6231_v7  ;;  %12453 = vst [vmem:[#allocation49_spill] sm:$0xff] %v9915_v41  ;;  %12454 = vst [vmem:[#allocation50_spill] sm:$0xff] %v9922_v57 }
  0xff   : > { %7546 = vmatmul.mubr.f32.gmra.mxu0 %v12452_v61  ;;  %7736 = vmatpush3.msra.mxu1 %v6250_v43  ;;  %v6278_v43 = vld [vmem:[%s12233_s1 + $0x478] sm:$0xff] }
 0x100   : > { %7626 = vmatmul.mubr.f32.gmra.mxu1 %v9738_v4  ;;  %7548 = vmatprep.mubr.f32.mxu0 %v9903_v17 }
 0x101   : > { %7737 = vmatprep.subr.mxu1 %v6249_v20  ;;  %7628 = vmatprep.mubr.f32.mxu1 %v9909_v55 }
 0x102   : > { %7662 = vmatpush3.msra.mxu0 %v6231_v7  ;;  %7738 = vmatpush3.msra.mxu1 %v6249_v20  ;;  %v6277_v20 = vld [vmem:[%s12233_s1 + $0x470] sm:$0xff]  ;;  %v8648_v7 = vld [vmem:[%s8974_s13 + $0x38] sm:$0xff] }
 0x103   : > { %7549 = vmatmul.mubr.f32.gmra.mxu0 %v9915_v41  ;;  %7739 = vmatprep.subr.mxu1 %v6248_v40 }
 0x104   : > { %7629 = vmatmul.mubr.f32.gmra.mxu1 %v9922_v57  ;;  %7663 = vmatprep.mubr.f32.mxu0 %v8647_v30  ;;  %v8649_v57 = vld [vmem:[%s8974_s13 + $0x48] sm:$0xff] }
 0x105   : > { %7740 = vmatpush3.msra.mxu1 %v6248_v40  ;;  %7791 = vmatprep.subr.mxu0 %v6278_v43  ;;  %v6276_v40 = vld [vmem:[%s12233_s1 + $0x468] sm:$0xff] }
 0x106   : > { %7741 = vmatprep.subr.mxu1 %v6247_v49  ;;  %7743 = vmatprep.mubr.f32.mxu1 %v9070_v59  ;;  %v7185_v0 = vpop.f32.mrf.mxu0 }
 0x107   : > { %v7265_v5 = vpop.f32.mrf.mxu1  ;;  %7664 = vmatmul.mubr.f32.vlgmr.msra.gmra.mxu0 %v8648_v7  ;;  %7742 = vmatpush3.msra.mxu1 %v6247_v49 }
 0x108   : > { %v9938_v58 = vadd.f32 %v7265_v5, %v7185_v0  ;;  %7792 = vmatpush3.msra.mxu0 %v6278_v43  ;;  %7744 = vmatmul.mubr.f32.vlgmr.msra.gmra.mxu1 %v9090_v2  ;;  %v552_v30 = vpop.f32.mrf.mxu0  ;;  %v8650_v43 = vld [vmem:[%s8974_s13 + $0x50] sm:$0xff]  ;;  %v6275_v5 = vld [vmem:[%s12233_s1 + $0x460] sm:$0xff]  ;;  %v8652_v2 = vld [vmem:[%s8974_s13 + $0x68] sm:$0xff] }
 0x109   : > { %v777_v59 = vpop.f32.mrf.mxu1  ;;  %7666 = vmatprep.mubr.f32.mxu0 %v8649_v57  ;;  %7793 = vmatprep.subr.mxu0 %v6277_v20 }
 0x10a   : > { %v9945_v55 = vadd.f32 %v777_v59, %v552_v30  ;;  %7746 = vmatprep.mubr.f32.mxu1 %v12427_v14  ;;  %7794 = vmatpush3.msra.mxu0 %v6277_v20  ;;  %v7188_v49 = vpop.f32.mrf.mxu0  ;;  %v8651_v59 = vld [vmem:[%s8974_s13 + $0x60] sm:$0xff] }
 0x10b   : > { %v7268_v0 = vpop.f32.mrf.mxu1  ;;  %7667 = vmatmul.mubr.f32.gmra.mxu0 %v8650_v43  ;;  %7795 = vmatprep.subr.mxu0 %v6276_v40 }
 0x10c   : > { %v9952_v7 = vadd.f32 %v7268_v0, %v7188_v49  ;;  %7747 = vmatmul.mubr.f32.gmra.mxu1 %v12428_v53  ;;  %7669 = vmatprep.mubr.f32.mxu0 %v8651_v59  ;;  %v562_v57 = vpop.f32.mrf.mxu0  ;;  %v6274_v49 = vld [vmem:[%s12233_s1 + $0x458] sm:$0xff]  ;;  %v8654_v53 = vld [vmem:[%s8974_s13 + $0x80] sm:$0xff] }
 0x10d   : > { %v787_v30 = vpop.f32.mrf.mxu1  ;;  %7749 = vmatprep.mubr.f32.mxu1 %v12429_v15  ;;  %7796 = vmatpush3.msra.mxu0 %v6276_v40  ;;  %v8653_v59 = vld [vmem:[%s8974_s13 + $0x78] sm:$0xff] }
 0x10e   : > { %v9957_v20 = vadd.f32 %v787_v30, %v562_v57  ;;  %7797 = vmatprep.subr.mxu0 %v6275_v5 }
 0x10f   : > { %v7191_v43 = vpop.f32.mrf.mxu0  ;;  %v7271_v14 = vpop.f32.mrf.mxu1  ;;  %7670 = vmatmul.mubr.f32.gmra.mxu0 %v8652_v2 }
 0x110   : > { %v9963_v0 = vadd.f32 %v7271_v14, %v7191_v43  ;;  %7750 = vmatmul.mubr.f32.gmra.mxu1 %v12430_v32  ;;  %7672 = vmatprep.mubr.f32.mxu0 %v8653_v59  ;;  %v6273_v14 = vld [vmem:[%s12233_s1 + $0x450] sm:$0xff]  ;;  %v8656_v32 = vld [vmem:[%s8974_s13 + $0x98] sm:$0xff] }
 0x111   : > { %v572_v40 = vpop.f32.mrf.mxu0  ;;  %v797_v57 = vpop.f32.mrf.mxu1  ;;  %7752 = vmatprep.mubr.f32.mxu1 %v12431_v11  ;;  %7798 = vmatpush3.msra.mxu0 %v6275_v5  ;;  %v8655_v59 = vld [vmem:[%s8974_s13 + $0x90] sm:$0xff] }
 0x112   : > { %v9968_v30 = vadd.f32 %v797_v57, %v572_v40  ;;  %7799 = vmatprep.subr.mxu0 %v6274_v49 }
 0x113   : > { %v7194_v2 = vpop.f32.mrf.mxu0  ;;  %v7274_v15 = vpop.f32.mrf.mxu1  ;;  %7673 = vmatmul.mubr.f32.gmra.mxu0 %v8654_v53 }
 0x114   : > { %v9974_v43 = vadd.f32 %v7274_v15, %v7194_v2  ;;  %7753 = vmatmul.mubr.f32.gmra.mxu1 %v12432_v54  ;;  %7675 = vmatprep.mubr.f32.mxu0 %v8655_v59  ;;  %v6272_v15 = vld [vmem:[%s12233_s1 + $0x448] sm:$0xff]  ;;  %v8658_v54 = vld [vmem:[%s8974_s13 + $0xb0] sm:$0xff] }
 0x115   : > { %v582_v5 = vpop.f32.mrf.mxu0  ;;  %v807_v40 = vpop.f32.mrf.mxu1  ;;  %7755 = vmatprep.mubr.f32.mxu1 %v12433_v36  ;;  %7800 = vmatpush3.msra.mxu0 %v6274_v49  ;;  %v8657_v59 = vld [vmem:[%s8974_s13 + $0xa8] sm:$0xff] }
 0x116   : > { %v9979_v57 = vadd.f32 %v807_v40, %v582_v5  ;;  %7801 = vmatprep.subr.mxu0 %v6273_v14 }
 0x117   : > { %v7197_v53 = vpop.f32.mrf.mxu0  ;;  %v7277_v11 = vpop.f32.mrf.mxu1  ;;  %7676 = vmatmul.mubr.f32.gmra.mxu0 %v8656_v32 }
 0x118   : > { %v9985_v2 = vadd.f32 %v7277_v11, %v7197_v53  ;;  %7756 = vmatmul.mubr.f32.gmra.mxu1 %v12434_v60  ;;  %7678 = vmatprep.mubr.f32.mxu0 %v8657_v59  ;;  %v6271_v11 = vld [vmem:[%s12233_s1 + $0x440] sm:$0xff]  ;;  %v8660_v60 = vld [vmem:[%s8974_s13 + $0xc8] sm:$0xff] }
 0x119   : > { %v592_v49 = vpop.f32.mrf.mxu0  ;;  %v817_v5 = vpop.f32.mrf.mxu1  ;;  %7758 = vmatprep.mubr.f32.mxu1 %v12435_v48  ;;  %7802 = vmatpush3.msra.mxu0 %v6273_v14  ;;  %v8659_v59 = vld [vmem:[%s8974_s13 + $0xc0] sm:$0xff] }
 0x11a   : > { %v9990_v40 = vadd.f32 %v817_v5, %v592_v49  ;;  %7803 = vmatprep.subr.mxu0 %v6272_v15 }
 0x11b   : > { %v7200_v32 = vpop.f32.mrf.mxu0  ;;  %v7280_v36 = vpop.f32.mrf.mxu1  ;;  %7679 = vmatmul.mubr.f32.gmra.mxu0 %v8658_v54 }
 0x11c   : > { %v9996_v53 = vadd.f32 %v7280_v36, %v7200_v32  ;;  %7759 = vmatmul.mubr.f32.gmra.mxu1 %v12436_v22  ;;  %7681 = vmatprep.mubr.f32.mxu0 %v8659_v59  ;;  %v6270_v36 = vld [vmem:[%s12233_s1 + $0x438] sm:$0xff]  ;;  %v8662_v22 = vld [vmem:[%s8974_s13 + $0xe0] sm:$0xff] }
 0x11d   : > { %v602_v14 = vpop.f32.mrf.mxu0  ;;  %v827_v49 = vpop.f32.mrf.mxu1  ;;  %7761 = vmatprep.mubr.f32.mxu1 %v12437_v28  ;;  %7804 = vmatpush3.msra.mxu0 %v6272_v15  ;;  %v8661_v59 = vld [vmem:[%s8974_s13 + $0xd8] sm:$0xff] }
 0x11e   : > { %v10001_v5 = vadd.f32 %v827_v49, %v602_v14  ;;  %7805 = vmatprep.subr.mxu0 %v6271_v11 }
 0x11f   : > { %v7203_v54 = vpop.f32.mrf.mxu0  ;;  %v7283_v48 = vpop.f32.mrf.mxu1  ;;  %7682 = vmatmul.mubr.f32.gmra.mxu0 %v8660_v60 }
 0x120   : > { %v10007_v32 = vadd.f32 %v7283_v48, %v7203_v54  ;;  %7762 = vmatmul.mubr.f32.gmra.mxu1 %v12438_v51  ;;  %7684 = vmatprep.mubr.f32.mxu0 %v8661_v59  ;;  %v6269_v48 = vld [vmem:[%s12233_s1 + $0x430] sm:$0xff]  ;;  %v8664_v51 = vld [vmem:[%s8974_s13 + $0xf8] sm:$0xff] }
 0x121   : > { %v612_v15 = vpop.f32.mrf.mxu0  ;;  %v837_v14 = vpop.f32.mrf.mxu1  ;;  %7764 = vmatprep.mubr.f32.mxu1 %v12439_v23  ;;  %7806 = vmatpush3.msra.mxu0 %v6271_v11  ;;  %v8663_v59 = vld [vmem:[%s8974_s13 + $0xf0] sm:$0xff] }
 0x122   : > { %v10012_v49 = vadd.f32 %v837_v14, %v612_v15  ;;  %7807 = vmatprep.subr.mxu0 %v6270_v36 }
 0x123   : > { %v7206_v60 = vpop.f32.mrf.mxu0  ;;  %v7286_v28 = vpop.f32.mrf.mxu1  ;;  %7685 = vmatmul.mubr.f32.gmra.mxu0 %v8662_v22 }
 0x124   : > { %v10018_v54 = vadd.f32 %v7286_v28, %v7206_v60  ;;  %7765 = vmatmul.mubr.f32.gmra.mxu1 %v12440_v10  ;;  %7687 = vmatprep.mubr.f32.mxu0 %v8663_v59  ;;  %v6268_v28 = vld [vmem:[%s12233_s1 + $0x428] sm:$0xff] }
 0x125   : > { %v622_v11 = vpop.f32.mrf.mxu0  ;;  %v847_v15 = vpop.f32.mrf.mxu1  ;;  %7767 = vmatprep.mubr.f32.mxu1 %v12441_v25  ;;  %7808 = vmatpush3.msra.mxu0 %v6270_v36  ;;  %v8665_v59 = vld [vmem:[%s8974_s13 + $0x108] sm:$0xff]  ;;  %v8666_v25 = vld [vmem:[%s8974_s13 + $0x110] sm:$0xff] }
 0x126   : > { %v10023_v14 = vadd.f32 %v847_v15, %v622_v11  ;;  %7809 = vmatprep.subr.mxu0 %v6269_v48  ;;  %v8668_v10 = vld [vmem:[%s8974_s13 + $0x128] sm:$0xff] }
 0x127   : > { %v7209_v22 = vpop.f32.mrf.mxu0  ;;  %v7289_v23 = vpop.f32.mrf.mxu1  ;;  %7688 = vmatmul.mubr.f32.gmra.mxu0 %v8664_v51 }
 0x128   : > { %v10029_v60 = vadd.f32 %v7289_v23, %v7209_v22  ;;  %7768 = vmatmul.mubr.f32.gmra.mxu1 %v12442_v38  ;;  %7690 = vmatprep.mubr.f32.mxu0 %v8665_v59  ;;  %v6267_v23 = vld [vmem:[%s12233_s1 + $0x420] sm:$0xff] }
 0x129   : > { %v10033_v36 = vpop.f32.mrf.mxu0  ;;  %v10035_v11 = vpop.f32.mrf.mxu1  ;;  %7770 = vmatprep.mubr.f32.mxu1 %v12443_v35  ;;  %7810 = vmatpush3.msra.mxu0 %v6269_v48  ;;  %v8667_v59 = vld [vmem:[%s8974_s13 + $0x120] sm:$0xff] }
 0x12a   : > { %7811 = vmatprep.subr.mxu0 %v6268_v28 }
 0x12b   : > { %v7212_v51 = vpop.f32.mrf.mxu0  ;;  %v7292_v15 = vpop.f32.mrf.mxu1  ;;  %7691 = vmatmul.mubr.f32.gmra.mxu0 %v8666_v25 }
 0x12c   : > { %v10042_v22 = vadd.f32 %v7292_v15, %v7212_v51  ;;  %7771 = vmatmul.mubr.f32.gmra.mxu1 %v12444_v47  ;;  %7693 = vmatprep.mubr.f32.mxu0 %v8667_v59  ;;  %v6266_v51 = vld [vmem:[%s12233_s1 + $0x418] sm:$0xff] }
 0x12d   : > { %v10046_v38 = vpop.f32.mrf.mxu0  ;;  %v10048_v48 = vpop.f32.mrf.mxu1  ;;  %7773 = vmatprep.mubr.f32.mxu1 %v12445_v6  ;;  %7812 = vmatpush3.msra.mxu0 %v6268_v28  ;;  %v8669_v59 = vld [vmem:[%s8974_s13 + $0x138] sm:$0xff] }
 0x12e   : > { %12455 = vst [vmem:[#allocation51_spill] sm:$0xff] %v10046_v38  ;;  %12456 = vst [vmem:[#allocation52_spill] sm:$0xff] %v10048_v48  ;;  %7813 = vmatprep.subr.mxu0 %v6267_v23  ;;  %v8670_v48 = vld [vmem:[%s8974_s13 + $0x140] sm:$0xff]  ;;  %v8674_v38 = vld [vmem:[%s8974_s13 + $0x170] sm:$0xff] }
 0x12f   : > { %v7215_v25 = vpop.f32.mrf.mxu0  ;;  %v7295_v35 = vpop.f32.mrf.mxu1  ;;  %7694 = vmatmul.mubr.f32.gmra.mxu0 %v8668_v10 }
 0x130   : > { %v10055_v15 = vadd.f32 %v7295_v35, %v7215_v25  ;;  %7774 = vmatmul.mubr.f32.gmra.mxu1 %v12446_v3  ;;  %7696 = vmatprep.mubr.f32.mxu0 %v8669_v59  ;;  %v6265_v35 = vld [vmem:[%s12233_s1 + $0x410] sm:$0xff] }
 0x131   : > { %v10059_v47 = vpop.f32.mrf.mxu0  ;;  %v10061_v28 = vpop.f32.mrf.mxu1  ;;  %7776 = vmatprep.mubr.f32.mxu1 %v12447_v26  ;;  %7814 = vmatpush3.msra.mxu0 %v6267_v23  ;;  %v8671_v59 = vld [vmem:[%s8974_s13 + $0x150] sm:$0xff] }
 0x132   : > { %12457 = vst [vmem:[#allocation53_spill] sm:$0xff] %v10059_v47  ;;  %12458 = vst [vmem:[#allocation54_spill] sm:$0xff] %v10061_v28  ;;  %7815 = vmatprep.subr.mxu0 %v6266_v51  ;;  %v8672_v28 = vld [vmem:[%s8974_s13 + $0x158] sm:$0xff]  ;;  %v10099_v47 = vld [vmem:[%s8974_s13 + $0x1a8] sm:$0x3] }
 0x133   : > { %v7218_v10 = vpop.f32.mrf.mxu0  ;;  %v7298_v6 = vpop.f32.mrf.mxu1  ;;  %7697 = vmatmul.mubr.f32.gmra.mxu0 %v8670_v48 }
 0x134   : > { %v10068_v25 = vadd.f32 %v7298_v6, %v7218_v10  ;;  %7777 = vmatmul.mubr.f32.gmra.mxu1 %v12448_v42  ;;  %7699 = vmatprep.mubr.f32.mxu0 %v8671_v59  ;;  %v6264_v6 = vld [vmem:[%s12233_s1 + $0x408] sm:$0xff]  ;;  %v10082_v10 = vld [vmem:[%s8974_s13 + $0x198] sm:$0xff]  ;;  %v10085_v59 = vld [vmem:[%s8974_s13 + $0x1a0] sm:$0xff] }
 0x135   : > { %v10072_v23 = vpop.f32.mrf.mxu0  ;;  %v10074_v26 = vpop.f32.mrf.mxu1  ;;  %7779 = vmatprep.mubr.f32.mxu1 %v12449_v1  ;;  %7816 = vmatpush3.msra.mxu0 %v6266_v51  ;;  %v8673_v51 = vld [vmem:[%s8974_s13 + $0x168] sm:$0xff] }
 0x136   : > { %12459 = vst [vmem:[#allocation55_spill] sm:$0xff] %v10072_v23  ;;  %12460 = vst [vmem:[#allocation56_spill] sm:$0xff] %v10074_v26  ;;  %7817 = vmatprep.subr.mxu0 %v6265_v35  ;;  %v2440_v23 = vrot.slane %v10085_v59, 1 }
 0x137   : > { %v7221_v48 = vpop.f32.mrf.mxu0  ;;  %v7301_v3 = vpop.f32.mrf.mxu1  ;;  %7700 = vmatmul.mubr.f32.gmra.mxu0 %v8672_v28  ;;  %v2439_v28 = vrot.slane %v10082_v10, 1 }
 0x138   : > { %v10087_v42 = vadd.f32 %v7301_v3, %v7221_v48  ;;  %7780 = vmatmul.mubr.f32.gmra.mxu1 %v9421_v24  ;;  %7702 = vmatprep.mubr.f32.mxu0 %v8673_v51  ;;  %v6263_v51 = vld [vmem:[%s12233_s1 + $0x400] sm:$0xff] }
 0x139   : > { %v10091_v1 = vpop.f32.mrf.mxu0  ;;  %v10093_v26 = vpop.f32.mrf.mxu1  ;;  %7782 = vmatprep.mubr.f32.mxu1 %v9425_v16  ;;  %7818 = vmatpush3.msra.mxu0 %v6265_v35 }
 0x13a   : > { %12461 = vst [vmem:[#allocation57_spill] sm:$0xff] %v10091_v1  ;;  %12462 = vst [vmem:[#allocation58_spill] sm:$0xff] %v10093_v26  ;;  %7819 = vmatprep.subr.mxu0 %v6264_v6  ;;  %v2442_v26 = vrot.slane %v10099_v47, 1 }
 0x13b   : > { %v7224_v3 = vpop.f32.mrf.mxu0  ;;  %v7304_v48 = vpop.f32.mrf.mxu1  ;;  %7703 = vmatmul.mubr.f32.gmra.mxu0 %v8674_v38  ;;  %v2441_v38 = vsel %vm356_vm0, %v2439_v28, %v2440_v23 }
 0x13c   : > { %v10105_v24 = vadd.f32 %v7304_v48, %v7224_v3  ;;  %7783 = vmatmul.mubr.f32.gmra.mxu1 %v12452_v61  ;;  %7705 = vmatprep.mubr.f32.mxu0 %v9732_v44 }
 0x13d   : > { %v10109_v35 = vpop.f32.mrf.mxu0  ;;  %v10111_v16 = vpop.f32.mrf.mxu1  ;;  %7785 = vmatprep.mubr.f32.mxu1 %v9903_v17  ;;  %7820 = vmatpush3.msra.mxu0 %v6264_v6  ;;  %v2443_v6 = vsel %vm356_vm0, %v2440_v23, %v2442_v26 }
 0x13e   : > { %7821 = vmatprep.subr.mxu0 %v6263_v51 }
 0x13f   : > { %v7227_v1 = vpop.f32.mrf.mxu0  ;;  %v7307_v4 = vpop.f32.mrf.mxu1  ;;  %7706 = vmatmul.mubr.f32.gmra.mxu0 %v9745_v13 }
 0x140   : > { %v10117_v3 = vadd.f32 %v7307_v4, %v7227_v1  ;;  %7786 = vmatmul.mubr.f32.gmra.mxu1 %v9915_v41  ;;  %7708 = vmatprep.mubr.f32.mxu0 %v10082_v10 }
 0x141   : > { %v10121_v44 = vpop.f32.mrf.mxu0  ;;  %v10123_v48 = vpop.f32.mrf.mxu1  ;;  %7788 = vmatprep.mubr.f32.mxu1 %v2441_v38  ;;  %7822 = vmatpush3.msra.mxu0 %v6263_v51 }
 0x143   : > { %v7230_v17 = vpop.f32.mrf.mxu0  ;;  %v7310_v28 = vpop.f32.mrf.mxu1  ;;  %7709 = vmatmul.mubr.f32.gmra.mxu0 %v10085_v59 }
 0x144   : > { %v10127_v61 = vadd.f32 %v7310_v28, %v7230_v17  ;;  %7789 = vmatmul.mubr.f32.gmra.mxu1 %v2443_v6  ;;  %7823 = vmatprep.mubr.f32.mxu0 %v9478_v12 }
 0x145   : > { %v10130_v4 = vpop.f32.mrf.mxu0  ;;  %v10132_v13 = vpop.f32.mrf.mxu1 }
 0x147   : > { %v7345_v1 = vpop.f32.mrf.mxu0  ;;  %7824 = vmatmul.mubr.f32.vlgmr.msra.gmra.mxu0 %v9493_v29  ;;  %v7425_v38 = vpop.f32.mrf.mxu1 }
 0x148   : > { %v1292_v51 = vadd.f32 %v7345_v1, %v9938_v58  ;;  %7826 = vmatprep.mubr.f32.mxu0 %v9498_v39 }
 0x149   : > { %v1132_v26 = vpop.f32.mrf.mxu0  ;;  %v10142_v6 = vpop.f32.mrf.mxu1 }
 0x14a   : > { %v10138_v23 = vadd.f32 %v1132_v26, %v9945_v55  ;;  %v10140_v17 = vadd.f32 %v7425_v38, %v1292_v51 }
 0x14b   : > { %v7348_v12 = vpop.f32.mrf.mxu0  ;;  %7827 = vmatmul.mubr.f32.gmra.mxu0 %v9512_v62 }
 0x14c   : > { %v1294_v28 = vadd.f32 %v7348_v12, %v9952_v7  ;;  %v7428_v41 = vpop.f32.mrf.mxu1  ;;  %7829 = vmatprep.mubr.f32.mxu0 %v9517_v56 }
 0x14d   : > { %v1142_v29 = vpop.f32.mrf.mxu0 }
 0x14e   : > { %v10148_v58 = vadd.f32 %v1142_v29, %v9957_v20  ;;  %v10150_v39 = vadd.f32 %v7428_v41, %v1294_v28  ;;  %v10152_v55 = vpop.f32.mrf.mxu1 }
 0x14f   : > { %v7351_v1 = vpop.f32.mrf.mxu0  ;;  %7830 = vmatmul.mubr.f32.gmra.mxu0 %v9531_v8 }
 0x150   : > { %v1296_v51 = vadd.f32 %v7351_v1, %v9963_v0  ;;  %v7431_v38 = vpop.f32.mrf.mxu1  ;;  %7832 = vmatprep.mubr.f32.mxu0 %v9536_v33 }
 0x151   : > { %v1152_v62 = vpop.f32.mrf.mxu0 }
 0x152   : > { %v10158_v7 = vadd.f32 %v1152_v62, %v9968_v30  ;;  %v10160_v56 = vadd.f32 %v7431_v38, %v1296_v51  ;;  %v10162_v20 = vpop.f32.mrf.mxu1 }
 0x153   : > { %v7354_v41 = vpop.f32.mrf.mxu0  ;;  %7833 = vmatmul.mubr.f32.gmra.mxu0 %v9550_v18  ;;  %v3405_v18 = vld [vmem:[#allocation3 + $0xf8] sm:$0xff] }
 0x154   : > { %v1298_v26 = vadd.f32 %v7354_v41, %v9974_v43  ;;  %v7434_v12 = vpop.f32.mrf.mxu1  ;;  %7835 = vmatprep.mubr.f32.mxu0 %v9555_v52  ;;  %7871 = vmatprep.subr.mxu1 %v3405_v18 }
 0x155   : > { %v1162_v8 = vpop.f32.mrf.mxu0  ;;  %7872 = vmatpush3.msra.mxu1 %v3405_v18 }
 0x156   : > { %v10168_v0 = vadd.f32 %v1162_v8, %v9979_v57  ;;  %v10170_v33 = vadd.f32 %v7434_v12, %v1298_v26  ;;  %v10172_v30 = vpop.f32.mrf.mxu1 }
 0x157   : > { %v7357_v28 = vpop.f32.mrf.mxu0  ;;  %7836 = vmatmul.mubr.f32.gmra.mxu0 %v9569_v31 }
 0x158   : > { %v1300_v29 = vadd.f32 %v7357_v28, %v9985_v2  ;;  %v7437_v1 = vpop.f32.mrf.mxu1  ;;  %7838 = vmatprep.mubr.f32.mxu0 %v9574_v45  ;;  %v3404_v45 = vld [vmem:[#allocation3 + $0xf0] sm:$0xff] }
 0x159   : > { %v1172_v43 = vpop.f32.mrf.mxu0  ;;  %7873 = vmatprep.subr.mxu1 %v3404_v45 }
 0x15a   : > { %v10178_v52 = vadd.f32 %v1172_v43, %v9990_v40  ;;  %v10180_v57 = vadd.f32 %v7437_v1, %v1300_v29  ;;  %v10182_v51 = vpop.f32.mrf.mxu1  ;;  %7874 = vmatpush3.msra.mxu1 %v3404_v45 }
 0x15b   : > { %v7360_v38 = vpop.f32.mrf.mxu0  ;;  %7839 = vmatmul.mubr.f32.gmra.mxu0 %v9588_v46 }
 0x15c   : > { %v1302_v31 = vadd.f32 %v7360_v38, %v9996_v53  ;;  %v7440_v2 = vpop.f32.mrf.mxu1  ;;  %7841 = vmatprep.mubr.f32.mxu0 %v9593_v37  ;;  %v3403_v37 = vld [vmem:[#allocation3 + $0xe8] sm:$0xff] }
 0x15d   : > { %v1182_v62 = vpop.f32.mrf.mxu0  ;;  %7875 = vmatprep.subr.mxu1 %v3403_v37 }
 0x15e   : > { %v10188_v41 = vadd.f32 %v1182_v62, %v10001_v5  ;;  %v10190_v40 = vadd.f32 %v7440_v2, %v1302_v31  ;;  %v10192_v26 = vpop.f32.mrf.mxu1  ;;  %7876 = vmatpush3.msra.mxu1 %v3403_v37  ;;  %v3401_v2 = vld [vmem:[#allocation3 + $0xd8] sm:$0xff] }
 0x15f   : > { %v7363_v12 = vpop.f32.mrf.mxu0  ;;  %7842 = vmatmul.mubr.f32.gmra.mxu0 %v9607_v63 }
 0x160   : > { %v1304_v46 = vadd.f32 %v7363_v12, %v10007_v32  ;;  %v7443_v53 = vpop.f32.mrf.mxu1  ;;  %7844 = vmatprep.mubr.f32.mxu0 %v9612_v27  ;;  %v3402_v27 = vld [vmem:[#allocation3 + $0xe0] sm:$0xff] }
 0x161   : > { %v1192_v8 = vpop.f32.mrf.mxu0  ;;  %7877 = vmatprep.subr.mxu1 %v3402_v27 }
 0x162   : > { %v10198_v28 = vadd.f32 %v1192_v8, %v10012_v49  ;;  %v10200_v5 = vadd.f32 %v7443_v53, %v1304_v46  ;;  %v10202_v29 = vpop.f32.mrf.mxu1  ;;  %7878 = vmatpush3.msra.mxu1 %v3402_v27  ;;  %v3400_v53 = vld [vmem:[#allocation3 + $0xd0] sm:$0xff] }
 0x163   : > { %v7366_v1 = vpop.f32.mrf.mxu0  ;;  %7845 = vmatmul.mubr.f32.gmra.mxu0 %v9626_v21  ;;  %v858_v21 = vadd.f32 %v10035_v11, %v10033_v36  ;;  %7879 = vmatprep.subr.mxu1 %v3401_v2 }
 0x164   : > { %v1306_v63 = vadd.f32 %v7366_v1, %v10018_v54  ;;  %v7446_v32 = vpop.f32.mrf.mxu1  ;;  %7847 = vmatprep.mubr.f32.mxu0 %v9631_v34  ;;  %7880 = vmatpush3.msra.mxu1 %v3401_v2  ;;  %v12468_v2 = vld [vmem:[#allocation43_spill] sm:$0xff] }
 0x165   : > { %v1202_v18 = vpop.f32.mrf.mxu0  ;;  %7881 = vmatprep.subr.mxu1 %v3400_v53 }
 0x166   : > { %v10208_v43 = vadd.f32 %v1202_v18, %v10023_v14  ;;  %v10210_v49 = vadd.f32 %v7446_v32, %v1306_v63  ;;  %v10212_v38 = vpop.f32.mrf.mxu1  ;;  %7882 = vmatpush3.msra.mxu1 %v3400_v53  ;;  %v12465_v63 = vld [vmem:[#allocation41_spill] sm:$0xff]  ;;  %v12466_v18 = vld [vmem:[#allocation42_spill] sm:$0xff] }
 0x167   : > { %v7369_v31 = vpop.f32.mrf.mxu0  ;;  %7848 = vmatmul.mubr.f32.gmra.mxu0 %v9645_v50  ;;  %v12463_v50 = vld [vmem:[#allocation39_spill] sm:$0xff] }
 0x168   : > { %v1308_v54 = vadd.f32 %v7369_v31, %v10029_v60  ;;  %v7449_v34 = vpop.f32.mrf.mxu1  ;;  %7850 = vmatprep.mubr.f32.mxu0 %v9650_v19  ;;  %v12464_v60 = vld [vmem:[#allocation40_spill] sm:$0xff] }
 0x169   : > { %v1212_v45 = vpop.f32.mrf.mxu0 }
 0x16a   : > { %v10219_v14 = vadd.f32 %v1212_v45, %v858_v21  ;;  %v10221_v62 = vadd.f32 %v7449_v34, %v1308_v54  ;;  %v10223_v12 = vpop.f32.mrf.mxu1 }
 0x16b   : > { %v7372_v46 = vpop.f32.mrf.mxu0  ;;  %7851 = vmatmul.mubr.f32.gmra.mxu0 %v12463_v50  ;;  %v12469_v50 = vld [vmem:[#allocation44_spill] sm:$0xff] }
 0x16c   : > { %v1310_v36 = vadd.f32 %v7372_v46, %v10042_v22  ;;  %v7452_v11 = vpop.f32.mrf.mxu1  ;;  %7853 = vmatprep.mubr.f32.mxu0 %v12464_v60  ;;  %v3399_v22 = vld [vmem:[#allocation3 + $0xc8] sm:$0xff] }
 0x16d   : > { %v10228_v19 = vpop.f32.mrf.mxu0  ;;  %7883 = vmatprep.subr.mxu1 %v3399_v22 }
 0x16e   : > { %v10230_v37 = vadd.f32 %v7452_v11, %v1310_v36  ;;  %v10232_v8 = vpop.f32.mrf.mxu1  ;;  %7884 = vmatpush3.msra.mxu1 %v3399_v22  ;;  %v3228_v36 = vld [vmem:[#allocation3 + $0x78] sm:$0xff]  ;;  %v3226_v22 = vld [vmem:[#allocation3 + $0x68] sm:$0xff] }
 0x16f   : > { %v7375_v1 = vpop.f32.mrf.mxu0  ;;  %7854 = vmatmul.mubr.f32.gmra.mxu0 %v12465_v63  ;;  %7951 = vmatprep.subr.mxu0 %v3228_v36 }
 0x170   : > { %v1312_v32 = vadd.f32 %v7375_v1, %v10055_v15  ;;  %v7455_v27 = vpop.f32.mrf.mxu1  ;;  %7856 = vmatprep.mubr.f32.mxu0 %v12466_v18  ;;  %v3398_v15 = vld [vmem:[#allocation3 + $0xc0] sm:$0xff]  ;;  %7952 = vmatpush3.msra.mxu0 %v3228_v36  ;;  %v3227_v1 = vld [vmem:[#allocation3 + $0x70] sm:$0xff]  ;;  %v3397_v18 = vld [vmem:[#allocation3 + $0xb8] sm:$0xff] }
 0x171   : > { %v10237_v31 = vpop.f32.mrf.mxu0  ;;  %7885 = vmatprep.subr.mxu1 %v3398_v15  ;;  %7953 = vmatprep.subr.mxu0 %v3227_v1 }
 0x172   : > { %v10239_v21 = vadd.f32 %v7455_v27, %v1312_v32  ;;  %v10241_v54 = vpop.f32.mrf.mxu1  ;;  %7886 = vmatpush3.msra.mxu1 %v3398_v15  ;;  %v12471_v32 = vld [vmem:[#allocation45_spill] sm:$0xff]  ;;  %7954 = vmatpush3.msra.mxu0 %v3227_v1  ;;  %v12474_v1 = vld [vmem:[#allocation48_spill] sm:$0xff] }
 0x173   : > { %12467 = vst [vmem:[#allocation39_spill] sm:$0xff] %v10241_v54  ;;  %v7378_v34 = vpop.f32.mrf.mxu0  ;;  %7857 = vmatmul.mubr.f32.gmra.mxu0 %v12468_v2  ;;  %v2721_v2 = vrot.slane %v10085_v59, 2  ;;  %7887 = vmatprep.subr.mxu1 %v3397_v18  ;;  %v2723_v59 = vrot.slane %v10099_v47, 2 }
 0x174   : > { %v1314_v45 = vadd.f32 %v7378_v34, %v10068_v25  ;;  %v7458_v46 = vpop.f32.mrf.mxu1  ;;  %7859 = vmatprep.mubr.f32.mxu0 %v12469_v50  ;;  %v2720_v34 = vrot.slane %v10082_v10, 2  ;;  %7955 = vmatprep.subr.mxu0 %v3226_v22 }
 0x175   : > { %v10246_v11 = vpop.f32.mrf.mxu0  ;;  %7888 = vmatpush3.msra.mxu1 %v3397_v18  ;;  %7956 = vmatpush3.msra.mxu0 %v3226_v22 }
 0x176   : > { %v10248_v60 = vadd.f32 %v7458_v46, %v1314_v45  ;;  %v10250_v53 = vpop.f32.mrf.mxu1 }
 0x177   : > { %12470 = vst [vmem:[#allocation40_spill] sm:$0xff] %v10250_v53  ;;  %v7381_v63 = vpop.f32.mrf.mxu0  ;;  %7860 = vmatmul.mubr.f32.gmra.mxu0 %v12471_v32  ;;  %v3224_v32 = vld [vmem:[#allocation3 + $0x58] sm:$0xff]  ;;  %v3392_v53 = vld [vmem:[#allocation3 + $0x90] sm:$0xff] }
 0x178   : > { %v1316_v25 = vadd.f32 %v7381_v63, %v10087_v42  ;;  %v7461_v27 = vpop.f32.mrf.mxu1  ;;  %7862 = vmatprep.mubr.f32.mxu0 %v9726_v9  ;;  %v3225_v42 = vld [vmem:[#allocation3 + $0x60] sm:$0xff]  ;;  %v12473_v9 = vld [vmem:[#allocation46_spill] sm:$0xff]  ;;  %v3396_v63 = vld [vmem:[#allocation3 + $0xb0] sm:$0xff] }
 0x179   : > { %v10257_v45 = vpop.f32.mrf.mxu0  ;;  %7957 = vmatprep.subr.mxu0 %v3225_v42  ;;  %7889 = vmatprep.subr.mxu1 %v3396_v63 }
 0x17a   : > { %v10259_v46 = vadd.f32 %v7461_v27, %v1316_v25  ;;  %v10261_v50 = vpop.f32.mrf.mxu1  ;;  %7958 = vmatpush3.msra.mxu0 %v3225_v42  ;;  %v2722_v27 = vsel %vm936_vm1, %v2720_v34, %v2721_v2  ;;  %7890 = vmatpush3.msra.mxu1 %v3396_v63  ;;  %v3395_v34 = vld [vmem:[#allocation3 + $0xa8] sm:$0xff] }
 0x17b   : > { %12472 = vst [vmem:[#allocation41_spill] sm:$0xff] %v10261_v50  ;;  %v7384_v15 = vpop.f32.mrf.mxu0  ;;  %7863 = vmatmul.mubr.f32.gmra.mxu0 %v12473_v9  ;;  %7959 = vmatprep.subr.mxu0 %v3224_v32  ;;  %v12476_v9 = vld [vmem:[#allocation50_spill] sm:$0xff] }
 0x17c   : > { %v1318_v36 = vadd.f32 %v7384_v15, %v10105_v24  ;;  %v7464_v10 = vpop.f32.mrf.mxu1  ;;  %7865 = vmatprep.mubr.f32.mxu0 %v12474_v1  ;;  %7960 = vmatpush3.msra.mxu0 %v3224_v32  ;;  %v3223_v24 = vld [vmem:[#allocation3 + $0x50] sm:$0xff]  ;;  %v2724_v1 = vsel %vm936_vm1, %v2721_v2, %v2723_v59  ;;  %v3222_v50 = vld [vmem:[#allocation3 + $0x48] sm:$0xff]  ;;  %v3221_v32 = vld [vmem:[#allocation3 + $0x40] sm:$0xff] }
 0x17d   : > { %v10267_v25 = vpop.f32.mrf.mxu0  ;;  %7961 = vmatprep.subr.mxu0 %v3223_v24  ;;  %7891 = vmatprep.subr.mxu1 %v3395_v34  ;;  %v3394_v59 = vld [vmem:[#allocation3 + $0xa0] sm:$0xff] }
 0x17e   : > { %v10270_v18 = vadd.f32 %v7464_v10, %v1318_v36  ;;  %v10272_v22 = vpop.f32.mrf.mxu1  ;;  %7962 = vmatpush3.msra.mxu0 %v3223_v24  ;;  %7892 = vmatpush3.msra.mxu1 %v3395_v34  ;;  %v3218_v34 = vld [vmem:[#allocation3 + $0x28] sm:$0xff] }
 0x17f   : > { %12475 = vst [vmem:[#allocation42_spill] sm:$0xff] %v10272_v22  ;;  %v7387_v15 = vpop.f32.mrf.mxu0  ;;  %7866 = vmatmul.mubr.f32.gmra.mxu0 %v12476_v9  ;;  %7963 = vmatprep.subr.mxu0 %v3222_v50 }
 0x180   : > { %v1320_v47 = vadd.f32 %v7387_v15, %v10117_v3  ;;  %v7467_v42 = vpop.f32.mrf.mxu1  ;;  %7868 = vmatprep.mubr.f32.mxu0 %v2722_v27  ;;  %7964 = vmatpush3.msra.mxu0 %v3222_v50  ;;  %v3220_v27 = vld [vmem:[#allocation3 + $0x38] sm:$0xff]  ;;  %v3219_v50 = vld [vmem:[#allocation3 + $0x30] sm:$0xff] }
 0x181   : > { %v10277_v36 = vpop.f32.mrf.mxu0  ;;  %7965 = vmatprep.subr.mxu0 %v3221_v32  ;;  %7893 = vmatprep.subr.mxu1 %v3394_v59 }
 0x182   : > { %v10279_v10 = vadd.f32 %v7467_v42, %v1320_v47  ;;  %v10281_v63 = vpop.f32.mrf.mxu1  ;;  %7966 = vmatpush3.msra.mxu0 %v3221_v32  ;;  %7894 = vmatpush3.msra.mxu1 %v3394_v59  ;;  %v12328_v59 = vmov 0.0  }
 0x183   : > { %12477 = vst [vmem:[#allocation43_spill] sm:$0xff] %v10281_v63  ;;  %v7390_v9 = vpop.f32.mrf.mxu0  ;;  %7869 = vmatmul.mubr.f32.gmra.mxu0 %v2724_v1  ;;  %7967 = vmatprep.subr.mxu0 %v3220_v27  ;;  %3076 = vst [vmem:[#allocation2 + $0x20] sm:$0xff] %v12328_v59  ;;  %v3215_v63 = vld [vmem:[#allocation3 + $0x10] sm:$0xff] }
 0x184   : > { %v1322_v3 = vadd.f32 %v7390_v9, %v10127_v61  ;;  %v7470_v2 = vpop.f32.mrf.mxu1  ;;  %7968 = vmatpush3.msra.mxu0 %v3220_v27  ;;  %3077 = vst [vmem:[#allocation2 + $0x28] sm:$0x3] %v12328_v59  ;;  %3072 = vst [vmem:[#allocation2] sm:$0xff] %v12328_v59  ;;  %7983 = vmatprep.mubr.f32.mxu0 %v12328_v59 }
 0x185   : > { %v10284_v24 = vpop.f32.mrf.mxu0  ;;  %7969 = vmatprep.subr.mxu0 %v3219_v50  ;;  %3074 = vst [vmem:[#allocation2 + $0x10] sm:$0x3] %v12328_v59  ;;  %3075 = vst [vmem:[#allocation2 + $0x18] sm:$0xff] %v12328_v59 }
 0x186   : > { %v10286_v15 = vadd.f32 %v7470_v2, %v1322_v3  ;;  %v10288_v47 = vpop.f32.mrf.mxu1  ;;  %7970 = vmatpush3.msra.mxu0 %v3219_v50  ;;  %v3217_v3 = vld [vmem:[#allocation3 + $0x20] sm:$0xff]  ;;  %3078 = vst [vmem:[#allocation2 + $0x30] sm:$0xff] %v12328_v59  ;;  %3079 = vst [vmem:[#allocation2 + $0x38] sm:$0xff] %v12328_v59  ;;  %v3216_v50 = vld [vmem:[#allocation3 + $0x18] sm:$0xff] }
 0x187   : > { %12478 = vst [vmem:[#allocation44_spill] sm:$0xff] %v10288_v47  ;;  %v7505_v42 = vpop.f32.mrf.mxu0  ;;  %7971 = vmatprep.subr.mxu0 %v3218_v34  ;;  %3080 = vst [vmem:[#allocation2 + $0x40] sm:$0x3] %v12328_v59 }
 0x188   : > { %v10291_v1 = vadd.f32 %v7505_v42, %v10140_v17  ;;  %v10293_v61 = vpop.f32.mrf.mxu1  ;;  %7972 = vmatpush3.msra.mxu0 %v3218_v34  ;;  %3081 = vst [vmem:[#allocation2 + $0x48] sm:$0xff] %v12328_v59  ;;  %3082 = vst [vmem:[#allocation2 + $0x50] sm:$0xff] %v12328_v59  ;;  %v3393_v34 = vld [vmem:[#allocation3 + $0x98] sm:$0xff] }
 0x189   : > { %v10295_v32 = vpop.f32.mrf.mxu0  ;;  %3083 = vst [vmem:[#allocation2 + $0x58] sm:$0x3] %v12328_v59  ;;  %3084 = vst [vmem:[#allocation2 + $0x60] sm:$0xff] %v12328_v59  ;;  %7973 = vmatprep.subr.mxu0 %v3217_v3  ;;  %7895 = vmatprep.subr.mxu1 %v3393_v34 }
 0x18a   : > { %v10297_v9 = vpop.f32.mrf.mxu1  ;;  %3085 = vst [vmem:[#allocation2 + $0x68] sm:$0xff] %v12328_v59  ;;  %3086 = vst [vmem:[#allocation2 + $0x70] sm:$0x3] %v12328_v59  ;;  %7974 = vmatpush3.msra.mxu0 %v3217_v3  ;;  %7896 = vmatpush3.msra.mxu1 %v3393_v34  ;;  %v3214_v3 = vld [vmem:[#allocation3 + $0x8] sm:$0xff]  ;;  %v12485_v34 = vmov 0.0  }
 0x18b   : > { %v7508_v2 = vpop.f32.mrf.mxu0  ;;  %3087 = vst [vmem:[#allocation2 + $0x78] sm:$0xff] %v12328_v59  ;;  %3088 = vst [vmem:[#allocation2 + $0x80] sm:$0xff] %v12328_v59  ;;  %7975 = vmatprep.subr.mxu0 %v3216_v50  ;;  %7897 = vmatprep.subr.mxu1 %v3392_v53 }
 0x18c   : > { %3089 = vst [vmem:[#allocation2 + $0x88] sm:$0x3] %v12328_v59  ;;  %3090 = vst [vmem:[#allocation2 + $0x90] sm:$0xff] %v12328_v59  ;;  %v10352_v17 = vadd.f32 %v7508_v2, %v10150_v39  ;;  %v10354_v27 = vpop.f32.mrf.mxu1  ;;  %7976 = vmatpush3.msra.mxu0 %v3216_v50  ;;  %7898 = vmatpush3.msra.mxu1 %v3392_v53  ;;  %v3213_v50 = vld [vmem:[#allocation3] sm:$0xff] }
 0x18d   : > { %3091 = vst [vmem:[#allocation2 + $0x98] sm:$0xff] %v12328_v59  ;;  %3092 = vst [vmem:[#allocation2 + $0xa0] sm:$0x3] %v12328_v59  ;;  %v10356_v42 = vpop.f32.mrf.mxu0  ;;  %7977 = vmatprep.subr.mxu0 %v3215_v63  ;;  %v3161_v54 = vld [vmem:[#allocation2 + $0x10] sm:$0x3] }
 0x18e   : > { %3093 = vst [vmem:[#allocation2 + $0xa8] sm:$0xff] %v12328_v59  ;;  %3094 = vst [vmem:[#allocation2 + $0xb0] sm:$0xff] %v12328_v59  ;;  %v10358_v47 = vpop.f32.mrf.mxu1  ;;  %7978 = vmatpush3.msra.mxu0 %v3215_v63 }
 0x18f   : > { %3095 = vst [vmem:[#allocation2 + $0xb8] sm:$0x3] %v12328_v59  ;;  %3096 = vst [vmem:[#allocation2 + $0xc0] sm:$0xff] %v12328_v59  ;;  %v7511_v22 = vpop.f32.mrf.mxu0  ;;  %7979 = vmatprep.subr.mxu0 %v3214_v3 }
 0x190   : > { %3097 = vst [vmem:[#allocation2 + $0xc8] sm:$0xff] %v12328_v59  ;;  %3098 = vst [vmem:[#allocation2 + $0xd0] sm:$0x3] %v12328_v59  ;;  %v10361_v39 = vadd.f32 %v7511_v22, %v10160_v56  ;;  %v10363_v2 = vpop.f32.mrf.mxu1  ;;  %7980 = vmatpush3.msra.mxu0 %v3214_v3  ;;  %v3390_v22 = vld [vmem:[#allocation3 + $0x80] sm:$0xff] }
 0x191   : > { %3099 = vst [vmem:[#allocation2 + $0xd8] sm:$0xff] %v12328_v59  ;;  %3100 = vst [vmem:[#allocation2 + $0xe0] sm:$0xff] %v12328_v59  ;;  %7981 = vmatprep.subr.mxu0 %v3213_v50 }
 0x192   : > { %3101 = vst [vmem:[#allocation2 + $0xe8] sm:$0x3] %v12328_v59  ;;  %3102 = vst [vmem:[#allocation2 + $0xf0] sm:$0xff] %v12328_v59  ;;  %7982 = vmatpush3.msra.mxu0 %v3213_v50 }
 0x193   : > { %3103 = vst [vmem:[#allocation2 + $0xf8] sm:$0xff] %v12328_v59  ;;  %3104 = vst [vmem:[#allocation2 + $0x100] sm:$0x3] %v12328_v59  ;;  %7984 = vmatmul.mubr.f32.vlgmr.msra.gmra.mxu0 %v12485_v34 }
 0x194   : > { %3105 = vst [vmem:[#allocation2 + $0x108] sm:$0xff] %v12328_v59  ;;  %3106 = vst [vmem:[#allocation2 + $0x110] sm:$0xff] %v12328_v59 }
 0x195   : > { %3107 = vst [vmem:[#allocation2 + $0x118] sm:$0x3] %v12328_v59  ;;  %3108 = vst [vmem:[#allocation2 + $0x120] sm:$0xff] %v12328_v59 }
 0x196   : > { %3109 = vst [vmem:[#allocation2 + $0x128] sm:$0xff] %v12328_v59  ;;  %3110 = vst [vmem:[#allocation2 + $0x130] sm:$0x3] %v12328_v59 }
 0x197   : > { %3111 = vst [vmem:[#allocation2 + $0x138] sm:$0xff] %v12328_v59  ;;  %3112 = vst [vmem:[#allocation2 + $0x140] sm:$0xff] %v12328_v59 }
 0x198   : > { %3113 = vst [vmem:[#allocation2 + $0x148] sm:$0x3] %v12328_v59  ;;  %3114 = vst [vmem:[#allocation2 + $0x150] sm:$0xff] %v12328_v59 }
 0x199   : > { %3115 = vst [vmem:[#allocation2 + $0x158] sm:$0xff] %v12328_v59  ;;  %3116 = vst [vmem:[#allocation2 + $0x160] sm:$0x3] %v12328_v59 }
 0x19a   : > { %3117 = vst [vmem:[#allocation2 + $0x168] sm:$0xff] %v12328_v59  ;;  %3118 = vst [vmem:[#allocation2 + $0x170] sm:$0xff] %v12328_v59 }
 0x19b   : > { %3119 = vst [vmem:[#allocation2 + $0x178] sm:$0x3] %v12328_v59  ;;  %3120 = vst [vmem:[#allocation2 + $0x180] sm:$0xff] %v12328_v59 }
 0x19c   : > { %3121 = vst [vmem:[#allocation2 + $0x188] sm:$0xff] %v12328_v59  ;;  %3122 = vst [vmem:[#allocation2 + $0x190] sm:$0x3] %v12328_v59 }
 0x19d   : > { %3125 = vst [vmem:[#allocation2 + $0x1a8] sm:$0x3] %v12328_v59  ;;  %12479 = vst [vmem:[#allocation45_spill] sm:$0xff] %v10352_v17  ;;  %v10365_v59 = vpop.f32.mrf.mxu0  ;;  %v3277_v17 = vrot.slane %v12485_v34, 1 }
 0x19e   : > { %12480 = vst [vmem:[#allocation46_spill] sm:$0xff] %v10354_v27  ;;  %12481 = vst [vmem:[#allocation48_spill] sm:$0xff] %v10358_v47  ;;  %v3391_v27 = vld [vmem:[#allocation3 + $0x88] sm:$0xff]  ;;  %v10367_v47 = vpop.f32.mrf.mxu1 }
 0x19f   : > { %12482 = vst [vmem:[#allocation50_spill] sm:$0xff] %v10361_v39  ;;  %12483 = vst [vmem:[#allocation59_spill] sm:$0xff] %v10363_v2  ;;  %7899 = vmatprep.subr.mxu1 %v3391_v27  ;;  %v7514_v56 = vpop.f32.mrf.mxu0  ;;  %v3280_v2 = vrot.slane %v3161_v54, 1  ;;  %7903 = vmatprep.mubr.f32.mxu1 %v3277_v17 }
 0x1a0   : > { %12484 = vst [vmem:[#allocation60_spill] sm:$0xff] %v10367_v47  ;;  %7900 = vmatpush3.msra.mxu1 %v3391_v27  ;;  %v10371_v63 = vadd.f32 %v7514_v56, %v10170_v33  ;;  %v10373_v39 = vpop.f32.mrf.mxu1 }
 0x1a1   : > { %12486 = vst [vmem:[#allocation61_spill] sm:$0xff] %v10373_v39  ;;  %7901 = vmatprep.subr.mxu1 %v3390_v22  ;;  %v10375_v53 = vpop.f32.mrf.mxu0  ;;  %v3281_v3 = vsel %vm356_vm0, %v3277_v17, %v3280_v2 }
 0x1a2   : > { %7902 = vmatpush3.msra.mxu1 %v3390_v22  ;;  %v10379_v47 = vpop.f32.mrf.mxu1 }
 0x1a3   : > { %12487 = vst [vmem:[#allocation62_spill] sm:$0xff] %v10379_v47  ;;  %v7517_v27 = vpop.f32.mrf.mxu0  ;;  %7904 = vmatmul.mubr.f32.vlgmr.msra.gmra.mxu1 %v3281_v3  ;;  %v3984_v3 = vld [vmem:[#allocation3 + $0x178] sm:$0xff] }
 0x1a4   : > { %v10382_v54 = vadd.f32 %v7517_v27, %v10180_v57  ;;  %v10384_v33 = vpop.f32.mrf.mxu1  ;;  %8031 = vmatprep.subr.mxu1 %v3984_v3 }
 0x1a5   : > { %12489 = vst [vmem:[#allocation64_spill] sm:$0xff] %v10384_v33  ;;  %v10386_v56 = vpop.f32.mrf.mxu0  ;;  %8032 = vmatpush3.msra.mxu1 %v3984_v3 }
 0x1a6   : > { %12488 = vst [vmem:[#allocation63_spill] sm:$0xff] %v10382_v54  ;;  %v10388_v50 = vpop.f32.mrf.mxu1 }
 0x1a7   : > { %12490 = vst [vmem:[#allocation65_spill] sm:$0xff] %v10388_v50  ;;  %v7520_v39 = vpop.f32.mrf.mxu0 }
 0x1a8   : > { %v10391_v22 = vadd.f32 %v7520_v39, %v10190_v40  ;;  %v10393_v34 = vpop.f32.mrf.mxu1  ;;  %v3983_v40 = vld [vmem:[#allocation3 + $0x170] sm:$0xff] }
 0x1a9   : > { %12492 = vst [vmem:[#allocation67_spill] sm:$0xff] %v10393_v34  ;;  %v10395_v2 = vpop.f32.mrf.mxu0  ;;  %8033 = vmatprep.subr.mxu1 %v3983_v40 }
 0x1aa   : > { %12491 = vst [vmem:[#allocation66_spill] sm:$0xff] %v10391_v22  ;;  %v10397_v17 = vpop.f32.mrf.mxu1  ;;  %8034 = vmatpush3.msra.mxu1 %v3983_v40 }
 0x1ab   : > { %12493 = vst [vmem:[#allocation68_spill] sm:$0xff] %v10397_v17  ;;  %v7523_v47 = vpop.f32.mrf.mxu0 }
 0x1ac   : > { %v10400_v57 = vadd.f32 %v7523_v47, %v10200_v5  ;;  %v10402_v27 = vpop.f32.mrf.mxu1  ;;  %v3982_v47 = vld [vmem:[#allocation3 + $0x168] sm:$0xff] }
 0x1ad   : > { %12495 = vst [vmem:[#allocation70_spill] sm:$0xff] %v10402_v27  ;;  %v10404_v50 = vpop.f32.mrf.mxu0  ;;  %8035 = vmatprep.subr.mxu1 %v3982_v47 }
 0x1ae   : > { %12494 = vst [vmem:[#allocation69_spill] sm:$0xff] %v10400_v57  ;;  %12496 = vst [vmem:[#allocation71_spill] sm:$0xff] %v10404_v50  ;;  %v10406_v33 = vpop.f32.mrf.mxu1  ;;  %8036 = vmatpush3.msra.mxu1 %v3982_v47  ;;  %v12574_v50 = vld [vmem:[#allocation57_spill] sm:$0xff] }
 0x1af   : > { %12497 = vst [vmem:[#allocation72_spill] sm:$0xff] %v10406_v33  ;;  %v7526_v39 = vpop.f32.mrf.mxu0 }
 0x1b0   : > { %v10409_v34 = vadd.f32 %v7526_v39, %v10210_v49  ;;  %v10411_v17 = vpop.f32.mrf.mxu1  ;;  %v3981_v39 = vld [vmem:[#allocation3 + $0x160] sm:$0xff] }
 0x1b1   : > { %12499 = vst [vmem:[#allocation74_spill] sm:$0xff] %v10411_v17  ;;  %v10413_v22 = vpop.f32.mrf.mxu0  ;;  %8037 = vmatprep.subr.mxu1 %v3981_v39 }
 0x1b2   : > { %12498 = vst [vmem:[#allocation73_spill] sm:$0xff] %v10409_v34  ;;  %12500 = vst [vmem:[#allocation75_spill] sm:$0xff] %v10413_v22  ;;  %v10415_v5 = vpop.f32.mrf.mxu1  ;;  %8038 = vmatpush3.msra.mxu1 %v3981_v39 }
 0x1b3   : > { %12501 = vst [vmem:[#allocation76_spill] sm:$0xff] %v10415_v5  ;;  %v7529_v27 = vpop.f32.mrf.mxu0 }
 0x1b4   : > { %v10418_v3 = vadd.f32 %v7529_v27, %v10221_v62  ;;  %v10420_v33 = vpop.f32.mrf.mxu1  ;;  %v3980_v27 = vld [vmem:[#allocation3 + $0x158] sm:$0xff] }
 0x1b5   : > { %12503 = vst [vmem:[#allocation78_spill] sm:$0xff] %v10420_v33  ;;  %v10422_v57 = vpop.f32.mrf.mxu0  ;;  %8039 = vmatprep.subr.mxu1 %v3980_v27 }
 0x1b6   : > { %12502 = vst [vmem:[#allocation77_spill] sm:$0xff] %v10418_v3  ;;  %12504 = vst [vmem:[#allocation79_spill] sm:$0xff] %v10422_v57  ;;  %v10424_v49 = vpop.f32.mrf.mxu1  ;;  %8040 = vmatpush3.msra.mxu1 %v3980_v27  ;;  %v3969_v57 = vld [vmem:[#allocation3 + $0x100] sm:$0xff] }
 0x1b7   : > { %12505 = vst [vmem:[#allocation80_spill] sm:$0xff] %v10424_v49  ;;  %v7532_v17 = vpop.f32.mrf.mxu0 }
 0x1b8   : > { %v10427_v40 = vadd.f32 %v7532_v17, %v10230_v37  ;;  %v10429_v5 = vpop.f32.mrf.mxu1  ;;  %v3979_v17 = vld [vmem:[#allocation3 + $0x150] sm:$0xff] }
 0x1b9   : > { %12507 = vst [vmem:[#allocation82_spill] sm:$0xff] %v10429_v5  ;;  %v10431_v34 = vpop.f32.mrf.mxu0  ;;  %8041 = vmatprep.subr.mxu1 %v3979_v17 }
 0x1ba   : > { %12506 = vst [vmem:[#allocation81_spill] sm:$0xff] %v10427_v40  ;;  %12508 = vst [vmem:[#allocation83_spill] sm:$0xff] %v10431_v34  ;;  %v10433_v62 = vpop.f32.mrf.mxu1  ;;  %8042 = vmatpush3.msra.mxu1 %v3979_v17 }
 0x1bb   : > { %12509 = vst [vmem:[#allocation84_spill] sm:$0xff] %v10433_v62  ;;  %v7535_v33 = vpop.f32.mrf.mxu0 }
 0x1bc   : > { %v10436_v47 = vadd.f32 %v7535_v33, %v10239_v21  ;;  %v10438_v49 = vpop.f32.mrf.mxu1  ;;  %v4258_v21 = vld [vmem:[#allocation3 + $0x1f8] sm:$0xff] }
 0x1bd   : > { %12511 = vst [vmem:[#allocation86_spill] sm:$0xff] %v10438_v49  ;;  %v10440_v3 = vpop.f32.mrf.mxu0  ;;  %v3978_v49 = vld [vmem:[#allocation3 + $0x148] sm:$0xff]  ;;  %8111 = vmatprep.subr.mxu0 %v4258_v21 }
 0x1be   : > { %12510 = vst [vmem:[#allocation85_spill] sm:$0xff] %v10436_v47  ;;  %12512 = vst [vmem:[#allocation87_spill] sm:$0xff] %v10440_v3  ;;  %v10442_v37 = vpop.f32.mrf.mxu1  ;;  %8043 = vmatprep.subr.mxu1 %v3978_v49  ;;  %8112 = vmatpush3.msra.mxu0 %v4258_v21  ;;  %v4255_v21 = vld [vmem:[#allocation3 + $0x1e0] sm:$0xff] }
 0x1bf   : > { %12513 = vst [vmem:[#allocation88_spill] sm:$0xff] %v10442_v37  ;;  %v7538_v5 = vpop.f32.mrf.mxu0  ;;  %v4257_v37 = vld [vmem:[#allocation3 + $0x1f0] sm:$0xff]  ;;  %8044 = vmatpush3.msra.mxu1 %v3978_v49 }
 0x1c0   : > { %v10445_v39 = vadd.f32 %v7538_v5, %v10248_v60  ;;  %v10447_v62 = vpop.f32.mrf.mxu1  ;;  %8113 = vmatprep.subr.mxu0 %v4257_v37  ;;  %v4256_v5 = vld [vmem:[#allocation3 + $0x1e8] sm:$0xff] }
 0x1c1   : > { %12515 = vst [vmem:[#allocation90_spill] sm:$0xff] %v10447_v62  ;;  %v10449_v40 = vpop.f32.mrf.mxu0  ;;  %8114 = vmatpush3.msra.mxu0 %v4257_v37  ;;  %v4254_v37 = vld [vmem:[#allocation3 + $0x1d8] sm:$0xff] }
 0x1c2   : > { %12514 = vst [vmem:[#allocation89_spill] sm:$0xff] %v10445_v39  ;;  %12516 = vst [vmem:[#allocation91_spill] sm:$0xff] %v10449_v40  ;;  %v10451_v33 = vpop.f32.mrf.mxu1  ;;  %8115 = vmatprep.subr.mxu0 %v4256_v5  ;;  %v4244_v40 = vld [vmem:[#allocation3 + $0x188] sm:$0xff] }
 0x1c3   : > { %12517 = vst [vmem:[#allocation92_spill] sm:$0xff] %v10451_v33  ;;  %v7541_v27 = vpop.f32.mrf.mxu0  ;;  %v3977_v33 = vld [vmem:[#allocation3 + $0x140] sm:$0xff]  ;;  %8116 = vmatpush3.msra.mxu0 %v4256_v5  ;;  %v4253_v5 = vld [vmem:[#allocation3 + $0x1d0] sm:$0xff] }
 0x1c4   : > { %v10454_v47 = vadd.f32 %v7541_v27, %v10259_v46  ;;  %v10456_v3 = vpop.f32.mrf.mxu1  ;;  %8045 = vmatprep.subr.mxu1 %v3977_v33  ;;  %8117 = vmatprep.subr.mxu0 %v4255_v21 }
 0x1c5   : > { %12519 = vst [vmem:[#allocation94_spill] sm:$0xff] %v10456_v3  ;;  %v10458_v60 = vpop.f32.mrf.mxu0  ;;  %8046 = vmatpush3.msra.mxu1 %v3977_v33  ;;  %8118 = vmatpush3.msra.mxu0 %v4255_v21  ;;  %v4252_v33 = vld [vmem:[#allocation3 + $0x1c8] sm:$0xff] }
 0x1c6   : > { %12518 = vst [vmem:[#allocation93_spill] sm:$0xff] %v10454_v47  ;;  %12520 = vst [vmem:[#allocation95_spill] sm:$0xff] %v10458_v60  ;;  %v10460_v17 = vpop.f32.mrf.mxu1  ;;  %8119 = vmatprep.subr.mxu0 %v4254_v37  ;;  %v3970_v60 = vld [vmem:[#allocation3 + $0x108] sm:$0xff] }
 0x1c7   : > { %12521 = vst [vmem:[#allocation96_spill] sm:$0xff] %v10460_v17  ;;  %v7544_v62 = vpop.f32.mrf.mxu0  ;;  %v3976_v17 = vld [vmem:[#allocation3 + $0x138] sm:$0xff]  ;;  %8120 = vmatpush3.msra.mxu0 %v4254_v37  ;;  %v4251_v37 = vld [vmem:[#allocation3 + $0x1c0] sm:$0xff] }
 0x1c8   : > { %v10463_v39 = vadd.f32 %v7544_v62, %v10270_v18  ;;  %v10465_v46 = vpop.f32.mrf.mxu1  ;;  %8047 = vmatprep.subr.mxu1 %v3976_v17  ;;  %8121 = vmatprep.subr.mxu0 %v4253_v5 }
 0x1c9   : > { %12523 = vst [vmem:[#allocation98_spill] sm:$0xff] %v10465_v46  ;;  %v10467_v49 = vpop.f32.mrf.mxu0  ;;  %8048 = vmatpush3.msra.mxu1 %v3976_v17  ;;  %8122 = vmatpush3.msra.mxu0 %v4253_v5  ;;  %v4250_v17 = vld [vmem:[#allocation3 + $0x1b8] sm:$0xff] }
 0x1ca   : > { %12522 = vst [vmem:[#allocation97_spill] sm:$0xff] %v10463_v39  ;;  %12524 = vst [vmem:[#allocation99_spill] sm:$0xff] %v10467_v49  ;;  %v10469_v27 = vpop.f32.mrf.mxu1  ;;  %8123 = vmatprep.subr.mxu0 %v4252_v33  ;;  %v4245_v49 = vld [vmem:[#allocation3 + $0x190] sm:$0xff] }
 0x1cb   : > { %12525 = vst [vmem:[#allocation100_spill] sm:$0xff] %v10469_v27  ;;  %v7547_v3 = vpop.f32.mrf.mxu0  ;;  %v3975_v27 = vld [vmem:[#allocation3 + $0x130] sm:$0xff]  ;;  %8124 = vmatpush3.msra.mxu0 %v4252_v33 }
 0x1cc   : > { %v10472_v47 = vadd.f32 %v7547_v3, %v10279_v10  ;;  %v10474_v18 = vpop.f32.mrf.mxu1  ;;  %8049 = vmatprep.subr.mxu1 %v3975_v27  ;;  %8125 = vmatprep.subr.mxu0 %v4251_v37  ;;  %v4249_v33 = vld [vmem:[#allocation3 + $0x1b0] sm:$0xff] }
 0x1cd   : > { %12527 = vst [vmem:[#allocation102_spill] sm:$0xff] %v10474_v18  ;;  %v10476_v62 = vpop.f32.mrf.mxu0  ;;  %8050 = vmatpush3.msra.mxu1 %v3975_v27  ;;  %8126 = vmatpush3.msra.mxu0 %v4251_v37  ;;  %v3973_v37 = vld [vmem:[#allocation3 + $0x120] sm:$0xff] }
 0x1ce   : > { %12526 = vst [vmem:[#allocation101_spill] sm:$0xff] %v10472_v47  ;;  %12528 = vst [vmem:[#allocation103_spill] sm:$0xff] %v10476_v62  ;;  %v10478_v21 = vpop.f32.mrf.mxu1  ;;  %8127 = vmatprep.subr.mxu0 %v4250_v17 }
 0x1cf   : > { %12529 = vst [vmem:[#allocation104_spill] sm:$0xff] %v10478_v21  ;;  %v7550_v46 = vpop.f32.mrf.mxu0  ;;  %v3974_v21 = vld [vmem:[#allocation3 + $0x128] sm:$0xff]  ;;  %8128 = vmatpush3.msra.mxu0 %v4250_v17  ;;  %v3972_v17 = vld [vmem:[#allocation3 + $0x118] sm:$0xff] }
 0x1d0   : > { %v10481_v39 = vadd.f32 %v7550_v46, %v10286_v15  ;;  %v10483_v10 = vpop.f32.mrf.mxu1  ;;  %8051 = vmatprep.subr.mxu1 %v3974_v21  ;;  %8129 = vmatprep.subr.mxu0 %v4249_v33  ;;  %v4248_v46 = vld [vmem:[#allocation3 + $0x1a8] sm:$0xff] }
 0x1d1   : > { %12531 = vst [vmem:[#allocation106_spill] sm:$0xff] %v10483_v10  ;;  %v10485_v3 = vpop.f32.mrf.mxu0  ;;  %8052 = vmatpush3.msra.mxu1 %v3974_v21  ;;  %8130 = vmatpush3.msra.mxu0 %v4249_v33  ;;  %v4247_v10 = vld [vmem:[#allocation3 + $0x1a0] sm:$0xff]  ;;  %v4246_v33 = vld [vmem:[#allocation3 + $0x198] sm:$0xff] }
 0x1d2   : > { %12530 = vst [vmem:[#allocation105_spill] sm:$0xff] %v10481_v39  ;;  %12532 = vst [vmem:[#allocation107_spill] sm:$0xff] %v10485_v3  ;;  %v10487_v5 = vpop.f32.mrf.mxu1  ;;  %8131 = vmatprep.subr.mxu0 %v4248_v46  ;;  %8053 = vmatprep.subr.mxu1 %v3973_v37  ;;  %v3971_v3 = vld [vmem:[#allocation3 + $0x110] sm:$0xff] }
 0x1d3   : > { %12533 = vst [vmem:[#allocation108_spill] sm:$0xff] %v10487_v5  ;;  %v10489_v18 = vpop.f32.mrf.mxu0  ;;  %8132 = vmatpush3.msra.mxu0 %v4248_v46  ;;  %8054 = vmatpush3.msra.mxu1 %v3973_v37 }
 0x1d4   : > { %v10491_v47 = vpop.f32.mrf.mxu1  ;;  %8133 = vmatprep.subr.mxu0 %v4247_v10  ;;  %8055 = vmatprep.subr.mxu1 %v3972_v17 }
 0x1d5   : > { %v10493_v15 = vpop.f32.mrf.mxu0  ;;  %8134 = vmatpush3.msra.mxu0 %v4247_v10  ;;  %8056 = vmatpush3.msra.mxu1 %v3972_v17  ;;  %v4243_v17 = vld [vmem:[#allocation3 + $0x180] sm:$0xff] }
 0x1d6   : > { %v10495_v27 = vpop.f32.mrf.mxu1  ;;  %8135 = vmatprep.subr.mxu0 %v4246_v33  ;;  %8057 = vmatprep.subr.mxu1 %v3971_v3 }
 0x1d7   : > { %v10497_v5 = vpop.f32.mrf.mxu0  ;;  %8136 = vmatpush3.msra.mxu0 %v4246_v33  ;;  %8058 = vmatpush3.msra.mxu1 %v3971_v3 }
 0x1d8   : > { %v10499_v39 = vpop.f32.mrf.mxu1  ;;  %8137 = vmatprep.subr.mxu0 %v4245_v49  ;;  %8059 = vmatprep.subr.mxu1 %v3970_v60 }
 0x1d9   : > { %12534 = vst [vmem:[#allocation109_spill] sm:$0xff] %v10499_v39  ;;  %v10501_v21 = vpop.f32.mrf.mxu0  ;;  %8138 = vmatpush3.msra.mxu0 %v4245_v49  ;;  %8060 = vmatpush3.msra.mxu1 %v3970_v60  ;;  %v12571_v39 = vld [vmem:[#allocation54_spill] sm:$0xff] }
 0x1da   : > { %v10505_v46 = vpop.f32.mrf.mxu1  ;;  %8139 = vmatprep.subr.mxu0 %v4244_v40  ;;  %8061 = vmatprep.subr.mxu1 %v3969_v57 }
 0x1db   : > { %v10503_v62 = vpop.f32.mrf.mxu0  ;;  %12536 = vst [vmem:[#allocation111_spill] sm:$0xff] %v10505_v46  ;;  %8140 = vmatpush3.msra.mxu0 %v4244_v40  ;;  %8062 = vmatpush3.msra.mxu1 %v3969_v57 }
 0x1dc   : > { %12535 = vst [vmem:[#allocation110_spill] sm:$0xff] %v10503_v62  ;;  %v10511_v34 = vpop.f32.mrf.mxu1  ;;  %8141 = vmatprep.subr.mxu0 %v4243_v17  ;;  %v12572_v62 = vld [vmem:[#allocation55_spill] sm:$0xff] }
 0x1dd   : > { %v10507_v37 = vpop.f32.mrf.mxu0  ;;  %12539 = vst [vmem:[#allocation114_spill] sm:$0xff] %v10511_v34  ;;  %8142 = vmatpush3.msra.mxu0 %v4243_v17 }
 0x1de   : > { %12537 = vst [vmem:[#allocation112_spill] sm:$0xff] %v10507_v37  ;;  %v10517_v49 = vpop.f32.mrf.mxu1  ;;  %v4542_v37 = vld [vmem:[#allocation3 + $0x278] sm:$0xff] }
 0x1df   : > { %v10509_v10 = vpop.f32.mrf.mxu0  ;;  %12542 = vst [vmem:[#allocation117_spill] sm:$0xff] %v10517_v49  ;;  %8191 = vmatprep.subr.mxu1 %v4542_v37 }
 0x1e0   : > { %12538 = vst [vmem:[#allocation113_spill] sm:$0xff] %v10509_v10  ;;  %v10523_v40 = vpop.f32.mrf.mxu1 }
 0x1e1   : > { %v10513_v33 = vpop.f32.mrf.mxu0  ;;  %12545 = vst [vmem:[#allocation120_spill] sm:$0xff] %v10523_v40 }
 0x1e2   : > { %12540 = vst [vmem:[#allocation115_spill] sm:$0xff] %v10513_v33  ;;  %v10529_v33 = vpop.f32.mrf.mxu1 }
 0x1e3   : > { %v10515_v3 = vpop.f32.mrf.mxu0  ;;  %12548 = vst [vmem:[#allocation123_spill] sm:$0xff] %v10529_v33 }
 0x1e4   : > { %12541 = vst [vmem:[#allocation116_spill] sm:$0xff] %v10515_v3  ;;  %v10535_v57 = vpop.f32.mrf.mxu1 }
 0x1e5   : > { %v10519_v46 = vpop.f32.mrf.mxu0  ;;  %12551 = vst [vmem:[#allocation126_spill] sm:$0xff] %v10535_v57 }
 0x1e6   : > { %12543 = vst [vmem:[#allocation118_spill] sm:$0xff] %v10519_v46  ;;  %v10541_v37 = vpop.f32.mrf.mxu1 }
 0x1e7   : > { %v10521_v60 = vpop.f32.mrf.mxu0  ;;  %12554 = vst [vmem:[#allocation129_spill] sm:$0xff] %v10541_v37  ;;  %v4823_v37 = vld [vmem:[#allocation3 + $0x2f8] sm:$0xff] }
 0x1e8   : > { %12544 = vst [vmem:[#allocation119_spill] sm:$0xff] %v10521_v60  ;;  %8271 = vmatprep.subr.mxu0 %v4823_v37 }
 0x1e9   : > { %v10525_v10 = vpop.f32.mrf.mxu0 }
 0x1ea   : > { %12546 = vst [vmem:[#allocation121_spill] sm:$0xff] %v10525_v10  ;;  %v10547_v10 = vpop.f32.mrf.mxu1 }
 0x1eb   : > { %v10527_v34 = vpop.f32.mrf.mxu0  ;;  %12557 = vst [vmem:[#allocation132_spill] sm:$0xff] %v10547_v10 }
 0x1ec   : > { %12547 = vst [vmem:[#allocation122_spill] sm:$0xff] %v10527_v34 }
 0x1ed   : > { %v10531_v17 = vpop.f32.mrf.mxu0 }
 0x1ee   : > { %12549 = vst [vmem:[#allocation124_spill] sm:$0xff] %v10531_v17  ;;  %v10553_v17 = vpop.f32.mrf.mxu1 }
 0x1ef   : > { %v10533_v3 = vpop.f32.mrf.mxu0  ;;  %12560 = vst [vmem:[#allocation135_spill] sm:$0xff] %v10553_v17  ;;  %v12569_v17 = vld [vmem:[#allocation52_spill] sm:$0xff] }
 0x1f0   : > { %12550 = vst [vmem:[#allocation125_spill] sm:$0xff] %v10533_v3 }
 0x1f1   : > { %v10537_v49 = vpop.f32.mrf.mxu0 }
 0x1f2   : > { %12552 = vst [vmem:[#allocation127_spill] sm:$0xff] %v10537_v49  ;;  %v10559_v49 = vpop.f32.mrf.mxu1 }
 0x1f3   : > { %v10539_v46 = vpop.f32.mrf.mxu0  ;;  %12563 = vst [vmem:[#allocation138_spill] sm:$0xff] %v10559_v49  ;;  %v1565_v49 = vadd.f32 %v10142_v6, %v10138_v23  ;;  %v1567_v23 = vadd.f32 %v10152_v55, %v10148_v58  ;;  %v1569_v6 = vadd.f32 %v10162_v20, %v10158_v7  ;;  %v2131_v55 = vadd.f32 %v10293_v61, %v10291_v1  ;;  %v12579_v1 = vld [vmem:[#allocation46_spill] sm:$0xff] }
 0x1f4   : > { %12553 = vst [vmem:[#allocation128_spill] sm:$0xff] %v10539_v46  ;;  %v1579_v20 = vadd.f32 %v10212_v38, %v10208_v43  ;;  %v12576_v38 = vld [vmem:[#allocation39_spill] sm:$0xff] }
 0x1f5   : > { %v10543_v60 = vpop.f32.mrf.mxu0 }
 0x1f6   : > { %12555 = vst [vmem:[#allocation130_spill] sm:$0xff] %v10543_v60 }
 0x1f7   : > { %v10545_v40 = vpop.f32.mrf.mxu0 }
 0x1f8   : > { %12556 = vst [vmem:[#allocation131_spill] sm:$0xff] %v10545_v40  ;;  %v10565_v40 = vpop.f32.mrf.mxu1 }
 0x1f9   : > { %v10549_v34 = vpop.f32.mrf.mxu0  ;;  %12566 = vst [vmem:[#allocation141_spill] sm:$0xff] %v10565_v40  ;;  %v12575_v40 = vld [vmem:[#allocation58_spill] sm:$0xff] }
 0x1fa   : > { %12558 = vst [vmem:[#allocation133_spill] sm:$0xff] %v10549_v34  ;;  %v898_v54 = vadd.f32 %v12575_v40, %v12574_v50  ;;  %v1571_v50 = vadd.f32 %v10172_v30, %v10168_v0 }
 0x1fb   : > { %v10551_v33 = vpop.f32.mrf.mxu0 }
 0x1fc   : > { %12559 = vst [vmem:[#allocation134_spill] sm:$0xff] %v10551_v33  ;;  %v12568_v33 = vld [vmem:[#allocation51_spill] sm:$0xff]  ;;  %v1315_v0 = vadd.f32 %v10257_v45, %v898_v54 }
 0x1fd   : > { %v10555_v3 = vpop.f32.mrf.mxu0  ;;  %v868_v22 = vadd.f32 %v12569_v17, %v12568_v33  ;;  %v918_v33 = vadd.f32 %v10123_v48, %v10121_v44 }
 0x1fe   : > { %12561 = vst [vmem:[#allocation136_spill] sm:$0xff] %v10555_v3  ;;  %v12570_v3 = vld [vmem:[#allocation53_spill] sm:$0xff] }
 0x1ff   : > { %v10557_v57 = vpop.f32.mrf.mxu0 }
 0x200   : > { %12562 = vst [vmem:[#allocation137_spill] sm:$0xff] %v10557_v57  ;;  %v878_v57 = vadd.f32 %v12571_v39, %v12570_v3  ;;  %v928_v39 = vadd.f32 %v10132_v13, %v10130_v4  ;;  %v1575_v4 = vadd.f32 %v10192_v26, %v10188_v41  ;;  %v1577_v13 = vadd.f32 %v10202_v29, %v10198_v28  ;;  %v12583_v3 = vld [vmem:[#allocation44_spill] sm:$0xff] }
 0x201   : > { %v10561_v46 = vpop.f32.mrf.mxu0  ;;  %v1851_v28 = vadd.f32 %v10356_v42, %v1567_v23  ;;  %v2405_v29 = vadd.f32 %v10489_v18, %v2131_v55  ;;  %v12581_v42 = vld [vmem:[#allocation42_spill] sm:$0xff] }
 0x202   : > { %12564 = vst [vmem:[#allocation139_spill] sm:$0xff] %v10561_v46  ;;  %v10577_v46 = vpop.f32.mrf.mxu1  ;;  %v1311_v44 = vadd.f32 %v10237_v31, %v878_v57  ;;  %v1321_v41 = vadd.f32 %v10284_v24, %v928_v39  ;;  %v12578_v24 = vld [vmem:[#allocation45_spill] sm:$0xff]  ;;  %v12585_v57 = vld [vmem:[#allocation50_spill] sm:$0xff]  ;;  %v12587_v39 = vld [vmem:[#allocation60_spill] sm:$0xff] }
 0x203   : > { %v10563_v60 = vpop.f32.mrf.mxu0  ;;  %v2133_v61 = vadd.f32 %v12579_v1, %v12578_v24  ;;  %v12597_v24 = vld [vmem:[#allocation109_spill] sm:$0xff] }
 0x204   : > { %12565 = vst [vmem:[#allocation140_spill] sm:$0xff] %v10563_v60  ;;  %v12573_v60 = vld [vmem:[#allocation56_spill] sm:$0xff]  ;;  %v10611_v7 = vpop.f32.mrf.mxu1  ;;  %v10628_v31 = vadd.f32 %v12576_v38, %v1311_v44  ;;  %v12595_v38 = vld [vmem:[#allocation66_spill] sm:$0xff] }
 0x205   : > { %v10567_v10 = vpop.f32.mrf.mxu0  ;;  %v888_v37 = vadd.f32 %v12573_v60, %v12572_v62  ;;  %v1849_v62 = vadd.f32 %v10295_v32, %v1565_v49  ;;  %v1855_v32 = vadd.f32 %v10375_v53, %v1571_v50  ;;  %v10655_v49 = vadd.f32 %v12583_v3, %v1321_v41  ;;  %v12584_v53 = vld [vmem:[#allocation48_spill] sm:$0xff] }
 0x206   : > { %v2689_v60 = vadd.f32 %v10491_v47, %v2405_v29  ;;  %v2407_v40 = vadd.f32 %v10497_v5, %v2133_v61  ;;  %v12598_v61 = vld [vmem:[#allocation68_spill] sm:$0xff] }
 0x207   : > { %v10569_v34 = vpop.f32.mrf.mxu0  ;;  %v1313_v58 = vadd.f32 %v10246_v11, %v888_v37  ;;  %v2130_v26 = vadd.f32 %v10297_v9, %v1849_v62  ;;  %v1853_v11 = vadd.f32 %v10365_v59, %v1569_v6  ;;  %v12582_v59 = vld [vmem:[#allocation43_spill] sm:$0xff]  ;;  %v12588_v6 = vld [vmem:[#allocation61_spill] sm:$0xff] }
 0x208   : > { %12567 = vst [vmem:[#allocation142_spill] sm:$0xff] %v10569_v34  ;;  %v908_v34 = vadd.f32 %v10111_v16, %v10109_v35  ;;  %v1573_v16 = vadd.f32 %v10182_v51, %v10178_v52  ;;  %v1309_v35 = vadd.f32 %v10228_v19, %v868_v22  ;;  %v1319_v52 = vadd.f32 %v10277_v36, %v918_v33  ;;  %v12586_v37 = vld [vmem:[#allocation59_spill] sm:$0xff] }
 0x209   : > { %v10587_v17 = vpop.f32.mrf.mxu0  ;;  %v1581_v19 = vadd.f32 %v10223_v12, %v10219_v14  ;;  %v2404_v9 = vadd.f32 %v10493_v15, %v2130_v26  ;;  %v10640_v14 = vpop.f32.mrf.mxu1  ;;  %v12580_v12 = vld [vmem:[#allocation41_spill] sm:$0xff]  ;;  %v2132_v15 = vadd.f32 %v12584_v53, %v1851_v28  ;;  %v2135_v33 = vadd.f32 %v12586_v37, %v12585_v57  ;;  %v12594_v26 = vld [vmem:[#allocation110_spill] sm:$0xff] }
 0x20a   : > { %v1317_v30 = vadd.f32 %v10267_v25, %v908_v34  ;;  %v1583_v43 = vadd.f32 %v10232_v8, %v1309_v35  ;;  %v12577_v25 = vld [vmem:[#allocation40_spill] sm:$0xff]  ;;  %v10643_v8 = vadd.f32 %v12580_v12, %v1315_v0  ;;  %v10649_v22 = vadd.f32 %v12582_v59, %v1319_v52  ;;  %v12589_v35 = vld [vmem:[#allocation62_spill] sm:$0xff]  ;;  %v12590_v0 = vld [vmem:[#allocation63_spill] sm:$0xff] }
 0x20b   : > { %v10602_v48 = vpop.f32.mrf.mxu0  ;;  %v10634_v36 = vadd.f32 %v12577_v25, %v1313_v58  ;;  %v1857_v34 = vadd.f32 %v10386_v56, %v1573_v16  ;;  %v2134_v23 = vadd.f32 %v12587_v39, %v1853_v11  ;;  %v2137_v62 = vadd.f32 %v12588_v6, %v10371_v63  ;;  %v10669_v16 = vld [vmem:[%s12234_s2] ss:$0 sm:$0xff]  ;;  %v10674_v58 = vpop.f32.mrf.mxu1  ;;  %v12592_v52 = vld [vmem:[#allocation65_spill] sm:$0xff]  ;;  %v12600_v12 = vld [vmem:[#allocation70_spill] sm:$0xff] }
 0x20c   : > { %v10646_v54 = vadd.f32 %v12581_v42, %v1317_v30  ;;  %v1859_v56 = vadd.f32 %v10395_v2, %v1575_v4  ;;  %v2136_v47 = vadd.f32 %v12589_v35, %v1855_v32  ;;  %v2688_v5 = vadd.f32 %v10495_v27, %v2404_v9  ;;  %v12591_v30 = vld [vmem:[#allocation64_spill] sm:$0xff]  ;;  %v12593_v4 = vld [vmem:[#allocation71_spill] sm:$0xff]  ;;  %v12599_v9 = vld [vmem:[#allocation69_spill] sm:$0xff] }
 0x20d   : > { %v10618_v51 = vpop.f32.mrf.mxu0  ;;  %v2406_v44 = vadd.f32 %v10501_v21, %v2132_v15  ;;  %v2139_v63 = vadd.f32 %v12591_v30, %v12590_v0  ;;  %v2138_v2 = vadd.f32 %v12592_v52, %v1857_v34  ;;  %v1861_v41 = vadd.f32 %v12593_v4, %v1577_v13  ;;  %v12596_v11 = vld [vmem:[#allocation67_spill] sm:$0xff]  ;;  %v12602_v34 = vld [vmem:[#allocation112_spill] sm:$0xff]  ;;  %v10695_v57 = vpop.f32.mrf.mxu1  ;;  %v12609_v30 = vld [vmem:[#allocation113_spill] sm:$0xff] }
 0x20e   : > { %v2409_v28 = vadd.f32 %v12594_v26, %v2135_v33  ;;  %v2141_v25 = vadd.f32 %v12596_v11, %v12595_v38  ;;  %v2691_v27 = vadd.f32 %v12597_v24, %v2407_v40  ;;  %v10686_v32 = vadd.f32 %v12598_v61, %v1859_v56  ;;  %v12601_v59 = vld [vmem:[#allocation75_spill] sm:$0xff]  ;;  %v12604_v39 = vld [vmem:[#allocation72_spill] sm:$0xff]  ;;  %v12605_v56 = vld [vmem:[#allocation73_spill] sm:$0xff] }
 0x20f   : > { %v10631_v45 = vpop.f32.mrf.mxu0  ;;  %v10690_v42 = vadd.f32 %v12600_v12, %v12599_v9  ;;  %v1863_v13 = vadd.f32 %v12601_v59, %v1579_v20  ;;  %v2408_v3 = vadd.f32 %v12602_v34, %v2134_v23  ;;  %v12603_v15 = vld [vmem:[#allocation111_spill] sm:$0xff]  ;;  %v10699_v6 = vadd.f32 %v12604_v39, %v1861_v41  ;;  %v12611_v41 = vld [vmem:[#allocation77_spill] sm:$0xff]  ;;  %v12612_v11 = vld [vmem:[#allocation78_spill] sm:$0xff] }
 0x210   : > { %v10714_v24 = vadd.f32 %v12612_v11, %v12611_v41  ;;  %v12615_v61 = vld [vmem:[#allocation115_spill] sm:$0xff]  ;;  %v12621_v39 = vld [vmem:[#allocation120_spill] sm:$0xff] }
 0x211   : > { %v10652_v18 = vpop.f32.mrf.mxu0  ;;  %v2410_v9 = vadd.f32 %v12615_v61, %v2136_v47  ;;  %v12627_v41 = vld [vmem:[#allocation123_spill] sm:$0xff]  ;;  %v12629_v61 = vld [vmem:[#allocation89_spill] sm:$0xff] }
 0x213   : > { %v7825_v50 = vpop.f32.mrf.mxu0 }
 0x214   : > { %v2970_v55 = vadd.f32 %v7825_v50, %v2689_v60  ;;  %v2690_v60 = vadd.f32 %v12603_v15, %v2406_v44  ;;  %v12606_v50 = vld [vmem:[#allocation74_spill] sm:$0xff]  ;;  %v2411_v44 = vadd.f32 %v12609_v30, %v2137_v62  ;;  %v10719_v62 = vpop.f32.mrf.mxu1  ;;  %v12617_v15 = vld [vmem:[#allocation81_spill] sm:$0xff] }
 0x215   : > { %v2810_v29 = vpop.f32.mrf.mxu0  ;;  %v10703_v35 = vadd.f32 %v12606_v50, %v12605_v56  ;;  %v12624_v30 = vld [vmem:[#allocation86_spill] sm:$0xff] }
 0x216   : > { %v3009_v21 = vadd.f32 %v10669_v16, %v2970_v55  ;;  %v2969_v1 = vadd.f32 %v2810_v29, %v2688_v5  ;;  %v12607_v5 = vld [vmem:[#allocation79_spill] sm:$0xff]  ;;  %v12608_v55 = vld [vmem:[#allocation114_spill] sm:$0xff]  ;;  %v12610_v29 = vld [vmem:[#allocation76_spill] sm:$0xff]  ;;  %v2695_v56 = vadd.f32 %v12621_v39, %v2411_v44  ;;  %v2694_v44 = vadd.f32 %v12627_v41, %v2410_v9  ;;  %v10745_v11 = vpop.f32.mrf.mxu1 }
 0x217   : > { %v7828_v53 = vpop.f32.mrf.mxu0  ;;  %v1865_v20 = vadd.f32 %v12607_v5, %v1581_v19  ;;  %v2693_v23 = vadd.f32 %v12608_v55, %v2409_v28  ;;  %v10710_v38 = vadd.f32 %v12610_v29, %v1863_v13  ;;  %v12614_v19 = vld [vmem:[#allocation117_spill] sm:$0xff]  ;;  %v12616_v13 = vld [vmem:[#allocation80_spill] sm:$0xff] }
 0x218   : > { %v3041_v40 = vmax.f32 %v3009_v21, 0.0  ;;  %v3008_v37 = vadd.f32 %v10669_v16, %v2969_v1  ;;  %v2972_v33 = vadd.f32 %v7828_v53, %v2691_v27  ;;  %v12613_v27 = vld [vmem:[#allocation83_spill] sm:$0xff]  ;;  %v2692_v1 = vadd.f32 %v12614_v19, %v2408_v3 }
 0x219   : > { %v2820_v0 = vpop.f32.mrf.mxu0  ;;  %v1867_v21 = vadd.f32 %v12613_v27, %v1583_v43  ;;  %v10723_v53 = vadd.f32 %v12616_v13, %v1865_v20  ;;  %v12619_v43 = vld [vmem:[#allocation87_spill] sm:$0xff] }
 0x21a   : > { %3128 = vst [vmem:[#allocation2 + $0x21] sm:$0xff] %v3041_v40  ;;  %v3040_v52 = vmax.f32 %v3008_v37, 0.0  ;;  %v3011_v4 = vadd.f32 %v10669_v16, %v2972_v33  ;;  %v2971_v26 = vadd.f32 %v2820_v0, %v2690_v60  ;;  %v12618_v60 = vld [vmem:[#allocation82_spill] sm:$0xff]  ;;  %v1869_v3 = vadd.f32 %v12619_v43, %v10628_v31  ;;  %v12620_v37 = vld [vmem:[#allocation116_spill] sm:$0xff]  ;;  %v12623_v0 = vld [vmem:[#allocation85_spill] sm:$0xff] }
 0x21b   : > { %v7831_v28 = vpop.f32.mrf.mxu0  ;;  %v10727_v40 = vadd.f32 %v12618_v60, %v12617_v15  ;;  %v2413_v33 = vadd.f32 %v12620_v37, %v2139_v63  ;;  %v12633_v15 = vld [vmem:[#allocation119_spill] sm:$0xff] }
 0x21c   : > { %3127 = vst [vmem:[#allocation2 + $0x19] sm:$0xff] %v3040_v52  ;;  %v3043_v12 = vmax.f32 %v3011_v4, 0.0  ;;  %v3010_v59 = vadd.f32 %v10669_v16, %v2971_v26  ;;  %v2974_v34 = vadd.f32 %v7831_v28, %v2693_v23  ;;  %v12622_v23 = vld [vmem:[#allocation84_spill] sm:$0xff]  ;;  %v10739_v52 = vadd.f32 %v12624_v30, %v12623_v0  ;;  %v12625_v4 = vld [vmem:[#allocation91_spill] sm:$0xff]  ;;  %v12626_v26 = vld [vmem:[#allocation118_spill] sm:$0xff] }
 0x21d   : > { %v2830_v47 = vpop.f32.mrf.mxu0  ;;  %v10735_v20 = vadd.f32 %v12622_v23, %v1867_v21  ;;  %v1871_v31 = vadd.f32 %v12625_v4, %v10634_v36  ;;  %v2412_v63 = vadd.f32 %v12626_v26, %v2138_v2  ;;  %v12631_v36 = vld [vmem:[#allocation95_spill] sm:$0xff]  ;;  %v2415_v60 = vadd.f32 %v12633_v15, %v2141_v25  ;;  %v10776_v26 = vpop.f32.mrf.mxu1 }
 0x21e   : > { %3130 = vst [vmem:[#allocation2 + $0x39] sm:$0xff] %v3043_v12  ;;  %v3042_v50 = vmax.f32 %v3010_v59, 0.0  ;;  %v3013_v5 = vadd.f32 %v10669_v16, %v2974_v34  ;;  %v2973_v55 = vadd.f32 %v2830_v47, %v2692_v1  ;;  %v12628_v1 = vld [vmem:[#allocation88_spill] sm:$0xff]  ;;  %v12630_v12 = vld [vmem:[#allocation90_spill] sm:$0xff]  ;;  %v1873_v2 = vadd.f32 %v12631_v36, %v10643_v8  ;;  %v12637_v8 = vld [vmem:[#allocation129_spill] sm:$0xff] }
 0x21f   : > { %v7834_v29 = vpop.f32.mrf.mxu0  ;;  %v10749_v28 = vadd.f32 %v12628_v1, %v1869_v3  ;;  %v10753_v59 = vadd.f32 %v12630_v12, %v12629_v61  ;;  %v12632_v34 = vld [vmem:[#allocation126_spill] sm:$0xff]  ;;  %v12634_v3 = vld [vmem:[#allocation92_spill] sm:$0xff]  ;;  %v2696_v23 = vadd.f32 %v12637_v8, %v2412_v63  ;;  %v10806_v8 = vpop.f32.mrf.mxu1 }
 0x220   : > { %3129 = vst [vmem:[#allocation2 + $0x31] sm:$0xff] %v3042_v50  ;;  %v3045_v27 = vmax.f32 %v3013_v5, 0.0  ;;  %v3012_v19 = vadd.f32 %v10669_v16, %v2973_v55  ;;  %v2976_v21 = vadd.f32 %v7834_v29, %v2695_v56  ;;  %v2697_v13 = vadd.f32 %v12632_v34, %v2413_v33  ;;  %v12635_v50 = vld [vmem:[#allocation93_spill] sm:$0xff]  ;;  %v12636_v5 = vld [vmem:[#allocation94_spill] sm:$0xff]  ;;  %v12639_v63 = vld [vmem:[#allocation96_spill] sm:$0xff] }
 0x221   : > { %v2840_v9 = vpop.f32.mrf.mxu0  ;;  %v10760_v39 = vld [vmem:[#allocation2 + $0x28] sm:$0x3]  ;;  %v10763_v56 = vadd.f32 %v12634_v3, %v1871_v31  ;;  %v10767_v55 = vadd.f32 %v12636_v5, %v12635_v50  ;;  %v12638_v33 = vld [vmem:[#allocation121_spill] sm:$0xff] }
 0x222   : > { %3132 = vst [vmem:[#allocation2 + $0x51] sm:$0xff] %v3045_v27  ;;  %v3044_v43 = vmax.f32 %v3012_v19, 0.0  ;;  %v3015_v37 = vadd.f32 %v10669_v16, %v2976_v21  ;;  %v2975_v47 = vadd.f32 %v2840_v9, %v2694_v44  ;;  %v2414_v0 = vadd.f32 %v12638_v33, %v10686_v32  ;;  %v12640_v32 = vld [vmem:[#allocation122_spill] sm:$0xff]  ;;  %v12641_v12 = vld [vmem:[#allocation132_spill] sm:$0xff] }
 0x223   : > { %v7837_v25 = vpop.f32.mrf.mxu0  ;;  %v10772_v30 = vld [vmem:[#allocation2 + $0x18] sm:$0xff]  ;;  %v10774_v4 = vld [vmem:[#allocation2 + $0x20] sm:$0xff]  ;;  %v10782_v27 = vadd.f32 %v12639_v63, %v1873_v2  ;;  %v2417_v19 = vadd.f32 %v12640_v32, %v10690_v42  ;;  %v3285_v61 = vrot.slane %v10760_v39, 1  ;;  %v2699_v36 = vadd.f32 %v12641_v12, %v2415_v60  ;;  %v12643_v42 = vld [vmem:[#allocation124_spill] sm:$0xff] }
 0x224   : > { %3131 = vst [vmem:[#allocation2 + $0x49] sm:$0xff] %v3044_v43  ;;  %v3047_v29 = vmax.f32 %v3015_v37, 0.0  ;;  %v3014_v31 = vadd.f32 %v10669_v16, %v2975_v47  ;;  %v2978_v41 = vadd.f32 %v7837_v25, %v2697_v13  ;;  %7986 = vmatprep.mubr.f32.mxu0 %v10772_v30  ;;  %v3282_v44 = vrot.slane %v10772_v30, 1  ;;  %v12642_v2 = vld [vmem:[#allocation135_spill] sm:$0xff] }
 0x225   : > { %v2850_v21 = vpop.f32.mrf.mxu0  ;;  %7987 = vmatmul.mubr.f32.gmra.mxu0 %v10774_v4  ;;  %v3283_v1 = vrot.slane %v10774_v4, 1  ;;  %v10791_v15 = vld [vmem:[#allocation2 + $0x40] sm:$0x3]  ;;  %v2698_v43 = vadd.f32 %v12642_v2, %v2414_v0  ;;  %v2416_v37 = vadd.f32 %v12643_v42, %v10699_v6 }
 0x226   : > { %3134 = vst [vmem:[#allocation2 + $0x69] sm:$0xff] %v3047_v29  ;;  %v3046_v34 = vmax.f32 %v3014_v31, 0.0  ;;  %v3017_v13 = vadd.f32 %v10669_v16, %v2978_v41  ;;  %v2977_v9 = vadd.f32 %v2850_v21, %v2696_v23  ;;  %v12644_v25 = vld [vmem:[#allocation99_spill] sm:$0xff]  ;;  %v12645_v31 = vld [vmem:[#allocation138_spill] sm:$0xff]  ;;  %v3290_v32 = vrot.slane %v10791_v15, 1  ;;  %v12646_v21 = vld [vmem:[#allocation125_spill] sm:$0xff] }
 0x227   : > { %v7840_v47 = vpop.f32.mrf.mxu0  ;;  %v10797_v3 = vsel %vm356_vm0, %v3282_v44, %v3283_v1  ;;  %v10800_v50 = vsel %vm356_vm0, %v3283_v1, %v3285_v61  ;;  %v10802_v60 = vld [vmem:[#allocation2 + $0x30] sm:$0xff]  ;;  %v10804_v5 = vld [vmem:[#allocation2 + $0x38] sm:$0xff]  ;;  %v1875_v29 = vadd.f32 %v12644_v25, %v10646_v54  ;;  %v2701_v41 = vadd.f32 %v12645_v31, %v2417_v19 }
 0x228   : > { %3133 = vst [vmem:[#allocation2 + $0x61] sm:$0xff] %v3046_v34  ;;  %v3049_v23 = vmax.f32 %v3017_v13, 0.0  ;;  %v3016_v33 = vadd.f32 %v10669_v16, %v2977_v9  ;;  %v2980_v0 = vadd.f32 %v7840_v47, %v2699_v36  ;;  %7906 = vmatprep.mubr.f32.mxu1 %v10797_v3  ;;  %7989 = vmatprep.mubr.f32.mxu0 %v10802_v60  ;;  %v3287_v6 = vrot.slane %v10802_v60, 1  ;;  %v12647_v19 = vld [vmem:[#allocation141_spill] sm:$0xff]  ;;  %v12648_v13 = vld [vmem:[#allocation127_spill] sm:$0xff]  ;;  %v12652_v25 = vld [vmem:[#allocation98_spill] sm:$0xff] }
 0x229   : > { %7907 = vmatmul.mubr.f32.gmra.mxu1 %v10800_v50  ;;  %v2860_v44 = vpop.f32.mrf.mxu0  ;;  %7990 = vmatmul.mubr.f32.gmra.mxu0 %v10804_v5  ;;  %v3288_v63 = vrot.slane %v10804_v5, 1  ;;  %v2419_v1 = vadd.f32 %v12646_v21, %v10703_v35  ;;  %v10822_v54 = vld [vmem:[#allocation2 + $0x58] sm:$0x3]  ;;  %v2700_v34 = vadd.f32 %v12647_v19, %v2416_v37  ;;  %v2418_v9 = vadd.f32 %v12648_v13, %v10710_v38 }
 0x22a   : > { %3136 = vst [vmem:[#allocation2 + $0x81] sm:$0xff] %v3049_v23  ;;  %v3048_v61 = vmax.f32 %v3016_v33, 0.0  ;;  %v3019_v12 = vadd.f32 %v10669_v16, %v2980_v0  ;;  %v2979_v36 = vadd.f32 %v2860_v44, %v2698_v43  ;;  %v10837_v33 = vpop.f32.mrf.mxu1  ;;  %v12653_v44 = vld [vmem:[#allocation128_spill] sm:$0xff]  ;;  %v3295_v21 = vrot.slane %v10822_v54, 1 }
 0x22b   : > { %v7843_v2 = vpop.f32.mrf.mxu0  ;;  %v10828_v42 = vsel %vm356_vm0, %v3287_v6, %v3288_v63  ;;  %v10831_v47 = vsel %vm356_vm0, %v3288_v63, %v3290_v32  ;;  %v10833_v35 = vld [vmem:[#allocation2 + $0x48] sm:$0xff]  ;;  %v10835_v23 = vld [vmem:[#allocation2 + $0x50] sm:$0xff]  ;;  %v2421_v63 = vadd.f32 %v12653_v44, %v10714_v24  ;;  %v2702_v24 = vadd.f32 %v10611_v7, %v2418_v9 }
 0x22c   : > { %12649 = vst [vmem:[#allocation51_spill] sm:$0xff] %v10828_v42  ;;  %12650 = vst [vmem:[#allocation52_spill] sm:$0xff] %v10831_v47  ;;  %v3051_v43 = vmax.f32 %v3019_v12, 0.0  ;;  %v3018_v37 = vadd.f32 %v10669_v16, %v2979_v36  ;;  %v2982_v0 = vadd.f32 %v7843_v2, %v2701_v41  ;;  %7909 = vmatprep.mubr.f32.mxu1 %v10828_v42  ;;  %7992 = vmatprep.mubr.f32.mxu0 %v10833_v35  ;;  %v12651_v6 = vld [vmem:[#allocation97_spill] sm:$0xff]  ;;  %v12654_v2 = vld [vmem:[#allocation130_spill] sm:$0xff] }
 0x22d   : > { %3135 = vst [vmem:[#allocation2 + $0x79] sm:$0xff] %v3048_v61  ;;  %v3292_v38 = vrot.slane %v10833_v35, 1  ;;  %v10845_v31 = vadd.f32 %v12652_v25, %v12651_v6  ;;  %7910 = vmatmul.mubr.f32.gmra.mxu1 %v10831_v47  ;;  %v2870_v32 = vpop.f32.mrf.mxu0  ;;  %7993 = vmatmul.mubr.f32.gmra.mxu0 %v10835_v23  ;;  %v3293_v41 = vrot.slane %v10835_v23, 1  ;;  %v2703_v61 = vadd.f32 %v10577_v46, %v2419_v1  ;;  %v10855_v13 = vld [vmem:[#allocation2 + $0x70] sm:$0x3] }
 0x22e   : > { %3138 = vst [vmem:[#allocation2 + $0x99] sm:$0xff] %v3051_v43  ;;  %v3050_v12 = vmax.f32 %v3018_v37, 0.0  ;;  %v3021_v36 = vadd.f32 %v10669_v16, %v2982_v0  ;;  %v2981_v19 = vadd.f32 %v2870_v32, %v2700_v34  ;;  %v2420_v6 = vadd.f32 %v12654_v2, %v10723_v53  ;;  %v10870_v43 = vpop.f32.mrf.mxu1  ;;  %v12657_v37 = vld [vmem:[#allocation100_spill] sm:$0xff] }
 0x22f   : > { %v7846_v25 = vpop.f32.mrf.mxu0  ;;  %v10861_v44 = vsel %vm356_vm0, %v3292_v38, %v3293_v41  ;;  %v10864_v47 = vsel %vm356_vm0, %v3293_v41, %v3295_v21  ;;  %v10866_v46 = vld [vmem:[#allocation2 + $0x60] sm:$0xff]  ;;  %v10868_v1 = vld [vmem:[#allocation2 + $0x68] sm:$0xff]  ;;  %v10877_v0 = vadd.f32 %v12657_v37, %v1875_v29  ;;  %v2705_v38 = vadd.f32 %v10640_v14, %v2421_v63  ;;  %v12659_v63 = vld [vmem:[#allocation133_spill] sm:$0xff] }
 0x230   : > { %12655 = vst [vmem:[#allocation53_spill] sm:$0xff] %v10861_v44  ;;  %12656 = vst [vmem:[#allocation54_spill] sm:$0xff] %v10864_v47  ;;  %v3053_v34 = vmax.f32 %v3021_v36, 0.0  ;;  %v3020_v7 = vadd.f32 %v10669_v16, %v2981_v19  ;;  %v2984_v9 = vadd.f32 %v7846_v25, %v2703_v61  ;;  %7912 = vmatprep.mubr.f32.mxu1 %v10861_v44  ;;  %7995 = vmatprep.mubr.f32.mxu0 %v10866_v46  ;;  %v12658_v61 = vld [vmem:[#allocation131_spill] sm:$0xff] }
 0x231   : > { %3137 = vst [vmem:[#allocation2 + $0x91] sm:$0xff] %v3050_v12  ;;  %v3297_v53 = vrot.slane %v10866_v46, 1  ;;  %7913 = vmatmul.mubr.f32.gmra.mxu1 %v10864_v47  ;;  %v2880_v32 = vpop.f32.mrf.mxu0  ;;  %7996 = vmatmul.mubr.f32.gmra.mxu0 %v10868_v1  ;;  %v3298_v41 = vrot.slane %v10868_v1, 1  ;;  %v3300_v21 = vrot.slane %v10855_v13, 1  ;;  %v2423_v12 = vadd.f32 %v12658_v61, %v10727_v40  ;;  %v10887_v2 = vld [vmem:[#allocation2 + $0x88] sm:$0x3] }
 0x232   : > { %3140 = vst [vmem:[#allocation2 + $0xb1] sm:$0xff] %v3053_v34  ;;  %v3052_v36 = vmax.f32 %v3020_v7, 0.0  ;;  %v3023_v19 = vadd.f32 %v10669_v16, %v2984_v9  ;;  %v2983_v29 = vadd.f32 %v2880_v32, %v2702_v24  ;;  %v2704_v14 = vadd.f32 %v10674_v58, %v2420_v6  ;;  %v10902_v7 = vpop.f32.mrf.mxu1  ;;  %v12662_v9 = vld [vmem:[#allocation103_spill] sm:$0xff]  ;;  %v12663_v32 = vld [vmem:[#allocation134_spill] sm:$0xff] }
 0x233   : > { %v2422_v25 = vadd.f32 %v12659_v63, %v10735_v20  ;;  %v7849_v37 = vpop.f32.mrf.mxu0  ;;  %v10893_v47 = vsel %vm356_vm0, %v3297_v53, %v3298_v41  ;;  %v10896_v44 = vsel %vm356_vm0, %v3298_v41, %v3300_v21  ;;  %v1877_v53 = vadd.f32 %v12662_v9, %v10649_v22 }
 0x234   : > { %12660 = vst [vmem:[#allocation55_spill] sm:$0xff] %v10893_v47  ;;  %12661 = vst [vmem:[#allocation56_spill] sm:$0xff] %v10896_v44  ;;  %v10898_v40 = vld [vmem:[#allocation2 + $0x78] sm:$0xff]  ;;  %v10900_v34 = vld [vmem:[#allocation2 + $0x80] sm:$0xff]  ;;  %v3055_v24 = vmax.f32 %v3023_v19, 0.0  ;;  %v3022_v58 = vadd.f32 %v10669_v16, %v2983_v29  ;;  %v2986_v6 = vadd.f32 %v7849_v37, %v2705_v38  ;;  %7915 = vmatprep.mubr.f32.mxu1 %v10893_v47  ;;  %v3305_v38 = vrot.slane %v10887_v2, 1 }
 0x235   : > { %3139 = vst [vmem:[#allocation2 + $0xa9] sm:$0xff] %v3052_v36  ;;  %7998 = vmatprep.mubr.f32.mxu0 %v10898_v40  ;;  %v3302_v20 = vrot.slane %v10898_v40, 1  ;;  %v2425_v41 = vadd.f32 %v12663_v32, %v10739_v52  ;;  %7916 = vmatmul.mubr.f32.gmra.mxu1 %v10896_v44  ;;  %v2890_v21 = vpop.f32.mrf.mxu0  ;;  %v3303_v61 = vrot.slane %v10900_v34, 1  ;;  %v2707_v36 = vadd.f32 %v10695_v57, %v2423_v12  ;;  %v10918_v22 = vld [vmem:[#allocation2 + $0xa0] sm:$0x3]  ;;  %v12664_v37 = vld [vmem:[#allocation136_spill] sm:$0xff] }
 0x236   : > { %7999 = vmatmul.mubr.f32.gmra.mxu0 %v10900_v34  ;;  %3142 = vst [vmem:[#allocation2 + $0xc9] sm:$0xff] %v3055_v24  ;;  %v3054_v19 = vmax.f32 %v3022_v58, 0.0  ;;  %v3025_v29 = vadd.f32 %v10669_v16, %v2986_v6  ;;  %v2985_v63 = vadd.f32 %v2890_v21, %v2704_v14  ;;  %v2706_v52 = vadd.f32 %v10719_v62, %v2422_v25  ;;  %v10933_v24 = vpop.f32.mrf.mxu1  ;;  %v12667_v58 = vld [vmem:[#allocation101_spill] sm:$0xff]  ;;  %v12668_v6 = vld [vmem:[#allocation102_spill] sm:$0xff] }
 0x237   : > { %v2424_v9 = vadd.f32 %v12664_v37, %v10749_v28  ;;  %v7852_v32 = vpop.f32.mrf.mxu0  ;;  %v10924_v44 = vsel %vm356_vm0, %v3302_v20, %v3303_v61  ;;  %v10927_v47 = vsel %vm356_vm0, %v3303_v61, %v3305_v38  ;;  %v10941_v20 = vadd.f32 %v12668_v6, %v12667_v58 }
 0x238   : > { %12665 = vst [vmem:[#allocation57_spill] sm:$0xff] %v10924_v44  ;;  %12666 = vst [vmem:[#allocation58_spill] sm:$0xff] %v10927_v47  ;;  %v10929_v57 = vld [vmem:[#allocation2 + $0x90] sm:$0xff]  ;;  %v10931_v12 = vld [vmem:[#allocation2 + $0x98] sm:$0xff]  ;;  %v3057_v14 = vmax.f32 %v3025_v29, 0.0  ;;  %v3024_v62 = vadd.f32 %v10669_v16, %v2985_v63  ;;  %v2988_v25 = vadd.f32 %v7852_v32, %v2707_v36  ;;  %7918 = vmatprep.mubr.f32.mxu1 %v10924_v44  ;;  %v3310_v36 = vrot.slane %v10918_v22, 1 }
 0x239   : > { %3141 = vst [vmem:[#allocation2 + $0xc1] sm:$0xff] %v3054_v19  ;;  %8001 = vmatprep.mubr.f32.mxu0 %v10929_v57  ;;  %v3307_v28 = vrot.slane %v10929_v57, 1  ;;  %v2709_v21 = vadd.f32 %v10745_v11, %v2425_v41  ;;  %7919 = vmatmul.mubr.f32.gmra.mxu1 %v10927_v47  ;;  %v2900_v61 = vpop.f32.mrf.mxu0  ;;  %v3308_v38 = vrot.slane %v10931_v12, 1  ;;  %v12669_v19 = vld [vmem:[#allocation137_spill] sm:$0xff]  ;;  %v10951_v58 = vld [vmem:[#allocation2 + $0xb8] sm:$0x3]  ;;  %v2708_v11 = vadd.f32 %v10776_v26, %v2424_v9 }
 0x23a   : > { %8002 = vmatmul.mubr.f32.gmra.mxu0 %v10931_v12  ;;  %v2427_v29 = vadd.f32 %v12669_v19, %v10753_v59  ;;  %3144 = vst [vmem:[#allocation2 + $0xe1] sm:$0xff] %v3057_v14  ;;  %v3056_v63 = vmax.f32 %v3024_v62, 0.0  ;;  %v3027_v37 = vadd.f32 %v10669_v16, %v2988_v25  ;;  %v2987_v32 = vadd.f32 %v2900_v61, %v2706_v52  ;;  %v12670_v41 = vld [vmem:[#allocation139_spill] sm:$0xff]  ;;  %v10966_v62 = vpop.f32.mrf.mxu1  ;;  %v12672_v25 = vld [vmem:[#allocation104_spill] sm:$0xff] }
 0x23b   : > { %v2426_v6 = vadd.f32 %v12670_v41, %v10763_v56  ;;  %v7855_v47 = vpop.f32.mrf.mxu0  ;;  %v10957_v44 = vsel %vm356_vm0, %v3307_v28, %v3308_v38  ;;  %v10960_v42 = vsel %vm356_vm0, %v3308_v38, %v3310_v36  ;;  %v10973_v28 = vadd.f32 %v12672_v25, %v1877_v53  ;;  %v12673_v61 = vld [vmem:[#allocation140_spill] sm:$0xff] }
 0x23c   : > { %12671 = vst [vmem:[#allocation39_spill] sm:$0xff] %v10960_v42  ;;  %v10962_v59 = vld [vmem:[#allocation2 + $0xa8] sm:$0xff]  ;;  %v10964_v14 = vld [vmem:[#allocation2 + $0xb0] sm:$0xff]  ;;  %3143 = vst [vmem:[#allocation2 + $0xd9] sm:$0xff] %v3056_v63  ;;  %v3059_v52 = vmax.f32 %v3027_v37, 0.0  ;;  %v3026_v26 = vadd.f32 %v10669_v16, %v2987_v32  ;;  %v2990_v9 = vadd.f32 %v7855_v47, %v2709_v21  ;;  %7921 = vmatprep.mubr.f32.mxu1 %v10957_v44  ;;  %v3315_v47 = vrot.slane %v10951_v58, 1 }
 0x23d   : > { %8004 = vmatprep.mubr.f32.mxu0 %v10962_v59  ;;  %v3312_v56 = vrot.slane %v10962_v59, 1  ;;  %v2429_v38 = vadd.f32 %v12673_v61, %v10767_v55  ;;  %7922 = vmatmul.mubr.f32.gmra.mxu1 %v10960_v42  ;;  %v2910_v36 = vpop.f32.mrf.mxu0  ;;  %v3313_v19 = vrot.slane %v10964_v14, 1  ;;  %v2711_v21 = vadd.f32 %v10806_v8, %v2427_v29  ;;  %v10983_v32 = vld [vmem:[#allocation2 + $0xd0] sm:$0x3] }
 0x23e   : > { %8005 = vmatmul.mubr.f32.gmra.mxu0 %v10964_v14  ;;  %3146 = vst [vmem:[#allocation2 + $0xf9] sm:$0xff] %v3059_v52  ;;  %v3058_v63 = vmax.f32 %v3026_v26, 0.0  ;;  %v3029_v37 = vadd.f32 %v10669_v16, %v2990_v9  ;;  %v2989_v53 = vadd.f32 %v2910_v36, %v2708_v11  ;;  %v2710_v55 = vadd.f32 %v10837_v33, %v2426_v6  ;;  %v10998_v52 = vpop.f32.mrf.mxu1 }
 0x23f   : > { %v2428_v41 = vadd.f32 %v10567_v10, %v10782_v27  ;;  %v7858_v25 = vpop.f32.mrf.mxu0  ;;  %v10989_v61 = vsel %vm356_vm0, %v3312_v56, %v3313_v19  ;;  %v10992_v42 = vsel %vm356_vm0, %v3313_v19, %v3315_v47  ;;  %v12675_v27 = vld [vmem:[#allocation107_spill] sm:$0xff]  ;;  %v2713_v9 = vadd.f32 %v10870_v43, %v2429_v38  ;;  %v12676_v47 = vld [vmem:[#allocation142_spill] sm:$0xff] }
 0x240   : > { %12674 = vst [vmem:[#allocation40_spill] sm:$0xff] %v10992_v42  ;;  %v10994_v8 = vld [vmem:[#allocation2 + $0xc0] sm:$0xff]  ;;  %v10996_v29 = vld [vmem:[#allocation2 + $0xc8] sm:$0xff]  ;;  %3145 = vst [vmem:[#allocation2 + $0xf1] sm:$0xff] %v3058_v63  ;;  %v3061_v11 = vmax.f32 %v3029_v37, 0.0  ;;  %v3028_v33 = vadd.f32 %v10669_v16, %v2989_v53  ;;  %v2992_v6 = vadd.f32 %v7858_v25, %v2711_v21  ;;  %7924 = vmatprep.mubr.f32.mxu1 %v10989_v61  ;;  %v3320_v19 = vrot.slane %v10983_v32, 1 }
 0x241   : > { %8007 = vmatprep.mubr.f32.mxu0 %v10994_v8  ;;  %v3317_v10 = vrot.slane %v10994_v8, 1  ;;  %v1879_v26 = vadd.f32 %v12675_v27, %v10655_v49  ;;  %7925 = vmatmul.mubr.f32.gmra.mxu1 %v10992_v42  ;;  %v2920_v56 = vpop.f32.mrf.mxu0  ;;  %v3318_v36 = vrot.slane %v10996_v29, 1  ;;  %v2431_v21 = vadd.f32 %v12676_v47, %v10845_v31  ;;  %v11014_v49 = vld [vmem:[#allocation2 + $0xe8] sm:$0x3] }
 0x242   : > { %8008 = vmatmul.mubr.f32.gmra.mxu0 %v10996_v29  ;;  %3148 = vst [vmem:[#allocation2 + $0x111] sm:$0xff] %v3061_v11  ;;  %v3060_v63 = vmax.f32 %v3028_v33, 0.0  ;;  %v3031_v37 = vadd.f32 %v10669_v16, %v2992_v6  ;;  %v2991_v53 = vadd.f32 %v2920_v56, %v2710_v55  ;;  %v2712_v43 = vadd.f32 %v10902_v7, %v2428_v41  ;;  %v2669_v33 = vpop.f32.mrf.mxu1  ;;  %v12679_v41 = vld [vmem:[#allocation106_spill] sm:$0xff] }
 0x243   : > { %v2430_v38 = vadd.f32 %v10587_v17, %v10877_v0  ;;  %v7861_v25 = vpop.f32.mrf.mxu0  ;;  %v11020_v27 = vsel %vm356_vm0, %v3317_v10, %v3318_v36  ;;  %v11023_v42 = vsel %vm356_vm0, %v3318_v36, %v3320_v19  ;;  %v11025_v31 = vld [vmem:[#allocation2 + $0xd8] sm:$0xff]  ;;  %v11027_v11 = vld [vmem:[#allocation2 + $0xe0] sm:$0xff]  ;;  %v12678_v0 = vld [vmem:[#allocation105_spill] sm:$0xff]  ;;  %v2433_v56 = vadd.f32 %v10602_v48, %v10941_v20 }
 0x244   : > { %12677 = vst [vmem:[#allocation45_spill] sm:$0xff] %v11023_v42  ;;  %3147 = vst [vmem:[#allocation2 + $0x109] sm:$0xff] %v3060_v63  ;;  %v3063_v55 = vmax.f32 %v3031_v37, 0.0  ;;  %v3030_v6 = vadd.f32 %v10669_v16, %v2991_v53  ;;  %v2994_v7 = vadd.f32 %v7861_v25, %v2713_v9  ;;  %7927 = vmatprep.mubr.f32.mxu1 %v11020_v27  ;;  %8010 = vmatprep.mubr.f32.mxu0 %v11025_v31 }
 0x245   : > { %v3322_v17 = vrot.slane %v11025_v31, 1  ;;  %v2161_v10 = vadd.f32 %v12679_v41, %v12678_v0  ;;  %7928 = vmatmul.mubr.f32.gmra.mxu1 %v11023_v42  ;;  %v2930_v36 = vpop.f32.mrf.mxu0  ;;  %v3323_v19 = vrot.slane %v11027_v11, 1  ;;  %v3325_v9 = vrot.slane %v11014_v49, 1  ;;  %v11043_v25 = vld [vmem:[#allocation2 + $0x100] sm:$0x3] }
 0x246   : > { %8011 = vmatmul.mubr.f32.gmra.mxu0 %v11027_v11  ;;  %v2715_v47 = vadd.f32 %v10933_v24, %v2431_v21  ;;  %3150 = vst [vmem:[#allocation2 + $0x129] sm:$0xff] %v3063_v55  ;;  %v3062_v63 = vmax.f32 %v3030_v6, 0.0  ;;  %v3033_v37 = vadd.f32 %v10669_v16, %v2994_v7  ;;  %v2993_v53 = vadd.f32 %v2930_v36, %v2712_v43  ;;  %v7790_v55 = vpop.f32.mrf.mxu1 }
 0x247   : > { %v2714_v48 = vadd.f32 %v10966_v62, %v2430_v38  ;;  %v2432_v20 = vadd.f32 %v10618_v51, %v10973_v28  ;;  %v7864_v0 = vpop.f32.mrf.mxu0  ;;  %v11049_v41 = vsel %vm356_vm0, %v3322_v17, %v3323_v19  ;;  %v11052_v42 = vsel %vm356_vm0, %v3323_v19, %v3325_v9  ;;  %v11054_v24 = vld [vmem:[#allocation2 + $0xf0] sm:$0xff]  ;;  %v11056_v21 = vld [vmem:[#allocation2 + $0xf8] sm:$0xff]  ;;  %v12681_v28 = vld [vmem:[#allocation108_spill] sm:$0xff] }
 0x248   : > { %12680 = vst [vmem:[#allocation46_spill] sm:$0xff] %v11052_v42  ;;  %3149 = vst [vmem:[#allocation2 + $0x121] sm:$0xff] %v3062_v63  ;;  %v3065_v43 = vmax.f32 %v3033_v37, 0.0  ;;  %v3032_v6 = vadd.f32 %v10669_v16, %v2993_v53  ;;  %v2996_v62 = vadd.f32 %v7864_v0, %v2715_v47  ;;  %7930 = vmatprep.mubr.f32.mxu1 %v11049_v41  ;;  %8013 = vmatprep.mubr.f32.mxu0 %v11054_v24 }
 0x249   : > { %v3327_v51 = vrot.slane %v11054_v24, 1  ;;  %v2160_v38 = vadd.f32 %v12681_v28, %v1879_v26  ;;  %v2717_v7 = vadd.f32 %v10998_v52, %v2433_v56  ;;  %7931 = vmatmul.mubr.f32.gmra.mxu1 %v11052_v42  ;;  %v2940_v17 = vpop.f32.mrf.mxu0  ;;  %v3328_v36 = vrot.slane %v11056_v21, 1  ;;  %v11070_v53 = vld [vmem:[#allocation2 + $0x118] sm:$0x3] }
 0x24a   : > { %8014 = vmatmul.mubr.f32.gmra.mxu0 %v11056_v21  ;;  %v3330_v19 = vrot.slane %v11043_v25, 1  ;;  %v2435_v9 = vadd.f32 %v10631_v45, %v2161_v10  ;;  %3152 = vst [vmem:[#allocation2 + $0x141] sm:$0xff] %v3065_v43  ;;  %v3064_v47 = vmax.f32 %v3032_v6, 0.0  ;;  %v3035_v63 = vadd.f32 %v10669_v16, %v2996_v62  ;;  %v2679_v10 = vpop.f32.mrf.mxu1 }
 0x24b   : > { %v2995_v37 = vadd.f32 %v2940_v17, %v2714_v48  ;;  %v2716_v26 = vadd.f32 %v2669_v33, %v2432_v20  ;;  %v2434_v52 = vadd.f32 %v10652_v18, %v2160_v38  ;;  %v7867_v56 = vpop.f32.mrf.mxu0  ;;  %v11074_v0 = vsel %vm356_vm0, %v3327_v51, %v3328_v36  ;;  %v11079_v42 = vld [vmem:[#allocation2 + $0x108] sm:$0xff]  ;;  %v11081_v45 = vld [vmem:[#allocation2 + $0x110] sm:$0xff] }
 0x24c   : > { %v11077_v28 = vsel %vm356_vm0, %v3328_v36, %v3330_v19  ;;  %3151 = vst [vmem:[#allocation2 + $0x139] sm:$0xff] %v3064_v47  ;;  %v3067_v43 = vmax.f32 %v3035_v63, 0.0  ;;  %v2998_v6 = vadd.f32 %v7867_v56, %v2717_v7  ;;  %7933 = vmatprep.mubr.f32.mxu1 %v11074_v0  ;;  %8016 = vmatprep.mubr.f32.mxu0 %v11079_v42  ;;  %v3332_v18 = vrot.slane %v11079_v42, 1 }
 0x24d   : > { %12682 = vst [vmem:[#allocation41_spill] sm:$0xff] %v11077_v28  ;;  %v3034_v48 = vadd.f32 %v10669_v16, %v2995_v37  ;;  %7934 = vmatmul.mubr.f32.gmra.mxu1 %v11077_v28  ;;  %v2950_v33 = vpop.f32.mrf.mxu0  ;;  %v3333_v20 = vrot.slane %v11081_v45, 1  ;;  %v3335_v62 = vrot.slane %v11070_v53, 1  ;;  %v2719_v51 = vadd.f32 %v7790_v55, %v2435_v9  ;;  %v11092_v36 = vld [vmem:[#allocation2 + $0x130] sm:$0x3] }
 0x24e   : > { %8017 = vmatmul.mubr.f32.gmra.mxu0 %v11081_v45  ;;  %3154 = vst [vmem:[#allocation2 + $0x159] sm:$0xff] %v3067_v43  ;;  %v3037_v7 = vadd.f32 %v10669_v16, %v2998_v6  ;;  %v2997_v17 = vadd.f32 %v2950_v33, %v2716_v26  ;;  %v2718_v19 = vadd.f32 %v2679_v10, %v2434_v52 }
 0x24f   : > { %v3066_v38 = vmax.f32 %v3034_v48, 0.0  ;;  %v7870_v47 = vpop.f32.mrf.mxu0  ;;  %v11095_v63 = vsel %vm356_vm0, %v3332_v18, %v3333_v20  ;;  %v11098_v37 = vsel %vm356_vm0, %v3333_v20, %v3335_v62  ;;  %v11100_v56 = vld [vmem:[#allocation2 + $0x120] sm:$0xff]  ;;  %v11102_v28 = vld [vmem:[#allocation2 + $0x128] sm:$0xff]  ;;  %v3340_v48 = vrot.slane %v11092_v36, 1 }
 0x250   : > { %12683 = vst [vmem:[#allocation42_spill] sm:$0xff] %v11095_v63  ;;  %12684 = vst [vmem:[#allocation43_spill] sm:$0xff] %v11098_v37  ;;  %v3069_v55 = vmax.f32 %v3037_v7, 0.0  ;;  %v3036_v9 = vadd.f32 %v10669_v16, %v2997_v17  ;;  %v3000_v43 = vadd.f32 %v7870_v47, %v2719_v51  ;;  %7936 = vmatprep.mubr.f32.mxu1 %v11095_v63  ;;  %8019 = vmatprep.mubr.f32.mxu0 %v11100_v56  ;;  %v4541_v63 = vld [vmem:[#allocation3 + $0x270] sm:$0xff] }
 0x251   : > { %3153 = vst [vmem:[#allocation2 + $0x151] sm:$0xff] %v3066_v38  ;;  %v3337_v26 = vrot.slane %v11100_v56, 1  ;;  %7937 = vmatmul.mubr.f32.gmra.mxu1 %v11098_v37  ;;  %v2960_v52 = vpop.f32.mrf.mxu0  ;;  %v3338_v10 = vrot.slane %v11102_v28, 1  ;;  %v11112_v6 = vld [vmem:[#allocation2 + $0x148] sm:$0x3]  ;;  %v4822_v37 = vld [vmem:[#allocation3 + $0x2f0] sm:$0xff] }
 0x252   : > { %8020 = vmatmul.mubr.f32.gmra.mxu0 %v11102_v28  ;;  %3156 = vst [vmem:[#allocation2 + $0x171] sm:$0xff] %v3069_v55  ;;  %v3068_v18 = vmax.f32 %v3036_v9, 0.0  ;;  %v3039_v33 = vadd.f32 %v10669_v16, %v3000_v43  ;;  %v2999_v20 = vadd.f32 %v2960_v52, %v2718_v19  ;;  %v3345_v17 = vrot.slane %v11112_v6, 1 }
 0x253   : > { %v11116_v62 = vsel %vm356_vm0, %v3337_v26, %v3338_v10  ;;  %v11119_v51 = vsel %vm356_vm0, %v3338_v10, %v3340_v48  ;;  %v11121_v38 = vld [vmem:[#allocation2 + $0x138] sm:$0xff]  ;;  %v11123_v7 = vld [vmem:[#allocation2 + $0x140] sm:$0xff] }
 0x254   : > { %12685 = vst [vmem:[#allocation44_spill] sm:$0xff] %v11116_v62  ;;  %12686 = vst [vmem:[#allocation48_spill] sm:$0xff] %v11119_v51  ;;  %v3071_v47 = vmax.f32 %v3039_v33, 0.0  ;;  %v3038_v55 = vadd.f32 %v10669_v16, %v2999_v20  ;;  %7939 = vmatprep.mubr.f32.mxu1 %v11116_v62  ;;  %8022 = vmatprep.mubr.f32.mxu0 %v11121_v38  ;;  %v3342_v19 = vrot.slane %v11121_v38, 1  ;;  %v3343_v9 = vrot.slane %v11123_v7, 1 }
 0x255   : > { %3155 = vst [vmem:[#allocation2 + $0x169] sm:$0xff] %v3068_v18  ;;  %7940 = vmatmul.mubr.f32.gmra.mxu1 %v11119_v51  ;;  %v11133_v43 = vld [vmem:[#allocation2 + $0x160] sm:$0x3]  ;;  %v3862_v62 = vrot.slane %v10774_v4, 2 }
 0x256   : > { %8023 = vmatmul.mubr.f32.gmra.mxu0 %v11123_v7  ;;  %3158 = vst [vmem:[#allocation2 + $0x189] sm:$0xff] %v3071_v47  ;;  %v3070_v26 = vmax.f32 %v3038_v55, 0.0  ;;  %v11136_v52 = vsel %vm356_vm0, %v3342_v19, %v3343_v9  ;;  %v11139_v16 = vsel %vm356_vm0, %v3343_v9, %v3345_v17  ;;  %v3350_v20 = vrot.slane %v11133_v43, 1  ;;  %v8675_v19 = vld [vmem:[#allocation2] sm:$0xff] }
 0x257   : > { %12687 = vst [vmem:[#allocation50_spill] sm:$0xff] %v11136_v52  ;;  %12688 = vst [vmem:[#allocation59_spill] sm:$0xff] %v11139_v16  ;;  %7942 = vmatprep.mubr.f32.mxu1 %v11136_v52  ;;  %v3856_v9 = vrot.slane %v8675_v19, 2  ;;  %v8676_v19 = vld [vmem:[#allocation2 + $0x10] sm:$0x3] }
 0x258   : > { %v11142_v10 = vld [vmem:[#allocation2 + $0x150] sm:$0xff]  ;;  %v11144_v48 = vld [vmem:[#allocation2 + $0x158] sm:$0xff]  ;;  %3157 = vst [vmem:[#allocation2 + $0x181] sm:$0xff] %v3070_v26 }
 0x259   : > { %8025 = vmatprep.mubr.f32.mxu0 %v11142_v10  ;;  %v3347_v18 = vrot.slane %v11142_v10, 1  ;;  %v3348_v33 = vrot.slane %v11144_v48, 1  ;;  %7943 = vmatmul.mubr.f32.gmra.mxu1 %v11139_v16  ;;  %v11152_v17 = vld [vmem:[#allocation2 + $0x178] sm:$0x3] }
 0x25a   : > { %8026 = vmatmul.mubr.f32.gmra.mxu0 %v11144_v48 }
 0x25b   : > { %v11155_v47 = vsel %vm356_vm0, %v3347_v18, %v3348_v33  ;;  %v11158_v55 = vsel %vm356_vm0, %v3348_v33, %v3350_v20  ;;  %v3355_v18 = vrot.slane %v11152_v17, 1 }
 0x25c   : > { %12689 = vst [vmem:[#allocation60_spill] sm:$0xff] %v11155_v47  ;;  %12690 = vst [vmem:[#allocation61_spill] sm:$0xff] %v11158_v55  ;;  %7945 = vmatprep.mubr.f32.mxu1 %v11155_v47  ;;  %v11161_v26 = vld [vmem:[#allocation2 + $0x168] sm:$0xff]  ;;  %v11163_v52 = vld [vmem:[#allocation2 + $0x170] sm:$0xff]  ;;  %v3859_v47 = vrot.slane %v8676_v19, 2 }
 0x25d   : > { %8028 = vmatprep.mubr.f32.mxu0 %v11161_v26  ;;  %v3352_v16 = vrot.slane %v11161_v26, 1  ;;  %v3353_v51 = vrot.slane %v11163_v52, 1  ;;  %7946 = vmatmul.mubr.f32.gmra.mxu1 %v11158_v55  ;;  %v3861_v55 = vrot.slane %v10772_v30, 2 }
 0x25e   : > { %8029 = vmatmul.mubr.f32.gmra.mxu0 %v11163_v52 }
 0x25f   : > { %8143 = vmatprep.mubr.f32.mxu0 %v10772_v30  ;;  %v11173_v33 = vsel %vm356_vm0, %v3352_v16, %v3353_v51  ;;  %v11176_v20 = vsel %vm356_vm0, %v3353_v51, %v3355_v18  ;;  %v3860_v16 = vsel %vm936_vm1, %v3856_v9, %v3859_v47  ;;  %v8677_v51 = vld [vmem:[#allocation3 + $0x2f8] sm:$0xff]  ;;  %v7985_v18 = vpop.f32.mrf.mxu0  ;;  %v3866_v30 = vrot.slane %v10802_v60, 2 }
 0x260   : > { %12691 = vst [vmem:[#allocation62_spill] sm:$0xff] %v11173_v33  ;;  %12692 = vst [vmem:[#allocation63_spill] sm:$0xff] %v11176_v20  ;;  %7948 = vmatprep.mubr.f32.mxu1 %v11173_v33  ;;  %v8678_v47 = vld [vmem:[#allocation3 + $0x278] sm:$0xff] }
 0x261   : > { %7949 = vmatmul.mubr.f32.gmra.mxu1 %v11176_v20  ;;  %v11188_v20 = vsel %vm936_vm1, %v3861_v55, %v3862_v62  ;;  %v4540_v55 = vld [vmem:[#allocation3 + $0x268] sm:$0xff] }
 0x262   : > { %8144 = vmatmul.mubr.f32.vlgmr.msra.gmra.mxu0 %v10774_v4  ;;  %8063 = vmatprep.mubr.f32.mxu1 %v3856_v9  ;;  %v3867_v4 = vrot.slane %v10804_v5, 2  ;;  %v3864_v9 = vrot.slane %v10760_v39, 2  ;;  %v3872_v39 = vrot.slane %v10835_v23, 2 }
 0x263   : > { %8146 = vmatprep.mubr.f32.mxu0 %v10802_v60  ;;  %8272 = vmatpush3.msra.mxu0 %v8677_v51  ;;  %v7905_v19 = vpop.f32.mrf.mxu1  ;;  %v4821_v51 = vld [vmem:[#allocation3 + $0x2e8] sm:$0xff] }
 0x264   : > { %8273 = vmatprep.subr.mxu0 %v4822_v37  ;;  %v11185_v33 = vadd.f32 %v7985_v18, %v7905_v19  ;;  %v11201_v60 = vsel %vm936_vm1, %v3866_v30, %v3867_v4  ;;  %v4820_v18 = vld [vmem:[#allocation3 + $0x2e0] sm:$0xff]  ;;  %v3874_v19 = vrot.slane %v10822_v54, 2  ;;  %v3882_v54 = vrot.slane %v10900_v34, 2 }
 0x265   : > { %8064 = vmatmul.mubr.f32.vlgmr.msra.gmra.mxu1 %v3860_v16  ;;  %v11197_v16 = vsel %vm936_vm1, %v3862_v62, %v3864_v9  ;;  %8274 = vmatpush3.msra.mxu0 %v4822_v37  ;;  %v4539_v62 = vld [vmem:[#allocation3 + $0x260] sm:$0xff]  ;;  %v3879_v9 = vrot.slane %v10855_v13, 2  ;;  %v3887_v13 = vrot.slane %v10931_v12, 2 }
 0x266   : > { %8147 = vmatmul.mubr.f32.gmra.mxu0 %v10804_v5  ;;  %8066 = vmatprep.mubr.f32.mxu1 %v11188_v20  ;;  %v3871_v5 = vrot.slane %v10833_v35, 2  ;;  %v11223_v30 = vsel %vm936_vm1, %v3872_v39, %v3874_v19  ;;  %v4535_v19 = vld [vmem:[#allocation3 + $0x240] sm:$0xff] }
 0x267   : > { %8192 = vmatpush3.msra.mxu1 %v8678_v47  ;;  %8149 = vmatprep.mubr.f32.mxu0 %v10833_v35  ;;  %v4819_v47 = vld [vmem:[#allocation3 + $0x2d8] sm:$0xff] }
 0x268   : > { %8193 = vmatprep.subr.mxu1 %v4541_v63  ;;  %8275 = vmatprep.subr.mxu0 %v4821_v51  ;;  %v11214_v35 = vsel %vm936_vm1, %v3871_v5, %v3872_v39  ;;  %v4818_v5 = vld [vmem:[#allocation3 + $0x2d0] sm:$0xff]  ;;  %v3884_v39 = vrot.slane %v10887_v2, 2  ;;  %v3892_v2 = vrot.slane %v10964_v14, 2 }
 0x269   : > { %8194 = vmatpush3.msra.mxu1 %v4541_v63  ;;  %v3869_v63 = vrot.slane %v10791_v15, 2  ;;  %8276 = vmatpush3.msra.mxu0 %v4821_v51  ;;  %v3877_v15 = vrot.slane %v10868_v1, 2  ;;  %v4537_v51 = vld [vmem:[#allocation3 + $0x250] sm:$0xff] }
 0x26a   : > { %8067 = vmatmul.mubr.f32.gmra.mxu1 %v11197_v16  ;;  %8150 = vmatmul.mubr.f32.gmra.mxu0 %v10835_v23  ;;  %v3876_v23 = vrot.slane %v10866_v46, 2 }
 0x26b   : > { %8069 = vmatprep.mubr.f32.mxu1 %v11201_v60  ;;  %8152 = vmatprep.mubr.f32.mxu0 %v10866_v46  ;;  %v11210_v37 = vsel %vm936_vm1, %v3867_v4, %v3869_v63  ;;  %v4538_v4 = vld [vmem:[#allocation3 + $0x258] sm:$0xff]  ;;  %v11249_v63 = vsel %vm936_vm1, %v3882_v54, %v3884_v39  ;;  %v3904_v39 = vrot.slane %v11014_v49, 2  ;;  %v3912_v49 = vrot.slane %v11081_v45, 2 }
 0x26c   : > { %8195 = vmatprep.subr.mxu1 %v4540_v55  ;;  %8277 = vmatprep.subr.mxu0 %v4820_v18  ;;  %v11227_v46 = vsel %vm936_vm1, %v3876_v23, %v3877_v15  ;;  %v3889_v23 = vrot.slane %v10918_v22, 2  ;;  %v3897_v22 = vrot.slane %v10996_v29, 2 }
 0x26d   : > { %8196 = vmatpush3.msra.mxu1 %v4540_v55  ;;  %8278 = vmatpush3.msra.mxu0 %v4820_v18  ;;  %v11236_v55 = vsel %vm936_vm1, %v3877_v15, %v3879_v9  ;;  %v4817_v18 = vld [vmem:[#allocation3 + $0x2c8] sm:$0xff]  ;;  %v4815_v9 = vld [vmem:[#allocation3 + $0x2b8] sm:$0xff] }
 0x26e   : > { %8070 = vmatmul.mubr.f32.gmra.mxu1 %v11210_v37  ;;  %8153 = vmatmul.mubr.f32.gmra.mxu0 %v10868_v1  ;;  %v3881_v1 = vrot.slane %v10898_v40, 2  ;;  %v11262_v15 = vsel %vm936_vm1, %v3887_v13, %v3889_v23 }
 0x26f   : > { %8072 = vmatprep.mubr.f32.mxu1 %v11214_v35  ;;  %8155 = vmatprep.mubr.f32.mxu0 %v10898_v40 }
 0x270   : > { %8197 = vmatprep.subr.mxu1 %v4539_v62  ;;  %8279 = vmatprep.subr.mxu0 %v4819_v47  ;;  %v11240_v40 = vsel %vm936_vm1, %v3881_v1, %v3882_v54  ;;  %v4534_v54 = vld [vmem:[#allocation3 + $0x238] sm:$0xff] }
 0x271   : > { %8198 = vmatpush3.msra.mxu1 %v4539_v62  ;;  %8280 = vmatpush3.msra.mxu0 %v4819_v47  ;;  %v4536_v62 = vld [vmem:[#allocation3 + $0x248] sm:$0xff]  ;;  %v3894_v47 = vrot.slane %v10951_v58, 2  ;;  %v3902_v58 = vrot.slane %v11027_v11, 2 }
 0x272   : > { %8073 = vmatmul.mubr.f32.gmra.mxu1 %v11223_v30  ;;  %8156 = vmatmul.mubr.f32.gmra.mxu0 %v10900_v34  ;;  %v3886_v34 = vrot.slane %v10929_v57, 2 }
 0x273   : > { %8075 = vmatprep.mubr.f32.mxu1 %v11227_v46  ;;  %8158 = vmatprep.mubr.f32.mxu0 %v10929_v57  ;;  %v11275_v1 = vsel %vm936_vm1, %v3892_v2, %v3894_v47  ;;  %v4530_v47 = vld [vmem:[#allocation3 + $0x218] sm:$0xff] }
 0x274   : > { %8199 = vmatprep.subr.mxu1 %v4538_v4  ;;  %8281 = vmatprep.subr.mxu0 %v4818_v5  ;;  %v11253_v57 = vsel %vm936_vm1, %v3886_v34, %v3887_v13  ;;  %v4533_v34 = vld [vmem:[#allocation3 + $0x230] sm:$0xff] }
 0x275   : > { %8200 = vmatpush3.msra.mxu1 %v4538_v4  ;;  %8282 = vmatpush3.msra.mxu0 %v4818_v5  ;;  %v4816_v4 = vld [vmem:[#allocation3 + $0x2c0] sm:$0xff]  ;;  %v4814_v13 = vld [vmem:[#allocation3 + $0x2b0] sm:$0xff] }
 0x276   : > { %8076 = vmatmul.mubr.f32.gmra.mxu1 %v11236_v55  ;;  %8159 = vmatmul.mubr.f32.gmra.mxu0 %v10931_v12  ;;  %v3891_v12 = vrot.slane %v10962_v59, 2 }
 0x277   : > { %8078 = vmatprep.mubr.f32.mxu1 %v11240_v40  ;;  %8161 = vmatprep.mubr.f32.mxu0 %v10962_v59 }
 0x278   : > { %8201 = vmatprep.subr.mxu1 %v4537_v51  ;;  %8283 = vmatprep.subr.mxu0 %v4817_v18  ;;  %v11266_v59 = vsel %vm936_vm1, %v3891_v12, %v3892_v2  ;;  %v4813_v12 = vld [vmem:[#allocation3 + $0x2a8] sm:$0xff]  ;;  %v3909_v2 = vrot.slane %v11043_v25, 2  ;;  %v3917_v25 = vrot.slane %v11102_v28, 2 }
 0x279   : > { %8202 = vmatpush3.msra.mxu1 %v4537_v51  ;;  %8284 = vmatpush3.msra.mxu0 %v4817_v18  ;;  %v3899_v51 = vrot.slane %v10983_v32, 2  ;;  %v3907_v32 = vrot.slane %v11056_v21, 2  ;;  %v4532_v18 = vld [vmem:[#allocation3 + $0x228] sm:$0xff] }
 0x27a   : > { %8079 = vmatmul.mubr.f32.gmra.mxu1 %v11249_v63  ;;  %8162 = vmatmul.mubr.f32.gmra.mxu0 %v10964_v14  ;;  %v3896_v14 = vrot.slane %v10994_v8, 2 }
 0x27b   : > { %8081 = vmatprep.mubr.f32.mxu1 %v11253_v57  ;;  %8164 = vmatprep.mubr.f32.mxu0 %v10994_v8  ;;  %v11288_v5 = vsel %vm936_vm1, %v3897_v22, %v3899_v51  ;;  %v11314_v23 = vsel %vm936_vm1, %v3907_v32, %v3909_v2  ;;  %v4810_v51 = vld [vmem:[#allocation3 + $0x290] sm:$0xff]  ;;  %v4527_v2 = vld [vmem:[#allocation3 + $0x200] sm:$0xff] }
 0x27c   : > { %8203 = vmatprep.subr.mxu1 %v4536_v62  ;;  %8285 = vmatprep.subr.mxu0 %v4816_v4  ;;  %v11279_v8 = vsel %vm936_vm1, %v3896_v14, %v3897_v22  ;;  %v3914_v14 = vrot.slane %v11070_v53, 2  ;;  %v3922_v53 = vrot.slane %v11123_v7, 2 }
 0x27d   : > { %8204 = vmatpush3.msra.mxu1 %v4536_v62  ;;  %8286 = vmatpush3.msra.mxu0 %v4816_v4  ;;  %v11301_v62 = vsel %vm936_vm1, %v3902_v58, %v3904_v39  ;;  %v4812_v4 = vld [vmem:[#allocation3 + $0x2a0] sm:$0xff]  ;;  %v3932_v39 = vrot.slane %v11163_v52, 2 }
 0x27e   : > { %8082 = vmatmul.mubr.f32.gmra.mxu1 %v11262_v15  ;;  %8165 = vmatmul.mubr.f32.gmra.mxu0 %v10996_v29  ;;  %v3901_v29 = vrot.slane %v11025_v31, 2  ;;  %v11327_v22 = vsel %vm936_vm1, %v3912_v49, %v3914_v14  ;;  %v12703_v14 = vld [vmem:[#allocation53_spill] sm:$0xff] }
 0x27f   : > { %8084 = vmatprep.mubr.f32.mxu1 %v11266_v59  ;;  %8167 = vmatprep.mubr.f32.mxu0 %v11025_v31 }
 0x280   : > { %8205 = vmatprep.subr.mxu1 %v4535_v19  ;;  %8287 = vmatprep.subr.mxu0 %v4815_v9  ;;  %v11292_v31 = vsel %vm936_vm1, %v3901_v29, %v3902_v58  ;;  %v4529_v58 = vld [vmem:[#allocation3 + $0x210] sm:$0xff] }
 0x281   : > { %8206 = vmatpush3.msra.mxu1 %v4535_v19  ;;  %8288 = vmatpush3.msra.mxu0 %v4815_v9  ;;  %v4531_v19 = vld [vmem:[#allocation3 + $0x220] sm:$0xff]  ;;  %v3919_v9 = vrot.slane %v11092_v36, 2  ;;  %v3927_v36 = vrot.slane %v11144_v48, 2 }
 0x282   : > { %8085 = vmatmul.mubr.f32.gmra.mxu1 %v11275_v1  ;;  %8168 = vmatmul.mubr.f32.gmra.mxu0 %v11027_v11  ;;  %v3906_v11 = vrot.slane %v11054_v24, 2 }
 0x283   : > { %8087 = vmatprep.mubr.f32.mxu1 %v11279_v8  ;;  %8170 = vmatprep.mubr.f32.mxu0 %v11054_v24  ;;  %v11340_v29 = vsel %vm936_vm1, %v3917_v25, %v3919_v9  ;;  %v12706_v9 = vld [vmem:[#allocation56_spill] sm:$0xff] }
 0x284   : > { %8207 = vmatprep.subr.mxu1 %v4534_v54  ;;  %8289 = vmatprep.subr.mxu0 %v4814_v13  ;;  %v11305_v24 = vsel %vm936_vm1, %v3906_v11, %v3907_v32  ;;  %12694 = vst [vmem:[#allocation65_spill] sm:$0xff] %v11340_v29  ;;  %v4528_v11 = vld [vmem:[#allocation3 + $0x208] sm:$0xff] }
 0x285   : > { %8208 = vmatpush3.msra.mxu1 %v4534_v54  ;;  %8290 = vmatpush3.msra.mxu0 %v4814_v13  ;;  %v4811_v54 = vld [vmem:[#allocation3 + $0x298] sm:$0xff]  ;;  %v4809_v32 = vld [vmem:[#allocation3 + $0x288] sm:$0xff] }
 0x286   : > { %8088 = vmatmul.mubr.f32.gmra.mxu1 %v11288_v5  ;;  %8171 = vmatmul.mubr.f32.gmra.mxu0 %v11056_v21  ;;  %v3911_v21 = vrot.slane %v11079_v42, 2 }
 0x287   : > { %8090 = vmatprep.mubr.f32.mxu1 %v11292_v31  ;;  %8173 = vmatprep.mubr.f32.mxu0 %v11079_v42 }
 0x288   : > { %8209 = vmatprep.subr.mxu1 %v4533_v34  ;;  %8291 = vmatprep.subr.mxu0 %v4813_v12  ;;  %v11318_v42 = vsel %vm936_vm1, %v3911_v21, %v3912_v49  ;;  %v11370_v21 = vld [vmem:[#allocation2 + $0x188] sm:$0xff]  ;;  %v4808_v49 = vld [vmem:[#allocation3 + $0x280] sm:$0xff] }
 0x289   : > { %8210 = vmatpush3.msra.mxu1 %v4533_v34  ;;  %8292 = vmatpush3.msra.mxu0 %v4813_v12  ;;  %v3924_v34 = vrot.slane %v11112_v6, 2  ;;  %v3931_v6 = vrot.slane %v11161_v26, 2 }
 0x28a   : > { %8091 = vmatmul.mubr.f32.gmra.mxu1 %v11301_v62  ;;  %8174 = vmatmul.mubr.f32.gmra.mxu0 %v11081_v45  ;;  %v3916_v45 = vrot.slane %v11100_v56, 2 }
 0x28b   : > { %8093 = vmatprep.mubr.f32.mxu1 %v11305_v24  ;;  %8176 = vmatprep.mubr.f32.mxu0 %v11100_v56  ;;  %v11353_v13 = vsel %vm936_vm1, %v3922_v53, %v3924_v34  ;;  %v5376_v34 = vld [vmem:[#allocation3 + $0x3d0] sm:$0xff] }
 0x28c   : > { %8211 = vmatprep.subr.mxu1 %v4532_v18  ;;  %8293 = vmatprep.subr.mxu0 %v4812_v4  ;;  %v11331_v56 = vsel %vm936_vm1, %v3916_v45, %v3917_v25  ;;  %12696 = vst [vmem:[#allocation110_spill] sm:$0xff] %v11353_v13  ;;  %v12701_v45 = vld [vmem:[#allocation51_spill] sm:$0xff]  ;;  %v5379_v25 = vld [vmem:[#allocation3 + $0x3e8] sm:$0xff] }
 0x28d   : > { %8212 = vmatpush3.msra.mxu1 %v4532_v18  ;;  %8294 = vmatpush3.msra.mxu0 %v4812_v4  ;;  %12693 = vst [vmem:[#allocation64_spill] sm:$0xff] %v11331_v56  ;;  %v3929_v18 = vrot.slane %v11133_v43, 2  ;;  %v3934_v43 = vrot.slane %v11152_v17, 2  ;;  %v5381_v4 = vld [vmem:[#allocation3 + $0x3f8] sm:$0xff]  ;;  %v5096_v17 = vld [vmem:[#allocation3 + $0x370] sm:$0xff] }
 0x28e   : > { %8094 = vmatmul.mubr.f32.gmra.mxu1 %v11314_v23  ;;  %8177 = vmatmul.mubr.f32.gmra.mxu0 %v11102_v28  ;;  %v3921_v28 = vrot.slane %v11121_v38, 2 }
 0x28f   : > { %8096 = vmatprep.mubr.f32.mxu1 %v11318_v42  ;;  %8179 = vmatprep.mubr.f32.mxu0 %v11121_v38  ;;  %v11368_v12 = vsel %vm936_vm1, %v3927_v36, %v3929_v18  ;;  %v12710_v18 = vld [vmem:[#allocation40_spill] sm:$0xff] }
 0x290   : > { %8213 = vmatprep.subr.mxu1 %v4531_v19  ;;  %8295 = vmatprep.subr.mxu0 %v4811_v54  ;;  %v11344_v38 = vsel %vm936_vm1, %v3921_v28, %v3922_v53  ;;  %12698 = vst [vmem:[#allocation67_spill] sm:$0xff] %v11368_v12  ;;  %v12705_v28 = vld [vmem:[#allocation55_spill] sm:$0xff]  ;;  %v5093_v53 = vld [vmem:[#allocation3 + $0x358] sm:$0xff] }
 0x291   : > { %8214 = vmatpush3.msra.mxu1 %v4531_v19  ;;  %8296 = vmatpush3.msra.mxu0 %v4811_v54  ;;  %12695 = vst [vmem:[#allocation71_spill] sm:$0xff] %v11344_v38  ;;  %v5097_v19 = vld [vmem:[#allocation3 + $0x378] sm:$0xff]  ;;  %v5378_v54 = vld [vmem:[#allocation3 + $0x3e0] sm:$0xff] }
 0x292   : > { %8097 = vmatmul.mubr.f32.gmra.mxu1 %v11327_v22  ;;  %8180 = vmatmul.mubr.f32.gmra.mxu0 %v11123_v7  ;;  %v3926_v7 = vrot.slane %v11142_v10, 2 }
 0x293   : > { %8099 = vmatprep.mubr.f32.mxu1 %v11331_v56  ;;  %8182 = vmatprep.mubr.f32.mxu0 %v11142_v10 }
 0x294   : > { %8215 = vmatprep.subr.mxu1 %v4530_v47  ;;  %8297 = vmatprep.subr.mxu0 %v4810_v51  ;;  %v11357_v10 = vsel %vm936_vm1, %v3926_v7, %v3927_v36  ;;  %v5092_v7 = vld [vmem:[#allocation3 + $0x350] sm:$0xff]  ;;  %v12708_v36 = vld [vmem:[#allocation58_spill] sm:$0xff] }
 0x295   : > { %8216 = vmatpush3.msra.mxu1 %v4530_v47  ;;  %8298 = vmatpush3.msra.mxu0 %v4810_v51  ;;  %12697 = vst [vmem:[#allocation66_spill] sm:$0xff] %v11357_v10  ;;  %v12704_v47 = vld [vmem:[#allocation54_spill] sm:$0xff]  ;;  %v12707_v51 = vld [vmem:[#allocation57_spill] sm:$0xff] }
 0x296   : > { %8100 = vmatmul.mubr.f32.gmra.mxu1 %v11340_v29  ;;  %8183 = vmatmul.mubr.f32.gmra.mxu0 %v11144_v48  ;;  %v11360_v48 = vld [vmem:[#allocation2 + $0x180] sm:$0xff] }
 0x297   : > { %8102 = vmatprep.mubr.f32.mxu1 %v11344_v38  ;;  %8185 = vmatprep.mubr.f32.mxu0 %v11161_v26  ;;  %v11381_v26 = vsel %vm936_vm1, %v3932_v39, %v3934_v43  ;;  %v12711_v43 = vld [vmem:[#allocation45_spill] sm:$0xff] }
 0x298   : > { %8217 = vmatprep.subr.mxu1 %v4529_v58  ;;  %8299 = vmatprep.subr.mxu0 %v4809_v32  ;;  %12700 = vst [vmem:[#allocation68_spill] sm:$0xff] %v11381_v26 }
 0x299   : > { %8218 = vmatpush3.msra.mxu1 %v4529_v58  ;;  %8300 = vmatpush3.msra.mxu0 %v4809_v32  ;;  %v5377_v58 = vld [vmem:[#allocation3 + $0x3d8] sm:$0xff]  ;;  %v12709_v32 = vld [vmem:[#allocation39_spill] sm:$0xff] }
 0x29a   : > { %8103 = vmatmul.mubr.f32.gmra.mxu1 %v11353_v13  ;;  %8186 = vmatmul.mubr.f32.gmra.mxu0 %v11163_v52  ;;  %v11374_v52 = vsel %vm936_vm1, %v3931_v6, %v3932_v39  ;;  %v5375_v6 = vld [vmem:[#allocation3 + $0x3c8] sm:$0xff]  ;;  %v5090_v39 = vld [vmem:[#allocation3 + $0x340] sm:$0xff] }
 0x29b   : > { %8105 = vmatprep.mubr.f32.mxu1 %v11357_v10  ;;  %8188 = vmatprep.mubr.f32.mxu0 %v11360_v48  ;;  %12699 = vst [vmem:[#allocation109_spill] sm:$0xff] %v11374_v52 }
 0x29c   : > { %8219 = vmatprep.subr.mxu1 %v4528_v11  ;;  %8301 = vmatprep.subr.mxu0 %v4808_v49 }
 0x29d   : > { %8220 = vmatpush3.msra.mxu1 %v4528_v11  ;;  %8302 = vmatpush3.msra.mxu0 %v4808_v49  ;;  %v5091_v11 = vld [vmem:[#allocation3 + $0x348] sm:$0xff]  ;;  %v5374_v49 = vld [vmem:[#allocation3 + $0x3c0] sm:$0xff] }
 0x29e   : > { %8106 = vmatmul.mubr.f32.gmra.mxu1 %v11368_v12  ;;  %8189 = vmatmul.mubr.f32.gmra.mxu0 %v11370_v21 }
 0x29f   : > { %8108 = vmatprep.mubr.f32.mxu1 %v11374_v52  ;;  %8303 = vmatprep.mubr.f32.mxu0 %v11188_v20  ;;  %v5380_v20 = vld [vmem:[#allocation3 + $0x3f0] sm:$0xff] }
 0x2a0   : > { %8221 = vmatprep.subr.mxu1 %v4527_v2  ;;  %8431 = vmatprep.subr.mxu0 %v5381_v4 }
 0x2a1   : > { %8222 = vmatpush3.msra.mxu1 %v4527_v2  ;;  %v5089_v2 = vld [vmem:[#allocation3 + $0x338] sm:$0xff] }
 0x2a2   : > { %8109 = vmatmul.mubr.f32.gmra.mxu1 %v11381_v26  ;;  %8304 = vmatmul.mubr.f32.vlgmr.msra.gmra.mxu0 %v11197_v16  ;;  %v5095_v16 = vld [vmem:[#allocation3 + $0x368] sm:$0xff] }
 0x2a3   : > { %8223 = vmatprep.mubr.f32.mxu1 %v10797_v3  ;;  %8306 = vmatprep.mubr.f32.mxu0 %v11201_v60  ;;  %v12702_v3 = vld [vmem:[#allocation52_spill] sm:$0xff] }
 0x2a4   : > { %8351 = vmatprep.subr.mxu1 %v5097_v19  ;;  %8432 = vmatpush3.msra.mxu0 %v5381_v4  ;;  %v5088_v4 = vld [vmem:[#allocation3 + $0x330] sm:$0xff] }
 0x2a5   : > { %8433 = vmatprep.subr.mxu0 %v5380_v20 }
 0x2a6   : > { %8224 = vmatmul.mubr.f32.vlgmr.msra.gmra.mxu1 %v10800_v50  ;;  %8307 = vmatmul.mubr.f32.gmra.mxu0 %v11210_v37  ;;  %v5094_v50 = vld [vmem:[#allocation3 + $0x360] sm:$0xff] }
 0x2a7   : > { %8226 = vmatprep.mubr.f32.mxu1 %v12701_v45  ;;  %8352 = vmatpush3.msra.mxu1 %v5097_v19  ;;  %v5373_v19 = vld [vmem:[#allocation3 + $0x3b8] sm:$0xff] }
 0x2a8   : > { %8309 = vmatprep.mubr.f32.mxu0 %v11214_v35  ;;  %8353 = vmatprep.subr.mxu1 %v5096_v17 }
 0x2a9   : > { %8354 = vmatpush3.msra.mxu1 %v5096_v17  ;;  %8434 = vmatpush3.msra.mxu0 %v5380_v20  ;;  %v12712_v17 = vld [vmem:[#allocation46_spill] sm:$0xff]  ;;  %v5372_v20 = vld [vmem:[#allocation3 + $0x3b0] sm:$0xff] }
 0x2aa   : > { %8227 = vmatmul.mubr.f32.gmra.mxu1 %v12702_v3  ;;  %8310 = vmatmul.mubr.f32.gmra.mxu0 %v11223_v30 }
 0x2ab   : > { %8229 = vmatprep.mubr.f32.mxu1 %v12703_v14  ;;  %8312 = vmatprep.mubr.f32.mxu0 %v11227_v46 }
 0x2ac   : > { %8355 = vmatprep.subr.mxu1 %v5095_v16  ;;  %8435 = vmatprep.subr.mxu0 %v5379_v25 }
 0x2ad   : > { %8356 = vmatpush3.msra.mxu1 %v5095_v16  ;;  %8436 = vmatpush3.msra.mxu0 %v5379_v25  ;;  %v5087_v16 = vld [vmem:[#allocation3 + $0x328] sm:$0xff]  ;;  %v12713_v25 = vld [vmem:[#allocation41_spill] sm:$0xff] }
 0x2ae   : > { %8230 = vmatmul.mubr.f32.gmra.mxu1 %v12704_v47  ;;  %8313 = vmatmul.mubr.f32.gmra.mxu0 %v11236_v55 }
 0x2af   : > { %8232 = vmatprep.mubr.f32.mxu1 %v12705_v28  ;;  %8315 = vmatprep.mubr.f32.mxu0 %v11240_v40 }
 0x2b0   : > { %8357 = vmatprep.subr.mxu1 %v5094_v50  ;;  %8437 = vmatprep.subr.mxu0 %v5378_v54 }
 0x2b1   : > { %8358 = vmatpush3.msra.mxu1 %v5094_v50  ;;  %8438 = vmatpush3.msra.mxu0 %v5378_v54  ;;  %v5371_v50 = vld [vmem:[#allocation3 + $0x3a8] sm:$0xff] }
 0x2b2   : > { %8233 = vmatmul.mubr.f32.gmra.mxu1 %v12706_v9  ;;  %8316 = vmatmul.mubr.f32.gmra.mxu0 %v11249_v63  ;;  %v12714_v54 = vld [vmem:[#allocation42_spill] sm:$0xff] }
 0x2b3   : > { %8235 = vmatprep.mubr.f32.mxu1 %v12707_v51  ;;  %8318 = vmatprep.mubr.f32.mxu0 %v11253_v57 }
 0x2b4   : > { %8359 = vmatprep.subr.mxu1 %v5093_v53  ;;  %8439 = vmatprep.subr.mxu0 %v5377_v58 }
 0x2b5   : > { %8360 = vmatpush3.msra.mxu1 %v5093_v53  ;;  %8440 = vmatpush3.msra.mxu0 %v5377_v58  ;;  %v5086_v53 = vld [vmem:[#allocation3 + $0x320] sm:$0xff]  ;;  %v12715_v58 = vld [vmem:[#allocation43_spill] sm:$0xff] }
 0x2b6   : > { %8236 = vmatmul.mubr.f32.gmra.mxu1 %v12708_v36  ;;  %8319 = vmatmul.mubr.f32.gmra.mxu0 %v11262_v15 }
 0x2b7   : > { %8238 = vmatprep.mubr.f32.mxu1 %v10957_v44  ;;  %8321 = vmatprep.mubr.f32.mxu0 %v11266_v59 }
 0x2b8   : > { %8361 = vmatprep.subr.mxu1 %v5092_v7  ;;  %8441 = vmatprep.subr.mxu0 %v5376_v34 }
 0x2b9   : > { %8362 = vmatpush3.msra.mxu1 %v5092_v7  ;;  %8442 = vmatpush3.msra.mxu0 %v5376_v34  ;;  %v5370_v7 = vld [vmem:[#allocation3 + $0x3a0] sm:$0xff]  ;;  %v12716_v34 = vld [vmem:[#allocation44_spill] sm:$0xff] }
 0x2ba   : > { %8239 = vmatmul.mubr.f32.gmra.mxu1 %v12709_v32  ;;  %8322 = vmatmul.mubr.f32.gmra.mxu0 %v11275_v1 }
 0x2bb   : > { %8241 = vmatprep.mubr.f32.mxu1 %v10989_v61  ;;  %8324 = vmatprep.mubr.f32.mxu0 %v11279_v8 }
 0x2bc   : > { %8363 = vmatprep.subr.mxu1 %v5091_v11  ;;  %8443 = vmatprep.subr.mxu0 %v5375_v6 }
 0x2bd   : > { %8364 = vmatpush3.msra.mxu1 %v5091_v11  ;;  %8444 = vmatpush3.msra.mxu0 %v5375_v6  ;;  %v5085_v11 = vld [vmem:[#allocation3 + $0x318] sm:$0xff] }
 0x2be   : > { %8242 = vmatmul.mubr.f32.gmra.mxu1 %v12710_v18  ;;  %8325 = vmatmul.mubr.f32.gmra.mxu0 %v11288_v5  ;;  %v12717_v6 = vld [vmem:[#allocation48_spill] sm:$0xff] }
 0x2bf   : > { %8244 = vmatprep.mubr.f32.mxu1 %v11020_v27  ;;  %8327 = vmatprep.mubr.f32.mxu0 %v11292_v31 }
 0x2c0   : > { %8365 = vmatprep.subr.mxu1 %v5090_v39  ;;  %8445 = vmatprep.subr.mxu0 %v5374_v49 }
 0x2c1   : > { %8366 = vmatpush3.msra.mxu1 %v5090_v39  ;;  %8446 = vmatpush3.msra.mxu0 %v5374_v49  ;;  %v5369_v39 = vld [vmem:[#allocation3 + $0x398] sm:$0xff]  ;;  %v12718_v49 = vld [vmem:[#allocation50_spill] sm:$0xff] }
 0x2c2   : > { %8245 = vmatmul.mubr.f32.gmra.mxu1 %v12711_v43  ;;  %8328 = vmatmul.mubr.f32.gmra.mxu0 %v11301_v62 }
 0x2c3   : > { %8247 = vmatprep.mubr.f32.mxu1 %v11049_v41  ;;  %8330 = vmatprep.mubr.f32.mxu0 %v11305_v24 }
 0x2c4   : > { %8367 = vmatprep.subr.mxu1 %v5089_v2  ;;  %8447 = vmatprep.subr.mxu0 %v5373_v19 }
 0x2c5   : > { %8368 = vmatpush3.msra.mxu1 %v5089_v2  ;;  %8448 = vmatpush3.msra.mxu0 %v5373_v19  ;;  %v5084_v2 = vld [vmem:[#allocation3 + $0x310] sm:$0xff] }
 0x2c6   : > { %8248 = vmatmul.mubr.f32.gmra.mxu1 %v12712_v17  ;;  %8331 = vmatmul.mubr.f32.gmra.mxu0 %v11314_v23  ;;  %v12719_v19 = vld [vmem:[#allocation59_spill] sm:$0xff] }
 0x2c7   : > { %8250 = vmatprep.mubr.f32.mxu1 %v11074_v0  ;;  %8333 = vmatprep.mubr.f32.mxu0 %v11318_v42 }
 0x2c8   : > { %8369 = vmatprep.subr.mxu1 %v5088_v4  ;;  %8449 = vmatprep.subr.mxu0 %v5372_v20 }
 0x2c9   : > { %8370 = vmatpush3.msra.mxu1 %v5088_v4  ;;  %8450 = vmatpush3.msra.mxu0 %v5372_v20  ;;  %v4800_v4 = vrot.slane %v11360_v48, 2  ;;  %v4801_v20 = vrot.slane %v11370_v21, 2 }
 0x2ca   : > { %8251 = vmatmul.mubr.f32.gmra.mxu1 %v12713_v25  ;;  %8334 = vmatmul.mubr.f32.gmra.mxu0 %v11327_v22 }
 0x2cb   : > { %8253 = vmatprep.mubr.f32.mxu1 %v12714_v54  ;;  %8336 = vmatprep.mubr.f32.mxu0 %v11331_v56  ;;  %v5082_v56 = vld [vmem:[#allocation3 + $0x300] sm:$0xff] }
 0x2cc   : > { %8371 = vmatprep.subr.mxu1 %v5087_v16  ;;  %8451 = vmatprep.subr.mxu0 %v5371_v50 }
 0x2cd   : > { %8372 = vmatpush3.msra.mxu1 %v5087_v16  ;;  %8452 = vmatpush3.msra.mxu0 %v5371_v50  ;;  %v5368_v16 = vld [vmem:[#allocation3 + $0x390] sm:$0xff]  ;;  %v12720_v50 = vld [vmem:[#allocation60_spill] sm:$0xff] }
 0x2ce   : > { %8254 = vmatmul.mubr.f32.gmra.mxu1 %v12715_v58  ;;  %8337 = vmatmul.mubr.f32.gmra.mxu0 %v11340_v29  ;;  %v12723_v29 = vld [vmem:[#allocation62_spill] sm:$0xff] }
 0x2cf   : > { %8256 = vmatprep.mubr.f32.mxu1 %v12716_v34  ;;  %8339 = vmatprep.mubr.f32.mxu0 %v11344_v38  ;;  %v5367_v38 = vld [vmem:[#allocation3 + $0x388] sm:$0xff] }
 0x2d0   : > { %8373 = vmatprep.subr.mxu1 %v5086_v53  ;;  %8453 = vmatprep.subr.mxu0 %v5370_v7 }
 0x2d1   : > { %8374 = vmatpush3.msra.mxu1 %v5086_v53  ;;  %8454 = vmatpush3.msra.mxu0 %v5370_v7  ;;  %v3209_v53 = vld [vmem:[#allocation2 + $0x190] sm:$0x3]  ;;  %v5083_v7 = vld [vmem:[#allocation3 + $0x308] sm:$0xff] }
 0x2d2   : > { %8257 = vmatmul.mubr.f32.gmra.mxu1 %v12717_v6  ;;  %8340 = vmatmul.mubr.f32.gmra.mxu0 %v11353_v13  ;;  %v4520_v13 = vrot.slane %v11370_v21, 1 }
 0x2d3   : > { %8259 = vmatprep.mubr.f32.mxu1 %v12718_v49  ;;  %8342 = vmatprep.mubr.f32.mxu0 %v11357_v10  ;;  %v4519_v10 = vrot.slane %v11360_v48, 1 }
 0x2d4   : > { %8375 = vmatprep.subr.mxu1 %v5085_v11  ;;  %8455 = vmatprep.subr.mxu0 %v5369_v39 }
 0x2d5   : > { %8376 = vmatpush3.msra.mxu1 %v5085_v11  ;;  %8456 = vmatpush3.msra.mxu0 %v5369_v39  ;;  %v12721_v11 = vld [vmem:[#allocation61_spill] sm:$0xff]  ;;  %v4803_v39 = vrot.slane %v3209_v53, 2 }
 0x2d6   : > { %8260 = vmatmul.mubr.f32.gmra.mxu1 %v12719_v19  ;;  %8343 = vmatmul.mubr.f32.gmra.mxu0 %v11368_v12  ;;  %v11444_v12 = vsel %vm936_vm1, %v4800_v4, %v4801_v20  ;;  %v12725_v4 = vld [vmem:[#allocation63_spill] sm:$0xff] }
 0x2d7   : > { %8262 = vmatprep.mubr.f32.mxu1 %v12720_v50  ;;  %8345 = vmatprep.mubr.f32.mxu0 %v11374_v52  ;;  %12722 = vst [vmem:[#allocation69_spill] sm:$0xff] %v11444_v12  ;;  %v11455_v52 = vsel %vm356_vm0, %v4519_v10, %v4520_v13  ;;  %v11465_v10 = vpop.f32.mrf.mxu0 }
 0x2d8   : > { %8377 = vmatprep.subr.mxu1 %v5084_v2  ;;  %8457 = vmatprep.subr.mxu0 %v5368_v16 }
 0x2d9   : > { %8378 = vmatpush3.msra.mxu1 %v5084_v2  ;;  %8458 = vmatpush3.msra.mxu0 %v5368_v16  ;;  %v11451_v2 = vsel %vm936_vm1, %v4801_v20, %v4803_v39  ;;  %v5662_v16 = vld [vmem:[#allocation3 + $0x478] sm:$0xff] }
 0x2da   : > { %8263 = vmatmul.mubr.f32.gmra.mxu1 %v12721_v11  ;;  %8346 = vmatmul.mubr.f32.gmra.mxu0 %v11381_v26  ;;  %12724 = vst [vmem:[#allocation70_spill] sm:$0xff] %v11451_v2  ;;  %v5366_v26 = vld [vmem:[#allocation3 + $0x380] sm:$0xff] }
 0x2db   : > { %8265 = vmatprep.mubr.f32.mxu1 %v12723_v29  ;;  %8348 = vmatprep.mubr.f32.mxu0 %v11444_v12  ;;  %v4522_v12 = vrot.slane %v3209_v53, 1 }
 0x2dc   : > { %8379 = vmatprep.subr.mxu1 %v5083_v7  ;;  %8459 = vmatprep.subr.mxu0 %v5367_v38 }
 0x2dd   : > { %8380 = vmatpush3.msra.mxu1 %v5083_v7  ;;  %8460 = vmatpush3.msra.mxu0 %v5367_v38  ;;  %v11461_v20 = vsel %vm356_vm0, %v4520_v13, %v4522_v12  ;;  %v8679_v7 = vld [vmem:[#allocation2 + $0x30] sm:$0xff]  ;;  %v5661_v38 = vld [vmem:[#allocation3 + $0x470] sm:$0xff]  ;;  %v8681_v12 = vld [vmem:[#allocation2 + $0x48] sm:$0xff] }
 0x2de   : > { %8266 = vmatmul.mubr.f32.gmra.mxu1 %v12725_v4  ;;  %8349 = vmatmul.mubr.f32.gmra.mxu0 %v11451_v2  ;;  %v8684_v2 = vld [vmem:[#allocation2 + $0x68] sm:$0xff] }
 0x2df   : > { %8268 = vmatprep.mubr.f32.mxu1 %v11455_v52  ;;  %8463 = vmatprep.mubr.f32.mxu0 %v12701_v45  ;;  %v8680_v45 = vld [vmem:[#allocation2 + $0x38] sm:$0xff] }
 0x2e0   : > { %8461 = vmatprep.subr.mxu0 %v5366_v26  ;;  %8381 = vmatprep.subr.mxu1 %v5082_v56 }
 0x2e1   : > { %8462 = vmatpush3.msra.mxu0 %v5366_v26  ;;  %8382 = vmatpush3.msra.mxu1 %v5082_v56  ;;  %v11469_v26 = vpop.f32.mrf.mxu1  ;;  %v5660_v56 = vld [vmem:[#allocation3 + $0x468] sm:$0xff] }
 0x2e2   : > { %8269 = vmatmul.mubr.f32.gmra.mxu1 %v11461_v20  ;;  %8464 = vmatmul.mubr.f32.vlgmr.msra.gmra.mxu0 %v12702_v3 }
 0x2e3   : > { %8383 = vmatprep.mubr.f32.mxu1 %v8679_v7  ;;  %8466 = vmatprep.mubr.f32.mxu0 %v12703_v14  ;;  %v8682_v14 = vld [vmem:[#allocation2 + $0x50] sm:$0xff] }
 0x2e4   : > { %8511 = vmatprep.subr.mxu1 %v5662_v16 }
 0x2e5   : > { %v7988_v13 = vpop.f32.mrf.mxu0 }
 0x2e6   : > { %8384 = vmatmul.mubr.f32.vlgmr.msra.gmra.mxu1 %v8680_v45  ;;  %8467 = vmatmul.mubr.f32.gmra.mxu0 %v12704_v47  ;;  %v8683_v47 = vld [vmem:[#allocation2 + $0x60] sm:$0xff] }
 0x2e7   : > { %8386 = vmatprep.mubr.f32.mxu1 %v8681_v12  ;;  %8512 = vmatpush3.msra.mxu1 %v5662_v16  ;;  %v3707_v3 = vpop.f32.mrf.mxu0 }
 0x2e8   : > { %8469 = vmatprep.mubr.f32.mxu0 %v12705_v28  ;;  %8513 = vmatprep.subr.mxu1 %v5661_v38 }
 0x2e9   : > { %8514 = vmatpush3.msra.mxu1 %v5661_v38  ;;  %v7908_v53 = vpop.f32.mrf.mxu1  ;;  %v7991_v39 = vpop.f32.mrf.mxu0  ;;  %v5659_v38 = vld [vmem:[#allocation3 + $0x460] sm:$0xff] }
 0x2ea   : > { %8387 = vmatmul.mubr.f32.gmra.mxu1 %v8682_v14  ;;  %8470 = vmatmul.mubr.f32.gmra.mxu0 %v12706_v9  ;;  %v11473_v7 = vadd.f32 %v7988_v13, %v7908_v53  ;;  %v8685_v13 = vld [vmem:[#allocation2 + $0x78] sm:$0xff] }
 0x2eb   : > { %8389 = vmatprep.mubr.f32.mxu1 %v8683_v47  ;;  %8472 = vmatprep.mubr.f32.mxu0 %v12707_v51  ;;  %v3482_v16 = vpop.f32.mrf.mxu1  ;;  %v3717_v45 = vpop.f32.mrf.mxu0 }
 0x2ec   : > { %8515 = vmatprep.subr.mxu1 %v5660_v56  ;;  %v11476_v28 = vadd.f32 %v3707_v3, %v3482_v16  ;;  %v5658_v3 = vld [vmem:[#allocation3 + $0x458] sm:$0xff]  ;;  %v8686_v16 = vld [vmem:[#allocation2 + $0x80] sm:$0xff] }
 0x2ed   : > { %8516 = vmatpush3.msra.mxu1 %v5660_v56  ;;  %v7911_v12 = vpop.f32.mrf.mxu1  ;;  %v7994_v14 = vpop.f32.mrf.mxu0 }
 0x2ee   : > { %8390 = vmatmul.mubr.f32.gmra.mxu1 %v8684_v2  ;;  %8473 = vmatmul.mubr.f32.gmra.mxu0 %v12708_v36  ;;  %v11479_v9 = vadd.f32 %v7991_v39, %v7911_v12  ;;  %v8687_v39 = vld [vmem:[#allocation2 + $0x90] sm:$0xff] }
 0x2ef   : > { %8392 = vmatprep.mubr.f32.mxu1 %v8685_v13  ;;  %8475 = vmatprep.mubr.f32.mxu0 %v10957_v44  ;;  %v3492_v51 = vpop.f32.mrf.mxu1  ;;  %v3727_v53 = vpop.f32.mrf.mxu0 }
 0x2f0   : > { %8517 = vmatprep.subr.mxu1 %v5659_v38  ;;  %v11482_v47 = vadd.f32 %v3717_v45, %v3492_v51  ;;  %v5657_v45 = vld [vmem:[#allocation3 + $0x450] sm:$0xff]  ;;  %v8688_v51 = vld [vmem:[#allocation2 + $0x98] sm:$0xff] }
 0x2f1   : > { %8518 = vmatpush3.msra.mxu1 %v5659_v38  ;;  %v7914_v56 = vpop.f32.mrf.mxu1  ;;  %v7997_v2 = vpop.f32.mrf.mxu0 }
 0x2f2   : > { %8393 = vmatmul.mubr.f32.gmra.mxu1 %v8686_v16  ;;  %8476 = vmatmul.mubr.f32.gmra.mxu0 %v12709_v32  ;;  %v11485_v36 = vadd.f32 %v7994_v14, %v7914_v56  ;;  %v8689_v14 = vld [vmem:[#allocation2 + $0xa8] sm:$0xff] }
 0x2f3   : > { %8395 = vmatprep.mubr.f32.mxu1 %v8687_v39  ;;  %8478 = vmatprep.mubr.f32.mxu0 %v10989_v61  ;;  %v3502_v44 = vpop.f32.mrf.mxu1  ;;  %v3737_v12 = vpop.f32.mrf.mxu0 }
 0x2f4   : > { %8519 = vmatprep.subr.mxu1 %v5658_v3  ;;  %v11488_v13 = vadd.f32 %v3727_v53, %v3502_v44  ;;  %v5656_v53 = vld [vmem:[#allocation3 + $0x448] sm:$0xff]  ;;  %v8690_v44 = vld [vmem:[#allocation2 + $0xb0] sm:$0xff] }
 0x2f5   : > { %8520 = vmatpush3.msra.mxu1 %v5658_v3  ;;  %v7917_v38 = vpop.f32.mrf.mxu1 }
 0x2f6   : > { %8396 = vmatmul.mubr.f32.gmra.mxu1 %v8688_v51  ;;  %v8000_v16 = vpop.f32.mrf.mxu0  ;;  %8479 = vmatmul.mubr.f32.gmra.mxu0 %v12710_v18  ;;  %v11491_v32 = vadd.f32 %v7997_v2, %v7917_v38  ;;  %v8691_v2 = vld [vmem:[#allocation2 + $0xc0] sm:$0xff] }
 0x2f7   : > { %8398 = vmatprep.mubr.f32.mxu1 %v8689_v14  ;;  %8481 = vmatprep.mubr.f32.mxu0 %v11020_v27  ;;  %v3512_v61 = vpop.f32.mrf.mxu1 }
 0x2f8   : > { %v3747_v56 = vpop.f32.mrf.mxu0  ;;  %8521 = vmatprep.subr.mxu1 %v5657_v45  ;;  %v11494_v39 = vadd.f32 %v3737_v12, %v3512_v61  ;;  %v5655_v12 = vld [vmem:[#allocation3 + $0x440] sm:$0xff]  ;;  %v8692_v61 = vld [vmem:[#allocation2 + $0xc8] sm:$0xff] }
 0x2f9   : > { %8522 = vmatpush3.msra.mxu1 %v5657_v45  ;;  %v7920_v3 = vpop.f32.mrf.mxu1 }
 0x2fa   : > { %8399 = vmatmul.mubr.f32.gmra.mxu1 %v8690_v44  ;;  %v8003_v51 = vpop.f32.mrf.mxu0  ;;  %8482 = vmatmul.mubr.f32.gmra.mxu0 %v12711_v43  ;;  %v11497_v18 = vadd.f32 %v8000_v16, %v7920_v3  ;;  %v8693_v16 = vld [vmem:[#allocation2 + $0xd8] sm:$0xff] }
 0x2fb   : > { %8401 = vmatprep.mubr.f32.mxu1 %v8691_v2  ;;  %8484 = vmatprep.mubr.f32.mxu0 %v11049_v41  ;;  %v3522_v27 = vpop.f32.mrf.mxu1 }
 0x2fc   : > { %v3757_v38 = vpop.f32.mrf.mxu0  ;;  %8523 = vmatprep.subr.mxu1 %v5656_v53  ;;  %v11500_v14 = vadd.f32 %v3747_v56, %v3522_v27  ;;  %v5654_v56 = vld [vmem:[#allocation3 + $0x438] sm:$0xff]  ;;  %v8694_v27 = vld [vmem:[#allocation2 + $0xe0] sm:$0xff] }
 0x2fd   : > { %8524 = vmatpush3.msra.mxu1 %v5656_v53  ;;  %v7923_v45 = vpop.f32.mrf.mxu1 }
 0x2fe   : > { %8402 = vmatmul.mubr.f32.gmra.mxu1 %v8692_v61  ;;  %v8006_v44 = vpop.f32.mrf.mxu0  ;;  %8485 = vmatmul.mubr.f32.gmra.mxu0 %v12712_v17  ;;  %v11503_v43 = vadd.f32 %v8003_v51, %v7923_v45  ;;  %v8695_v51 = vld [vmem:[#allocation2 + $0xf0] sm:$0xff] }
 0x2ff   : > { %8404 = vmatprep.mubr.f32.mxu1 %v8693_v16  ;;  %8487 = vmatprep.mubr.f32.mxu0 %v11074_v0  ;;  %v3532_v41 = vpop.f32.mrf.mxu1 }
 0x300   : > { %v3767_v3 = vpop.f32.mrf.mxu0  ;;  %8525 = vmatprep.subr.mxu1 %v5655_v12  ;;  %v11506_v2 = vadd.f32 %v3757_v38, %v3532_v41  ;;  %v5653_v38 = vld [vmem:[#allocation3 + $0x430] sm:$0xff]  ;;  %v8696_v41 = vld [vmem:[#allocation2 + $0xf8] sm:$0xff] }
 0x301   : > { %8526 = vmatpush3.msra.mxu1 %v5655_v12  ;;  %v7926_v53 = vpop.f32.mrf.mxu1 }
 0x302   : > { %8405 = vmatmul.mubr.f32.gmra.mxu1 %v8694_v27  ;;  %v8009_v61 = vpop.f32.mrf.mxu0  ;;  %8488 = vmatmul.mubr.f32.gmra.mxu0 %v12713_v25  ;;  %v11509_v17 = vadd.f32 %v8006_v44, %v7926_v53  ;;  %v8697_v44 = vld [vmem:[#allocation2 + $0x108] sm:$0xff] }
 0x303   : > { %8407 = vmatprep.mubr.f32.mxu1 %v8695_v51  ;;  %8490 = vmatprep.mubr.f32.mxu0 %v12714_v54  ;;  %v3542_v0 = vpop.f32.mrf.mxu1 }
 0x304   : > { %v3777_v45 = vpop.f32.mrf.mxu0  ;;  %8527 = vmatprep.subr.mxu1 %v5654_v56  ;;  %v11512_v16 = vadd.f32 %v3767_v3, %v3542_v0  ;;  %v5652_v3 = vld [vmem:[#allocation3 + $0x428] sm:$0xff]  ;;  %v8698_v0 = vld [vmem:[#allocation2 + $0x110] sm:$0xff] }
 0x305   : > { %8528 = vmatpush3.msra.mxu1 %v5654_v56  ;;  %v7929_v12 = vpop.f32.mrf.mxu1 }
 0x306   : > { %8408 = vmatmul.mubr.f32.gmra.mxu1 %v8696_v41  ;;  %v8012_v27 = vpop.f32.mrf.mxu0  ;;  %8491 = vmatmul.mubr.f32.gmra.mxu0 %v12715_v58  ;;  %v11515_v25 = vadd.f32 %v8009_v61, %v7929_v12  ;;  %v8699_v61 = vld [vmem:[#allocation2 + $0x120] sm:$0xff] }
 0x307   : > { %8410 = vmatprep.mubr.f32.mxu1 %v8697_v44  ;;  %8493 = vmatprep.mubr.f32.mxu0 %v12716_v34  ;;  %v3552_v54 = vpop.f32.mrf.mxu1 }
 0x308   : > { %v3787_v53 = vpop.f32.mrf.mxu0  ;;  %8529 = vmatprep.subr.mxu1 %v5653_v38  ;;  %v11518_v51 = vadd.f32 %v3777_v45, %v3552_v54  ;;  %v5651_v45 = vld [vmem:[#allocation3 + $0x420] sm:$0xff]  ;;  %v8700_v54 = vld [vmem:[#allocation2 + $0x128] sm:$0xff] }
 0x309   : > { %8530 = vmatpush3.msra.mxu1 %v5653_v38  ;;  %v7932_v56 = vpop.f32.mrf.mxu1 }
 0x30a   : > { %8411 = vmatmul.mubr.f32.gmra.mxu1 %v8698_v0  ;;  %v8015_v41 = vpop.f32.mrf.mxu0  ;;  %8494 = vmatmul.mubr.f32.gmra.mxu0 %v12717_v6  ;;  %v11521_v58 = vadd.f32 %v8012_v27, %v7932_v56  ;;  %v8701_v27 = vld [vmem:[#allocation2 + $0x138] sm:$0xff] }
 0x30b   : > { %8413 = vmatprep.mubr.f32.mxu1 %v8699_v61  ;;  %8496 = vmatprep.mubr.f32.mxu0 %v12718_v49  ;;  %v3562_v34 = vpop.f32.mrf.mxu1 }
 0x30c   : > { %v3797_v12 = vpop.f32.mrf.mxu0  ;;  %8531 = vmatprep.subr.mxu1 %v5652_v3  ;;  %v11524_v44 = vadd.f32 %v3787_v53, %v3562_v34  ;;  %v5650_v53 = vld [vmem:[#allocation3 + $0x418] sm:$0xff]  ;;  %v8702_v34 = vld [vmem:[#allocation2 + $0x140] sm:$0xff] }
 0x30d   : > { %8532 = vmatpush3.msra.mxu1 %v5652_v3  ;;  %v7935_v38 = vpop.f32.mrf.mxu1 }
 0x30e   : > { %8414 = vmatmul.mubr.f32.gmra.mxu1 %v8700_v54  ;;  %v8018_v0 = vpop.f32.mrf.mxu0  ;;  %8497 = vmatmul.mubr.f32.gmra.mxu0 %v12719_v19  ;;  %v11527_v6 = vadd.f32 %v8015_v41, %v7935_v38  ;;  %v8703_v41 = vld [vmem:[#allocation2 + $0x150] sm:$0xff] }
 0x30f   : > { %8416 = vmatprep.mubr.f32.mxu1 %v8701_v27  ;;  %8499 = vmatprep.mubr.f32.mxu0 %v12720_v50  ;;  %v3572_v49 = vpop.f32.mrf.mxu1  ;;  %v11536_v27 = vld [vmem:[#allocation2 + $0x1a8] sm:$0x3] }
 0x310   : > { %12726 = vst [vmem:[#allocation75_spill] sm:$0xff] %v11527_v6  ;;  %v3807_v56 = vpop.f32.mrf.mxu0  ;;  %8533 = vmatprep.subr.mxu1 %v5651_v45  ;;  %v11530_v61 = vadd.f32 %v3797_v12, %v3572_v49  ;;  %v11540_v49 = vld [vmem:[#allocation2] sm:$0xff] }
 0x311   : > { %8534 = vmatpush3.msra.mxu1 %v5651_v45  ;;  %v7938_v3 = vpop.f32.mrf.mxu1  ;;  %v5649_v45 = vld [vmem:[#allocation3 + $0x410] sm:$0xff] }
 0x312   : > { %12727 = vst [vmem:[#allocation112_spill] sm:$0xff] %v11530_v61  ;;  %8417 = vmatmul.mubr.f32.gmra.mxu1 %v8702_v34  ;;  %v8021_v54 = vpop.f32.mrf.mxu0  ;;  %8500 = vmatmul.mubr.f32.gmra.mxu0 %v12721_v11  ;;  %v11533_v19 = vadd.f32 %v8018_v0, %v7938_v3  ;;  %v5358_v34 = vrot.slane %v11540_v49, 1  ;;  %v8705_v0 = vld [vmem:[#allocation2 + $0x158] sm:$0xff] }
 0x313   : > { %8419 = vmatprep.mubr.f32.mxu1 %v8703_v41  ;;  %8502 = vmatprep.mubr.f32.mxu0 %v12723_v29  ;;  %v3582_v50 = vpop.f32.mrf.mxu1  ;;  %v8706_v41 = vld [vmem:[#allocation2 + $0x168] sm:$0xff] }
 0x314   : > { %12728 = vst [vmem:[#allocation111_spill] sm:$0xff] %v11533_v19  ;;  %v3817_v38 = vpop.f32.mrf.mxu0  ;;  %8535 = vmatprep.subr.mxu1 %v5650_v53  ;;  %v11538_v12 = vadd.f32 %v3807_v56, %v3582_v50  ;;  %v5361_v56 = vrot.slane %v11536_v27, 1 }
 0x315   : > { %8536 = vmatpush3.msra.mxu1 %v5650_v53  ;;  %v7941_v11 = vpop.f32.mrf.mxu1 }
 0x316   : > { %12729 = vst [vmem:[#allocation72_spill] sm:$0xff] %v11538_v12  ;;  %8420 = vmatmul.mubr.f32.gmra.mxu1 %v8705_v0  ;;  %v8024_v3 = vpop.f32.mrf.mxu0  ;;  %8503 = vmatmul.mubr.f32.gmra.mxu0 %v12725_v4  ;;  %v11544_v29 = vadd.f32 %v8021_v54, %v7941_v11  ;;  %v5648_v12 = vld [vmem:[#allocation3 + $0x408] sm:$0xff]  ;;  %v8707_v0 = vld [vmem:[#allocation2 + $0x170] sm:$0xff] }
 0x317   : > { %8422 = vmatprep.mubr.f32.mxu1 %v8706_v41  ;;  %8505 = vmatprep.mubr.f32.mxu0 %v11455_v52  ;;  %v3592_v53 = vpop.f32.mrf.mxu1  ;;  %v5647_v4 = vld [vmem:[#allocation3 + $0x400] sm:$0xff]  ;;  %v5362_v52 = vsel %vm356_vm0, %v5358_v34, %v5361_v56 }
 0x318   : > { %v3827_v50 = vpop.f32.mrf.mxu0  ;;  %8537 = vmatprep.subr.mxu1 %v5649_v45  ;;  %v11548_v19 = vadd.f32 %v3817_v38, %v3592_v53 }
 0x319   : > { %8538 = vmatpush3.msra.mxu1 %v5649_v45  ;;  %v7944_v61 = vpop.f32.mrf.mxu1 }
 0x31a   : > { %8423 = vmatmul.mubr.f32.gmra.mxu1 %v8707_v0  ;;  %v8027_v6 = vpop.f32.mrf.mxu0  ;;  %8506 = vmatmul.mubr.f32.gmra.mxu0 %v11461_v20  ;;  %v11551_v54 = vadd.f32 %v8024_v3, %v7944_v61 }
 0x31b   : > { %8425 = vmatprep.mubr.f32.mxu1 %v11360_v48  ;;  %8539 = vmatprep.subr.mxu1 %v5648_v12  ;;  %v3602_v11 = vpop.f32.mrf.mxu1 }
 0x31c   : > { %v3837_v41 = vpop.f32.mrf.mxu0  ;;  %8540 = vmatpush3.msra.mxu1 %v5648_v12  ;;  %8508 = vmatprep.mubr.f32.mxu0 %v5358_v34  ;;  %v11555_v38 = vadd.f32 %v3827_v50, %v3602_v11 }
 0x31d   : > { %8541 = vmatprep.subr.mxu1 %v5647_v4  ;;  %v7947_v45 = vpop.f32.mrf.mxu1 }
 0x31e   : > { %8426 = vmatmul.mubr.f32.gmra.mxu1 %v11370_v21  ;;  %v8030_v53 = vpop.f32.mrf.mxu0  ;;  %8509 = vmatmul.mubr.f32.gmra.mxu0 %v5362_v52  ;;  %v11558_v20 = vadd.f32 %v8027_v6, %v7947_v45  ;;  %v3698_v52 = vadd.f32 %v11465_v10, %v11469_v26 }
 0x31f   : > { %8428 = vmatprep.mubr.f32.mxu1 %v11540_v49  ;;  %8542 = vmatpush3.msra.mxu1 %v5647_v4  ;;  %v3612_v48 = vpop.f32.mrf.mxu1 }
 0x320   : > { %v3847_v61 = vpop.f32.mrf.mxu0  ;;  %v11561_v3 = vadd.f32 %v3837_v41, %v3612_v48 }
 0x321   : > { %v7950_v56 = vpop.f32.mrf.mxu1 }
 0x322   : > { %8429 = vmatmul.mubr.f32.gmra.mxu1 %v11540_v49  ;;  %v8145_v12 = vpop.f32.mrf.mxu0  ;;  %v11564_v34 = vadd.f32 %v8030_v53, %v7950_v56 }
 0x323   : > { %8543 = vmatprep.mubr.f32.mxu1 %v11201_v60  ;;  %v3622_v21 = vpop.f32.mrf.mxu1 }
 0x324   : > { %v4325_v50 = vpop.f32.mrf.mxu0  ;;  %v11567_v0 = vadd.f32 %v3847_v61, %v3622_v21 }
 0x325   : > { %v8065_v6 = vpop.f32.mrf.mxu1 }
 0x326   : > { %8544 = vmatmul.mubr.f32.vlgmr.msra.gmra.mxu1 %v11210_v37  ;;  %v8148_v4 = vpop.f32.mrf.mxu0  ;;  %v4211_v11 = vadd.f32 %v8065_v6, %v11185_v33 }
 0x327   : > { %8546 = vmatprep.mubr.f32.mxu1 %v11214_v35  ;;  %v4051_v41 = vpop.f32.mrf.mxu1 }
 0x328   : > { %v4335_v45 = vpop.f32.mrf.mxu0  ;;  %v4210_v53 = vadd.f32 %v4051_v41, %v3698_v52  ;;  %v11574_v48 = vadd.f32 %v8145_v12, %v4211_v11 }
 0x32a   : > { %v8068_v60 = vpop.f32.mrf.mxu1  ;;  %8547 = vmatmul.mubr.f32.gmra.mxu1 %v11223_v30  ;;  %v8151_v61 = vpop.f32.mrf.mxu0  ;;  %v11579_v37 = vadd.f32 %v4325_v50, %v4210_v53 }
 0x32b   : > { %v4213_v56 = vadd.f32 %v8068_v60, %v11473_v7  ;;  %8549 = vmatprep.mubr.f32.mxu1 %v11227_v46 }
 0x32c   : > { %v4061_v10 = vpop.f32.mrf.mxu1  ;;  %v4345_v26 = vpop.f32.mrf.mxu0 }
 0x32d   : > { %v4212_v33 = vadd.f32 %v4061_v10, %v11476_v28  ;;  %v11582_v35 = vadd.f32 %v8148_v4, %v4213_v56 }
 0x32e   : > { %v8071_v21 = vpop.f32.mrf.mxu1  ;;  %8550 = vmatmul.mubr.f32.gmra.mxu1 %v11236_v55  ;;  %v8154_v12 = vpop.f32.mrf.mxu0 }
 0x32f   : > { %v4215_v6 = vadd.f32 %v8071_v21, %v11479_v9  ;;  %8552 = vmatprep.mubr.f32.mxu1 %v11240_v40  ;;  %v11587_v30 = vadd.f32 %v4335_v45, %v4212_v33 }
 0x330   : > { %v4071_v7 = vpop.f32.mrf.mxu1  ;;  %v4355_v46 = vpop.f32.mrf.mxu0 }
 0x331   : > { %v4214_v50 = vadd.f32 %v4071_v7, %v11482_v47  ;;  %v11590_v52 = vadd.f32 %v8151_v61, %v4215_v6 }
 0x332   : > { %v8074_v11 = vpop.f32.mrf.mxu1  ;;  %8553 = vmatmul.mubr.f32.gmra.mxu1 %v11249_v63  ;;  %v8157_v28 = vpop.f32.mrf.mxu0 }
 0x333   : > { %v4217_v4 = vadd.f32 %v8074_v11, %v11485_v36  ;;  %8555 = vmatprep.mubr.f32.mxu1 %v11253_v57  ;;  %v11595_v55 = vadd.f32 %v4345_v26, %v4214_v50 }
 0x334   : > { %v4081_v9 = vpop.f32.mrf.mxu1  ;;  %v4365_v40 = vpop.f32.mrf.mxu0 }
 0x335   : > { %v4216_v41 = vadd.f32 %v4081_v9, %v11488_v13  ;;  %v11598_v45 = vadd.f32 %v8154_v12, %v4217_v4 }
 0x336   : > { %v8077_v53 = vpop.f32.mrf.mxu1  ;;  %8556 = vmatmul.mubr.f32.gmra.mxu1 %v11262_v15  ;;  %v8160_v47 = vpop.f32.mrf.mxu0 }
 0x337   : > { %v4219_v60 = vadd.f32 %v8077_v53, %v11491_v32  ;;  %8558 = vmatprep.mubr.f32.mxu1 %v11266_v59  ;;  %v11603_v63 = vadd.f32 %v4355_v46, %v4216_v41 }
 0x338   : > { %v4091_v36 = vpop.f32.mrf.mxu1  ;;  %v4375_v57 = vpop.f32.mrf.mxu0 }
 0x339   : > { %v4218_v61 = vadd.f32 %v4091_v36, %v11494_v39  ;;  %v11606_v56 = vadd.f32 %v8157_v28, %v4219_v60 }
 0x33a   : > { %v8080_v10 = vpop.f32.mrf.mxu1  ;;  %8559 = vmatmul.mubr.f32.gmra.mxu1 %v11275_v1  ;;  %v8163_v13 = vpop.f32.mrf.mxu0 }
 0x33b   : > { %v4221_v26 = vadd.f32 %v8080_v10, %v11497_v18  ;;  %8561 = vmatprep.mubr.f32.mxu1 %v11279_v8  ;;  %v11611_v15 = vadd.f32 %v4365_v40, %v4218_v61 }
 0x33c   : > { %v4101_v32 = vpop.f32.mrf.mxu1  ;;  %v4385_v59 = vpop.f32.mrf.mxu0 }
 0x33d   : > { %v4220_v33 = vadd.f32 %v4101_v32, %v11500_v14  ;;  %v11614_v21 = vadd.f32 %v8160_v47, %v4221_v26  ;;  %v12732_v26 = vld [vmem:[#allocation75_spill] sm:$0xff] }
 0x33e   : > { %v8083_v12 = vpop.f32.mrf.mxu1  ;;  %8562 = vmatmul.mubr.f32.gmra.mxu1 %v11288_v5  ;;  %v8166_v39 = vpop.f32.mrf.mxu0 }
 0x33f   : > { %v4223_v6 = vadd.f32 %v8083_v12, %v11503_v43  ;;  %8564 = vmatprep.mubr.f32.mxu1 %v11292_v31  ;;  %v11619_v1 = vadd.f32 %v4375_v57, %v4220_v33  ;;  %v12734_v12 = vld [vmem:[#allocation112_spill] sm:$0xff] }
 0x340   : > { %v4111_v18 = vpop.f32.mrf.mxu1  ;;  %v4395_v8 = vpop.f32.mrf.mxu0 }
 0x341   : > { %v4222_v7 = vadd.f32 %v4111_v18, %v11506_v2  ;;  %v11622_v46 = vadd.f32 %v8163_v13, %v4223_v6 }
 0x342   : > { %v8086_v50 = vpop.f32.mrf.mxu1  ;;  %8565 = vmatmul.mubr.f32.gmra.mxu1 %v11301_v62  ;;  %v8169_v14 = vpop.f32.mrf.mxu0 }
 0x343   : > { %v4225_v11 = vadd.f32 %v8086_v50, %v11509_v17  ;;  %8567 = vmatprep.mubr.f32.mxu1 %v11305_v24  ;;  %v11627_v5 = vadd.f32 %v4385_v59, %v4222_v7  ;;  %v12736_v7 = vld [vmem:[#allocation111_spill] sm:$0xff] }
 0x344   : > { %v4121_v43 = vpop.f32.mrf.mxu1  ;;  %v4405_v31 = vpop.f32.mrf.mxu0 }
 0x345   : > { %v4224_v28 = vadd.f32 %v4121_v43, %v11512_v16  ;;  %v11630_v4 = vadd.f32 %v8166_v39, %v4225_v11 }
 0x346   : > { %v8089_v9 = vpop.f32.mrf.mxu1  ;;  %8568 = vmatmul.mubr.f32.gmra.mxu1 %v11314_v23  ;;  %v8172_v2 = vpop.f32.mrf.mxu0  ;;  %v12730_v23 = vld [vmem:[#allocation64_spill] sm:$0xff] }
 0x347   : > { %v4227_v40 = vadd.f32 %v8089_v9, %v11515_v25  ;;  %8570 = vmatprep.mubr.f32.mxu1 %v11318_v42  ;;  %v11635_v62 = vadd.f32 %v4395_v8, %v4224_v28  ;;  %v12738_v28 = vld [vmem:[#allocation72_spill] sm:$0xff] }
 0x348   : > { %v4131_v17 = vpop.f32.mrf.mxu1  ;;  %v4415_v24 = vpop.f32.mrf.mxu0 }
 0x349   : > { %v4226_v41 = vadd.f32 %v4131_v17, %v11518_v51  ;;  %v11638_v53 = vadd.f32 %v8169_v14, %v4227_v40  ;;  %v12731_v51 = vld [vmem:[#allocation65_spill] sm:$0xff]  ;;  %v12737_v14 = vld [vmem:[#allocation66_spill] sm:$0xff]  ;;  %v12739_v17 = vld [vmem:[#allocation67_spill] sm:$0xff] }
 0x34a   : > { %v8092_v47 = vpop.f32.mrf.mxu1  ;;  %8571 = vmatmul.mubr.f32.gmra.mxu1 %v11327_v22  ;;  %v8175_v16 = vpop.f32.mrf.mxu0  ;;  %v12733_v22 = vld [vmem:[#allocation71_spill] sm:$0xff] }
 0x34b   : > { %v4229_v60 = vadd.f32 %v8092_v47, %v11521_v58  ;;  %8573 = vmatprep.mubr.f32.mxu1 %v12730_v23  ;;  %v11643_v36 = vadd.f32 %v4405_v31, %v4226_v41  ;;  %v12740_v47 = vld [vmem:[#allocation109_spill] sm:$0xff] }
 0x34c   : > { %v4141_v25 = vpop.f32.mrf.mxu1  ;;  %v4425_v42 = vpop.f32.mrf.mxu0 }
 0x34d   : > { %v4228_v57 = vadd.f32 %v4141_v25, %v11524_v44  ;;  %v11646_v61 = vadd.f32 %v8172_v2, %v4229_v60  ;;  %v12735_v44 = vld [vmem:[#allocation110_spill] sm:$0xff]  ;;  %v5639_v60 = vrot.slane %v11540_v49, 2 }
 0x34e   : > { %v8095_v10 = vpop.f32.mrf.mxu1  ;;  %8574 = vmatmul.mubr.f32.gmra.mxu1 %v12731_v51  ;;  %v8178_v13 = vpop.f32.mrf.mxu0  ;;  %v12741_v51 = vld [vmem:[#allocation68_spill] sm:$0xff] }
 0x34f   : > { %v4231_v32 = vadd.f32 %v8095_v10, %v12732_v26  ;;  %8576 = vmatprep.mubr.f32.mxu1 %v12733_v22  ;;  %v11651_v59 = vadd.f32 %v4415_v24, %v4228_v57 }
 0x350   : > { %v4151_v58 = vpop.f32.mrf.mxu1  ;;  %v4435_v33 = vpop.f32.mrf.mxu0 }
 0x351   : > { %v4230_v39 = vadd.f32 %v4151_v58, %v12734_v12  ;;  %v11654_v6 = vadd.f32 %v8175_v16, %v4231_v32  ;;  %v12742_v32 = vld [vmem:[#allocation69_spill] sm:$0xff] }
 0x352   : > { %v8098_v18 = vpop.f32.mrf.mxu1  ;;  %8577 = vmatmul.mubr.f32.gmra.mxu1 %v12735_v44  ;;  %v8181_v8 = vpop.f32.mrf.mxu0 }
 0x353   : > { %v4233_v50 = vadd.f32 %v8098_v18, %v12736_v7  ;;  %8579 = vmatprep.mubr.f32.mxu1 %v12737_v14  ;;  %v11659_v11 = vadd.f32 %v4425_v42, %v4230_v39  ;;  %v12743_v39 = vld [vmem:[#allocation70_spill] sm:$0xff] }
 0x354   : > { %v4161_v43 = vpop.f32.mrf.mxu1  ;;  %v4445_v31 = vpop.f32.mrf.mxu0 }
 0x355   : > { %v4232_v9 = vadd.f32 %v4161_v43, %v12738_v28  ;;  %v11662_v2 = vadd.f32 %v8178_v13, %v4233_v50 }
 0x356   : > { %v8101_v40 = vpop.f32.mrf.mxu1  ;;  %8580 = vmatmul.mubr.f32.gmra.mxu1 %v12739_v17  ;;  %v8184_v24 = vpop.f32.mrf.mxu0 }
 0x357   : > { %v4235_v41 = vadd.f32 %v8101_v40, %v11544_v29  ;;  %8582 = vmatprep.mubr.f32.mxu1 %v12740_v47  ;;  %v11667_v16 = vadd.f32 %v4435_v33, %v4232_v9  ;;  %v5642_v29 = vrot.slane %v11536_v27, 2 }
 0x358   : > { %v4171_v23 = vpop.f32.mrf.mxu1  ;;  %v4455_v25 = vpop.f32.mrf.mxu0 }
 0x359   : > { %v4234_v42 = vadd.f32 %v4171_v23, %v11548_v19  ;;  %v11671_v57 = vadd.f32 %v8181_v8, %v4235_v41 }
 0x35a   : > { %v8104_v10 = vpop.f32.mrf.mxu1  ;;  %8583 = vmatmul.mubr.f32.gmra.mxu1 %v12741_v51  ;;  %v8187_v13 = vpop.f32.mrf.mxu0 }
 0x35b   : > { %v4237_v26 = vadd.f32 %v8104_v10, %v11551_v54  ;;  %8585 = vmatprep.mubr.f32.mxu1 %v12742_v32  ;;  %v11677_v22 = vadd.f32 %v4445_v31, %v4234_v42  ;;  %v5643_v54 = vsel %vm936_vm1, %v5639_v60, %v5642_v29 }
 0x35c   : > { %v4181_v58 = vpop.f32.mrf.mxu1  ;;  %v4465_v49 = vpop.f32.mrf.mxu0 }
 0x35d   : > { %v4236_v33 = vadd.f32 %v4181_v58, %v11555_v38  ;;  %v11680_v12 = vadd.f32 %v8184_v24, %v4237_v26 }
 0x35e   : > { %v8107_v19 = vpop.f32.mrf.mxu1  ;;  %8586 = vmatmul.mubr.f32.gmra.mxu1 %v12743_v39  ;;  %v8190_v18 = vpop.f32.mrf.mxu0 }
 0x35f   : > { %v4239_v44 = vadd.f32 %v8107_v19, %v11558_v20  ;;  %8588 = vmatprep.mubr.f32.mxu1 %v5639_v60  ;;  %v11685_v8 = vadd.f32 %v4455_v25, %v4236_v33 }
 0x360   : > { %v4191_v27 = vpop.f32.mrf.mxu1  ;;  %v4475_v7 = vpop.f32.mrf.mxu0 }
 0x361   : > { %v4238_v50 = vadd.f32 %v4191_v27, %v11561_v3  ;;  %v11688_v14 = vadd.f32 %v8187_v13, %v4239_v44 }
 0x362   : > { %v8110_v38 = vpop.f32.mrf.mxu1  ;;  %8589 = vmatmul.mubr.f32.gmra.mxu1 %v5643_v54  ;;  %v11690_v43 = vpop.f32.mrf.mxu0 }
 0x363   : > { %v4241_v31 = vadd.f32 %v8110_v38, %v11564_v34  ;;  %v11693_v28 = vadd.f32 %v4465_v49, %v4238_v50 }
 0x364   : > { %v4201_v20 = vpop.f32.mrf.mxu1  ;;  %v11695_v9 = vpop.f32.mrf.mxu0 }
 0x365   : > { %v4240_v40 = vadd.f32 %v4201_v20, %v11567_v0  ;;  %v11698_v17 = vadd.f32 %v8190_v18, %v4241_v31 }
 0x366   : > { %v8225_v24 = vpop.f32.mrf.mxu1  ;;  %v11700_v41 = vpop.f32.mrf.mxu0 }
 0x367   : > { %v11703_v3 = vadd.f32 %v8225_v24, %v11574_v48  ;;  %v11705_v47 = vadd.f32 %v4475_v7, %v4240_v40 }
 0x368   : > { %v4609_v60 = vpop.f32.mrf.mxu1  ;;  %v11707_v23 = vpop.f32.mrf.mxu0 }
 0x369   : > { %v11710_v34 = vadd.f32 %v4609_v60, %v11579_v37 }
 0x36a   : > { %v8228_v25 = vpop.f32.mrf.mxu1  ;;  %v11712_v42 = vpop.f32.mrf.mxu0 }
 0x36b   : > { %v11715_v0 = vadd.f32 %v8228_v25, %v11582_v35 }
 0x36c   : > { %v4619_v10 = vpop.f32.mrf.mxu1  ;;  %v11717_v51 = vpop.f32.mrf.mxu0 }
 0x36d   : > { %v11720_v48 = vadd.f32 %v4619_v10, %v11587_v30 }
 0x36e   : > { %v8231_v13 = vpop.f32.mrf.mxu1  ;;  %v11722_v26 = vpop.f32.mrf.mxu0 }
 0x36f   : > { %v11725_v32 = vadd.f32 %v8231_v13, %v11590_v52 }
 0x370   : > { %v4629_v37 = vpop.f32.mrf.mxu1  ;;  %v11727_v29 = vpop.f32.mrf.mxu0 }
 0x371   : > { %v11730_v58 = vadd.f32 %v4629_v37, %v11595_v55 }
 0x372   : > { %v8234_v35 = vpop.f32.mrf.mxu1  ;;  %v11732_v49 = vpop.f32.mrf.mxu0 }
 0x373   : > { %v11735_v33 = vadd.f32 %v8234_v35, %v11598_v45 }
 0x374   : > { %v4639_v30 = vpop.f32.mrf.mxu1  ;;  %v11737_v19 = vpop.f32.mrf.mxu0 }
 0x375   : > { %v11740_v39 = vadd.f32 %v4639_v30, %v11603_v63 }
 0x376   : > { %v8237_v52 = vpop.f32.mrf.mxu1  ;;  %v11742_v18 = vpop.f32.mrf.mxu0 }
 0x377   : > { %v11745_v44 = vadd.f32 %v8237_v52, %v11606_v56 }
 0x378   : > { %v4649_v55 = vpop.f32.mrf.mxu1  ;;  %v11747_v54 = vpop.f32.mrf.mxu0 }
 0x379   : > { %v11750_v27 = vadd.f32 %v4649_v55, %v11611_v15 }
 0x37a   : > { %v8240_v45 = vpop.f32.mrf.mxu1  ;;  %v11752_v7 = vpop.f32.mrf.mxu0 }
 0x37b   : > { %v11755_v50 = vadd.f32 %v8240_v45, %v11614_v21 }
 0x37c   : > { %v4659_v63 = vpop.f32.mrf.mxu1  ;;  %v11757_v38 = vpop.f32.mrf.mxu0 }
 0x37d   : > { %v11760_v31 = vadd.f32 %v4659_v63, %v11619_v1 }
 0x37e   : > { %v8243_v56 = vpop.f32.mrf.mxu1  ;;  %v11762_v20 = vpop.f32.mrf.mxu0 }
 0x37f   : > { %12744 = vst [vmem:[#allocation73_spill] sm:$0xff] %v11762_v20  ;;  %v11765_v40 = vadd.f32 %v8243_v56, %v11622_v46 }
 0x380   : > { %v4669_v15 = vpop.f32.mrf.mxu1  ;;  %v11767_v24 = vpop.f32.mrf.mxu0 }
 0x381   : > { %12745 = vst [vmem:[#allocation74_spill] sm:$0xff] %v11767_v24  ;;  %v11770_v60 = vadd.f32 %v4669_v15, %v11627_v5 }
 0x382   : > { %v8246_v21 = vpop.f32.mrf.mxu1  ;;  %v11772_v25 = vpop.f32.mrf.mxu0 }
 0x383   : > { %12746 = vst [vmem:[#allocation79_spill] sm:$0xff] %v11772_v25  ;;  %v11775_v10 = vadd.f32 %v8246_v21, %v11630_v4 }
 0x384   : > { %v4679_v1 = vpop.f32.mrf.mxu1  ;;  %v11777_v13 = vpop.f32.mrf.mxu0 }
 0x385   : > { %12747 = vst [vmem:[#allocation114_spill] sm:$0xff] %v11775_v10  ;;  %12748 = vst [vmem:[#allocation113_spill] sm:$0xff] %v11777_v13  ;;  %v11780_v37 = vadd.f32 %v4679_v1, %v11635_v62 }
 0x386   : > { %v8249_v46 = vpop.f32.mrf.mxu1  ;;  %v11782_v35 = vpop.f32.mrf.mxu0 }
 0x387   : > { %12749 = vst [vmem:[#allocation76_spill] sm:$0xff] %v11780_v37  ;;  %12750 = vst [vmem:[#allocation77_spill] sm:$0xff] %v11782_v35  ;;  %v11785_v30 = vadd.f32 %v8249_v46, %v11638_v53 }
 0x388   : > { %v4689_v5 = vpop.f32.mrf.mxu1  ;;  %v11787_v52 = vpop.f32.mrf.mxu0 }
 0x389   : > { %12751 = vst [vmem:[#allocation78_spill] sm:$0xff] %v11785_v30  ;;  %12752 = vst [vmem:[#allocation83_spill] sm:$0xff] %v11787_v52  ;;  %v11790_v55 = vadd.f32 %v4689_v5, %v11643_v36 }
 0x38a   : > { %v8252_v4 = vpop.f32.mrf.mxu1  ;;  %v11792_v45 = vpop.f32.mrf.mxu0 }
 0x38b   : > { %12753 = vst [vmem:[#allocation117_spill] sm:$0xff] %v11790_v55  ;;  %12754 = vst [vmem:[#allocation115_spill] sm:$0xff] %v11792_v45  ;;  %v11795_v63 = vadd.f32 %v8252_v4, %v11646_v61 }
 0x38c   : > { %v4699_v62 = vpop.f32.mrf.mxu1  ;;  %v11797_v56 = vpop.f32.mrf.mxu0 }
 0x38d   : > { %12755 = vst [vmem:[#allocation80_spill] sm:$0xff] %v11795_v63  ;;  %12756 = vst [vmem:[#allocation81_spill] sm:$0xff] %v11797_v56  ;;  %v11800_v15 = vadd.f32 %v4699_v62, %v11651_v59 }
 0x38e   : > { %v8255_v53 = vpop.f32.mrf.mxu1  ;;  %v11802_v21 = vpop.f32.mrf.mxu0 }
 0x38f   : > { %12757 = vst [vmem:[#allocation82_spill] sm:$0xff] %v11800_v15  ;;  %12758 = vst [vmem:[#allocation87_spill] sm:$0xff] %v11802_v21  ;;  %v11805_v1 = vadd.f32 %v8255_v53, %v11654_v6 }
 0x390   : > { %v4709_v36 = vpop.f32.mrf.mxu1  ;;  %v11807_v46 = vpop.f32.mrf.mxu0 }
 0x391   : > { %12759 = vst [vmem:[#allocation116_spill] sm:$0xff] %v11805_v1  ;;  %12760 = vst [vmem:[#allocation120_spill] sm:$0xff] %v11807_v46  ;;  %v11810_v5 = vadd.f32 %v4709_v36, %v11659_v11 }
 0x392   : > { %v8258_v61 = vpop.f32.mrf.mxu1  ;;  %v11812_v4 = vpop.f32.mrf.mxu0 }
 0x393   : > { %12761 = vst [vmem:[#allocation84_spill] sm:$0xff] %v11810_v5  ;;  %12762 = vst [vmem:[#allocation85_spill] sm:$0xff] %v11812_v4  ;;  %v11815_v56 = vadd.f32 %v8258_v61, %v11662_v2 }
 0x394   : > { %v4719_v59 = vpop.f32.mrf.mxu1  ;;  %v11817_v62 = vpop.f32.mrf.mxu0 }
 0x395   : > { %12763 = vst [vmem:[#allocation86_spill] sm:$0xff] %v11815_v56  ;;  %12764 = vst [vmem:[#allocation91_spill] sm:$0xff] %v11817_v62  ;;  %v11820_v21 = vadd.f32 %v4719_v59, %v11667_v16 }
 0x396   : > { %v8261_v6 = vpop.f32.mrf.mxu1  ;;  %v11822_v53 = vpop.f32.mrf.mxu0 }
 0x397   : > { %12765 = vst [vmem:[#allocation118_spill] sm:$0xff] %v11820_v21  ;;  %12766 = vst [vmem:[#allocation123_spill] sm:$0xff] %v11822_v53  ;;  %v11825_v46 = vadd.f32 %v8261_v6, %v11671_v57 }
 0x398   : > { %v4729_v11 = vpop.f32.mrf.mxu1  ;;  %v11827_v36 = vpop.f32.mrf.mxu0 }
 0x399   : > { %12767 = vst [vmem:[#allocation88_spill] sm:$0xff] %v11825_v46  ;;  %12768 = vst [vmem:[#allocation89_spill] sm:$0xff] %v11827_v36  ;;  %v11830_v4 = vadd.f32 %v4729_v11, %v11677_v22 }
 0x39a   : > { %v8264_v2 = vpop.f32.mrf.mxu1  ;;  %v11832_v61 = vpop.f32.mrf.mxu0 }
 0x39b   : > { %12769 = vst [vmem:[#allocation90_spill] sm:$0xff] %v11830_v4  ;;  %12770 = vst [vmem:[#allocation95_spill] sm:$0xff] %v11832_v61  ;;  %v11835_v62 = vadd.f32 %v8264_v2, %v11680_v12 }
 0x39c   : > { %v4739_v16 = vpop.f32.mrf.mxu1  ;;  %v11837_v59 = vpop.f32.mrf.mxu0 }
 0x39d   : > { %12771 = vst [vmem:[#allocation126_spill] sm:$0xff] %v11835_v62  ;;  %12772 = vst [vmem:[#allocation119_spill] sm:$0xff] %v11837_v59  ;;  %v11840_v53 = vadd.f32 %v4739_v16, %v11685_v8 }
 0x39e   : > { %v8267_v57 = vpop.f32.mrf.mxu1  ;;  %v11842_v6 = vpop.f32.mrf.mxu0 }
 0x39f   : > { %12773 = vst [vmem:[#allocation92_spill] sm:$0xff] %v11840_v53  ;;  %12774 = vst [vmem:[#allocation93_spill] sm:$0xff] %v11842_v6  ;;  %v11845_v36 = vadd.f32 %v8267_v57, %v11688_v14 }
 0x3a0   : > { %v4749_v22 = vpop.f32.mrf.mxu1  ;;  %v11850_v61 = vpop.f32.mrf.mxu0 }
 0x3a1   : > { %12775 = vst [vmem:[#allocation94_spill] sm:$0xff] %v11845_v36  ;;  %v11848_v11 = vadd.f32 %v4749_v22, %v11693_v28  ;;  %12777 = vst [vmem:[#allocation121_spill] sm:$0xff] %v11850_v61 }
 0x3a2   : > { %v8270_v12 = vpop.f32.mrf.mxu1  ;;  %v8465_v62 = vpop.f32.mrf.mxu0 }
 0x3a3   : > { %12776 = vst [vmem:[#allocation129_spill] sm:$0xff] %v11848_v11  ;;  %v11853_v2 = vadd.f32 %v8270_v12, %v11698_v17 }
 0x3a4   : > { %v4759_v59 = vpop.f32.mrf.mxu1  ;;  %v5448_v53 = vpop.f32.mrf.mxu0 }
 0x3a5   : > { %12778 = vst [vmem:[#allocation96_spill] sm:$0xff] %v11853_v2  ;;  %v11856_v8 = vadd.f32 %v4759_v59, %v11705_v47 }
 0x3a6   : > { %v8385_v16 = vpop.f32.mrf.mxu1  ;;  %v11858_v36 = vpop.f32.mrf.mxu0 }
 0x3a7   : > { %12779 = vst [vmem:[#allocation122_spill] sm:$0xff] %v11856_v8 }
 0x3a8   : > { %v5164_v6 = vpop.f32.mrf.mxu1  ;;  %v11862_v61 = vpop.f32.mrf.mxu0 }
 0x3aa   : > { %v8388_v14 = vpop.f32.mrf.mxu1  ;;  %v11868_v12 = vpop.f32.mrf.mxu0 }
 0x3ac   : > { %v5174_v57 = vpop.f32.mrf.mxu1  ;;  %v11874_v8 = vpop.f32.mrf.mxu0 }
 0x3ae   : > { %v8391_v28 = vpop.f32.mrf.mxu1  ;;  %v11880_v46 = vpop.f32.mrf.mxu0 }
 0x3b0   : > { %v11860_v22 = vpop.f32.mrf.mxu1  ;;  %v11886_v5 = vpop.f32.mrf.mxu0 }
 0x3b2   : > { %v11864_v11 = vpop.f32.mrf.mxu1  ;;  %v11892_v52 = vpop.f32.mrf.mxu0 }
 0x3b4   : > { %v11866_v17 = vpop.f32.mrf.mxu1  ;;  %v11898_v63 = vpop.f32.mrf.mxu0 }
 0x3b6   : > { %v11870_v47 = vpop.f32.mrf.mxu1  ;;  %v11904_v25 = vpop.f32.mrf.mxu0 }
 0x3b8   : > { %v11872_v59 = vpop.f32.mrf.mxu1  ;;  %v11910_v37 = vpop.f32.mrf.mxu0 }
 0x3ba   : > { %v11876_v2 = vpop.f32.mrf.mxu1 }
 0x3bc   : > { %v11878_v4 = vpop.f32.mrf.mxu1 }
 0x3be   : > { %v11882_v21 = vpop.f32.mrf.mxu1 }
 0x3c0   : > { %v11884_v56 = vpop.f32.mrf.mxu1 }
 0x3c2   : > { %v11888_v45 = vpop.f32.mrf.mxu1 }
 0x3c3   : > { %12780 = vst [vmem:[#allocation132_spill] sm:$0xff] %v11888_v45 }
 0x3c4   : > { %v11890_v1 = vpop.f32.mrf.mxu1 }
 0x3c5   : > { %12781 = vst [vmem:[#allocation135_spill] sm:$0xff] %v11890_v1 }
 0x3c6   : > { %v11894_v15 = vpop.f32.mrf.mxu1 }
 0x3c7   : > { %12782 = vst [vmem:[#allocation124_spill] sm:$0xff] %v11894_v15  ;;  %v11916_v15 = vpop.f32.mrf.mxu0 }
 0x3c8   : > { %v11896_v35 = vpop.f32.mrf.mxu1  ;;  %12790 = vst [vmem:[#allocation128_spill] sm:$0xff] %v11916_v15 }
 0x3c9   : > { %12783 = vst [vmem:[#allocation99_spill] sm:$0xff] %v11896_v35 }
 0x3ca   : > { %v11900_v13 = vpop.f32.mrf.mxu1 }
 0x3cb   : > { %12784 = vst [vmem:[#allocation138_spill] sm:$0xff] %v11900_v13  ;;  %v11922_v13 = vpop.f32.mrf.mxu0 }
 0x3cc   : > { %v11902_v55 = vpop.f32.mrf.mxu1  ;;  %12793 = vst [vmem:[#allocation131_spill] sm:$0xff] %v11922_v13 }
 0x3cd   : > { %12785 = vst [vmem:[#allocation125_spill] sm:$0xff] %v11902_v55 }
 0x3ce   : > { %v11906_v30 = vpop.f32.mrf.mxu1 }
 0x3cf   : > { %12786 = vst [vmem:[#allocation141_spill] sm:$0xff] %v11906_v30  ;;  %v11928_v30 = vpop.f32.mrf.mxu0 }
 0x3d0   : > { %v11908_v24 = vpop.f32.mrf.mxu1  ;;  %12796 = vst [vmem:[#allocation134_spill] sm:$0xff] %v11928_v30 }
 0x3d1   : > { %12787 = vst [vmem:[#allocation127_spill] sm:$0xff] %v11908_v24 }
 0x3d2   : > { %v11912_v1 = vpop.f32.mrf.mxu1 }
 0x3d3   : > { %12788 = vst [vmem:[#allocation97_spill] sm:$0xff] %v11912_v1 }
 0x3d4   : > { %v11914_v45 = vpop.f32.mrf.mxu1 }
 0x3d5   : > { %12789 = vst [vmem:[#allocation98_spill] sm:$0xff] %v11914_v45  ;;  %v5050_v45 = vadd.f32 %v11690_v43, %v11703_v3  ;;  %v5051_v43 = vadd.f32 %v11707_v23, %v11720_v48  ;;  %v5053_v23 = vadd.f32 %v11717_v51, %v11730_v58 }
 0x3d6   : > { %v11918_v35 = vpop.f32.mrf.mxu1 }
 0x3d7   : > { %12791 = vst [vmem:[#allocation130_spill] sm:$0xff] %v11918_v35  ;;  %v5324_v15 = vadd.f32 %v8385_v16, %v5050_v45  ;;  %v11938_v35 = vpop.f32.mrf.mxu0 }
 0x3d8   : > { %v11920_v20 = vpop.f32.mrf.mxu1 }
 0x3d9   : > { %12792 = vst [vmem:[#allocation100_spill] sm:$0xff] %v11920_v20  ;;  %v5049_v20 = vadd.f32 %v11695_v9, %v11710_v34  ;;  %v11948_v3 = vpop.f32.mrf.mxu0  ;;  %v5608_v45 = vadd.f32 %v8465_v62, %v5324_v15  ;;  %v5054_v9 = vadd.f32 %v11712_v42, %v11725_v32  ;;  %v5327_v62 = vadd.f32 %v11860_v22, %v5053_v23 }
 0x3da   : > { %v11924_v55 = vpop.f32.mrf.mxu1 }
 0x3db   : > { %12794 = vst [vmem:[#allocation133_spill] sm:$0xff] %v11924_v55  ;;  %v5323_v55 = vadd.f32 %v5164_v6, %v5049_v20  ;;  %v11956_v20 = vld [vmem:[%s12236_s4] ss:$0 sm:$0xff]  ;;  %v11960_v16 = vpop.f32.mrf.mxu0 }
 0x3dc   : > { %v11926_v10 = vpop.f32.mrf.mxu1 }
 0x3dd   : > { %12795 = vst [vmem:[#allocation103_spill] sm:$0xff] %v11926_v10  ;;  %v5052_v10 = vadd.f32 %v11700_v41, %v11715_v0  ;;  %v5325_v41 = vadd.f32 %v5174_v57, %v5051_v43  ;;  %v5607_v6 = vadd.f32 %v5448_v53, %v5323_v55  ;;  %v12798_v53 = vld [vmem:[#allocation10_spill] sm:$0xff] }
 0x3de   : > { %v11930_v24 = vpop.f32.mrf.mxu1 }
 0x3df   : > { %12797 = vst [vmem:[#allocation136_spill] sm:$0xff] %v11930_v24  ;;  %v5326_v24 = vadd.f32 %v8388_v14, %v5052_v10  ;;  %v5328_v10 = vadd.f32 %v8391_v28, %v5054_v9  ;;  %v5056_v14 = vadd.f32 %v11722_v26, %v11735_v33  ;;  %v5609_v28 = vadd.f32 %v11862_v61, %v5325_v41  ;;  %v12799_v26 = vld [vmem:[#allocation9_spill] sm:$0xff] }
 0x3e0   : > { %v11934_v1 = vpop.f32.mrf.mxu1  ;;  %v5058_v61 = vadd.f32 %v11732_v49, %v11745_v44  ;;  %v5611_v41 = vadd.f32 %v11874_v8, %v5327_v62  ;;  %v5057_v49 = vadd.f32 %v11737_v19, %v11750_v27 }
 0x3e1   : > { %v5610_v15 = vadd.f32 %v11858_v36, %v5326_v24  ;;  %v5330_v43 = vadd.f32 %v11864_v11, %v5056_v14  ;;  %v5612_v24 = vadd.f32 %v11868_v12, %v5328_v10  ;;  %v11976_v36 = vpop.f32.mrf.mxu0 }
 0x3e2   : > { %v11940_v13 = vpop.f32.mrf.mxu1 }
 0x3e3   : > { %v5614_v8 = vadd.f32 %v11880_v46, %v5330_v43  ;;  %v12802_v46 = vld [vmem:[#allocation14_spill] sm:$0xff]  ;;  %v5059_v43 = vadd.f32 %v11747_v54, %v11760_v31 }
 0x3e4   : > { %v11944_v30 = vpop.f32.mrf.mxu1 }
 0x3e6   : > { %v8545_v34 = vpop.f32.mrf.mxu1 }
 0x3e7   : > { %v5889_v0 = vadd.f32 %v8545_v34, %v5608_v45  ;;  %v5055_v45 = vadd.f32 %v11727_v29, %v11740_v39  ;;  %v12800_v39 = vld [vmem:[#allocation12_spill] sm:$0xff] }
 0x3e8   : > { %v5729_v48 = vpop.f32.mrf.mxu1 }
 0x3e9   : > { %v5928_v42 = vadd.f32 %v11956_v20, %v5889_v0  ;;  %v5888_v32 = vadd.f32 %v5729_v48, %v5607_v6  ;;  %v5329_v6 = vadd.f32 %v11866_v17, %v5055_v45  ;;  %v5332_v17 = vadd.f32 %v11870_v47, %v5058_v61  ;;  %v11993_v48 = vpop.f32.mrf.mxu0 }
 0x3ea   : > { %v8548_v55 = vpop.f32.mrf.mxu1  ;;  %v5060_v47 = vadd.f32 %v11742_v18, %v11755_v50 }
 0x3eb   : > { %v5960_v57 = vadd.f32 %v5928_v42, %v12798_v53  ;;  %v5927_v51 = vadd.f32 %v11956_v20, %v5888_v32  ;;  %v5891_v58 = vadd.f32 %v8548_v55, %v5610_v15  ;;  %v12801_v32 = vld [vmem:[#allocation11_spill] sm:$0xff]  ;;  %v5331_v55 = vadd.f32 %v11872_v59, %v5057_v49  ;;  %v12009_v18 = vpop.f32.mrf.mxu0 }
 0x3ec   : > { %v5739_v9 = vpop.f32.mrf.mxu1  ;;  %v5613_v19 = vadd.f32 %v11886_v5, %v5329_v6  ;;  %v5616_v45 = vadd.f32 %v11892_v52, %v5332_v17  ;;  %v12803_v5 = vld [vmem:[#allocation13_spill] sm:$0xff]  ;;  %v12804_v52 = vld [vmem:[#allocation16_spill] sm:$0xff] }
 0x3ed   : > { %v5992_v22 = vmax.f32 %v5960_v57, 0.0  ;;  %v5959_v33 = vadd.f32 %v5927_v51, %v12799_v26  ;;  %v5930_v34 = vadd.f32 %v11956_v20, %v5891_v58  ;;  %v5890_v0 = vadd.f32 %v5739_v9, %v5609_v28 }
 0x3ee   : > { %v8551_v11 = vpop.f32.mrf.mxu1  ;;  %v5334_v28 = vadd.f32 %v11876_v2, %v5060_v47  ;;  %v5333_v26 = vadd.f32 %v11878_v4, %v5059_v43  ;;  %v5062_v2 = vadd.f32 %v11752_v7, %v11765_v40  ;;  %v5615_v54 = vadd.f32 %v11898_v63, %v5331_v55  ;;  %v12025_v7 = vpop.f32.mrf.mxu0  ;;  %v12805_v63 = vld [vmem:[#allocation15_spill] sm:$0xff]  ;;  %v12812_v47 = vld [vmem:[#allocation128_spill] sm:$0xff]  ;;  %v12815_v43 = vld [vmem:[#allocation78_spill] sm:$0xff] }
 0x3ef   : > { %6024 = vst [vmem:[%s11984_s7 + $0x8] sm:$0xff] %v5992_v22  ;;  %v5991_v29 = vmax.f32 %v5959_v33, 0.0  ;;  %v5962_v12 = vadd.f32 %v5930_v34, %v12800_v39  ;;  %v5929_v10 = vadd.f32 %v11956_v20, %v5890_v0  ;;  %v5893_v23 = vadd.f32 %v8551_v11, %v5612_v24 }
 0x3f0   : > { %v5749_v44 = vpop.f32.mrf.mxu1  ;;  %v5336_v61 = vadd.f32 %v11882_v21, %v5062_v2  ;;  %v5061_v11 = vadd.f32 %v11757_v38, %v11770_v60  ;;  %v12807_v21 = vld [vmem:[#allocation73_spill] sm:$0xff]  ;;  %v5617_v38 = vadd.f32 %v11910_v37, %v5333_v26 }
 0x3f1   : > { %6023 = vst [vmem:[%s11984_s7] sm:$0xff] %v5991_v29  ;;  %v5994_v42 = vmax.f32 %v5962_v12, 0.0  ;;  %v5961_v15 = vadd.f32 %v5929_v10, %v12801_v32  ;;  %v5932_v62 = vadd.f32 %v11956_v20, %v5893_v23  ;;  %v5892_v14 = vadd.f32 %v5749_v44, %v5611_v41  ;;  %v12806_v23 = vld [vmem:[#allocation114_spill] sm:$0xff]  ;;  %v12809_v32 = vld [vmem:[#allocation132_spill] sm:$0xff] }
 0x3f2   : > { %v8554_v53 = vpop.f32.mrf.mxu1  ;;  %v5618_v41 = vadd.f32 %v11904_v25, %v5334_v28  ;;  %v5335_v10 = vadd.f32 %v11884_v56, %v5061_v11  ;;  %v5064_v17 = vadd.f32 %v12807_v21, %v12806_v23  ;;  %v12808_v25 = vld [vmem:[#allocation18_spill] sm:$0xff]  ;;  %v12825_v23 = vld [vmem:[#allocation80_spill] sm:$0xff]  ;;  %v12826_v21 = vld [vmem:[#allocation77_spill] sm:$0xff] }
 0x3f3   : > { %6026 = vst [vmem:[%s11984_s7 + $0x18] sm:$0xff] %v5994_v42  ;;  %v5993_v27 = vmax.f32 %v5961_v15, 0.0  ;;  %v5964_v57 = vadd.f32 %v5932_v62, %v12802_v46  ;;  %v5931_v51 = vadd.f32 %v11956_v20, %v5892_v14  ;;  %v5895_v58 = vadd.f32 %v8554_v53, %v5614_v8  ;;  %v12810_v62 = vld [vmem:[#allocation76_spill] sm:$0xff]  ;;  %v12811_v14 = vld [vmem:[#allocation74_spill] sm:$0xff] }
 0x3f4   : > { %v5759_v59 = vpop.f32.mrf.mxu1  ;;  %v5338_v15 = vadd.f32 %v12809_v32, %v5064_v17  ;;  %v5063_v55 = vadd.f32 %v12811_v14, %v12810_v62  ;;  %v5620_v53 = vadd.f32 %v12812_v47, %v5336_v61  ;;  %v12822_v61 = vld [vmem:[#allocation134_spill] sm:$0xff]  ;;  %v5068_v17 = vadd.f32 %v12826_v21, %v12825_v23  ;;  %v12830_v14 = vld [vmem:[#allocation83_spill] sm:$0xff] }
 0x3f5   : > { %6025 = vst [vmem:[%s11984_s7 + $0x10] sm:$0xff] %v5993_v27  ;;  %v5996_v50 = vmax.f32 %v5964_v57, 0.0  ;;  %v5963_v9 = vadd.f32 %v5931_v51, %v12803_v5  ;;  %v5934_v24 = vadd.f32 %v11956_v20, %v5895_v58  ;;  %v5894_v22 = vadd.f32 %v5759_v59, %v5613_v19  ;;  %v12041_v19 = vpop.f32.mrf.mxu0  ;;  %v12813_v27 = vld [vmem:[#allocation17_spill] sm:$0xff]  ;;  %v12814_v58 = vld [vmem:[#allocation135_spill] sm:$0xff]  ;;  %v12828_v32 = vld [vmem:[#allocation138_spill] sm:$0xff] }
 0x3f6   : > { %v8557_v33 = vpop.f32.mrf.mxu1  ;;  %v5337_v28 = vadd.f32 %v12814_v58, %v5063_v55  ;;  %v12816_v59 = vld [vmem:[#allocation79_spill] sm:$0xff]  ;;  %v5622_v11 = vadd.f32 %v12822_v61, %v5338_v15  ;;  %v5342_v15 = vadd.f32 %v12828_v32, %v5068_v17  ;;  %v12829_v62 = vld [vmem:[#allocation82_spill] sm:$0xff] }
 0x3f7   : > { %6028 = vst [vmem:[%s11984_s7 + $0x28] sm:$0xff] %v5996_v50  ;;  %v5995_v31 = vmax.f32 %v5963_v9, 0.0  ;;  %v5966_v34 = vadd.f32 %v5934_v24, %v12804_v52  ;;  %v5933_v0 = vadd.f32 %v11956_v20, %v5894_v22  ;;  %v5897_v6 = vadd.f32 %v8557_v33, %v5616_v45  ;;  %v12817_v5 = vld [vmem:[#allocation131_spill] sm:$0xff]  ;;  %v12818_v22 = vld [vmem:[#allocation20_spill] sm:$0xff]  ;;  %v12820_v52 = vld [vmem:[#allocation117_spill] sm:$0xff] }
 0x3f8   : > { %v5769_v4 = vpop.f32.mrf.mxu1  ;;  %v5066_v45 = vadd.f32 %v12816_v59, %v12815_v43  ;;  %v5619_v9 = vadd.f32 %v12817_v5, %v5335_v10  ;;  %v5067_v55 = vadd.f32 %v12830_v14, %v12829_v62  ;;  %v12834_v43 = vld [vmem:[#allocation115_spill] sm:$0xff]  ;;  %v12835_v5 = vld [vmem:[#allocation24_spill] sm:$0xff]  ;;  %v12843_v21 = vld [vmem:[#allocation26_spill] sm:$0xff] }
 0x3f9   : > { %6027 = vst [vmem:[%s11984_s7 + $0x20] sm:$0xff] %v5995_v31  ;;  %v5998_v40 = vmax.f32 %v5966_v34, 0.0  ;;  %v5965_v29 = vadd.f32 %v5933_v0, %v12805_v63  ;;  %v5936_v39 = vadd.f32 %v11956_v20, %v5897_v6  ;;  %v5896_v12 = vadd.f32 %v5769_v4, %v5615_v54  ;;  %v12819_v54 = vld [vmem:[#allocation124_spill] sm:$0xff]  ;;  %v12821_v34 = vld [vmem:[#allocation113_spill] sm:$0xff]  ;;  %v12057_v4 = vpop.f32.mrf.mxu0 }
 0x3fa   : > { %v8560_v49 = vpop.f32.mrf.mxu1  ;;  %v5340_v31 = vadd.f32 %v12819_v54, %v5066_v45  ;;  %v5065_v0 = vadd.f32 %v12821_v34, %v12820_v52  ;;  %v12838_v54 = vld [vmem:[#allocation81_spill] sm:$0xff]  ;;  %v5626_v34 = vadd.f32 %v11976_v36, %v5342_v15 }
 0x3fb   : > { %6030 = vst [vmem:[%s11984_s7 + $0x38] sm:$0xff] %v5998_v40  ;;  %v5997_v60 = vmax.f32 %v5965_v29, 0.0  ;;  %v5968_v44 = vadd.f32 %v5936_v39, %v12808_v25  ;;  %v5935_v8 = vadd.f32 %v11956_v20, %v5896_v12  ;;  %v5899_v42 = vadd.f32 %v8560_v49, %v5618_v41  ;;  %v12823_v40 = vld [vmem:[#allocation19_spill] sm:$0xff]  ;;  %v12827_v25 = vld [vmem:[#allocation22_spill] sm:$0xff] }
 0x3fc   : > { %v5779_v56 = vpop.f32.mrf.mxu1  ;;  %v12824_v12 = vld [vmem:[#allocation99_spill] sm:$0xff]  ;;  %v5624_v47 = vadd.f32 %v11948_v3, %v5340_v31 }
 0x3fd   : > { %6029 = vst [vmem:[%s11984_s7 + $0x30] sm:$0xff] %v5997_v60  ;;  %v6000_v37 = vmax.f32 %v5968_v44, 0.0  ;;  %v5967_v46 = vadd.f32 %v5935_v8, %v12813_v27  ;;  %v5938_v57 = vadd.f32 %v11956_v20, %v5899_v42  ;;  %v5898_v51 = vadd.f32 %v5779_v56, %v5617_v38 }
 0x3fe   : > { %v8563_v50 = vpop.f32.mrf.mxu1  ;;  %v5339_v10 = vadd.f32 %v12824_v12, %v5065_v0  ;;  %v5621_v38 = vadd.f32 %v11938_v35, %v5337_v28  ;;  %v12833_v28 = vld [vmem:[#allocation116_spill] sm:$0xff] }
 0x3ff   : > { %6032 = vst [vmem:[%s11984_s7 + $0x48] sm:$0xff] %v6000_v37  ;;  %v5999_v24 = vmax.f32 %v5967_v46, 0.0  ;;  %v5970_v26 = vadd.f32 %v5938_v57, %v12818_v22  ;;  %v5937_v2 = vadd.f32 %v11956_v20, %v5898_v51  ;;  %v5901_v33 = vadd.f32 %v8563_v50, %v5620_v53  ;;  %v12073_v53 = vpop.f32.mrf.mxu0  ;;  %v12831_v37 = vld [vmem:[#allocation21_spill] sm:$0xff] }
 0x400   : > { %v5789_v6 = vpop.f32.mrf.mxu1  ;;  %v12832_v51 = vld [vmem:[#allocation125_spill] sm:$0xff]  ;;  %v5070_v59 = vadd.f32 %v12834_v43, %v12833_v28  ;;  %v5623_v50 = vadd.f32 %v11960_v16, %v5339_v10 }
 0x401   : > { %6031 = vst [vmem:[%s11984_s7 + $0x40] sm:$0xff] %v5999_v24  ;;  %v6002_v41 = vmax.f32 %v5970_v26, 0.0  ;;  %v5969_v63 = vadd.f32 %v5937_v2, %v12823_v40  ;;  %v5940_v29 = vadd.f32 %v11956_v20, %v5901_v33  ;;  %v5900_v39 = vadd.f32 %v5789_v6, %v5619_v9  ;;  %v12836_v26 = vld [vmem:[#allocation141_spill] sm:$0xff]  ;;  %v12837_v33 = vld [vmem:[#allocation84_spill] sm:$0xff]  ;;  %v12089_v0 = vpop.f32.mrf.mxu0  ;;  %v12839_v6 = vld [vmem:[#allocation23_spill] sm:$0xff] }
 0x402   : > { %v8566_v49 = vpop.f32.mrf.mxu1  ;;  %v5341_v58 = vadd.f32 %v12832_v51, %v5067_v55  ;;  %v5344_v2 = vadd.f32 %v12836_v26, %v5070_v59  ;;  %v5069_v31 = vadd.f32 %v12838_v54, %v12837_v33  ;;  %v12840_v40 = vld [vmem:[#allocation127_spill] sm:$0xff] }
 0x403   : > { %6034 = vst [vmem:[%s11984_s7 + $0x58] sm:$0xff] %v6002_v41  ;;  %v6001_v60 = vmax.f32 %v5969_v63, 0.0  ;;  %v5972_v44 = vadd.f32 %v5940_v29, %v12827_v25  ;;  %v5939_v8 = vadd.f32 %v11956_v20, %v5900_v39  ;;  %v5903_v42 = vadd.f32 %v8566_v49, %v5622_v11  ;;  %v12841_v29 = vld [vmem:[#allocation86_spill] sm:$0xff]  ;;  %v12842_v39 = vld [vmem:[#allocation87_spill] sm:$0xff]  ;;  %v8504_v62 = vpop.f32.mrf.mxu0 }
 0x404   : > { %v5799_v56 = vpop.f32.mrf.mxu1  ;;  %v5343_v63 = vadd.f32 %v12840_v40, %v5069_v31  ;;  %v5072_v12 = vadd.f32 %v12842_v39, %v12841_v29  ;;  %v5625_v23 = vadd.f32 %v11993_v48, %v5341_v58  ;;  %v5628_v15 = vadd.f32 %v12009_v18, %v5344_v2  ;;  %v12847_v48 = vld [vmem:[#allocation25_spill] sm:$0xff]  ;;  %v12851_v18 = vld [vmem:[#allocation28_spill] sm:$0xff] }
 0x405   : > { %6033 = vst [vmem:[%s11984_s7 + $0x50] sm:$0xff] %v6001_v60  ;;  %v6004_v35 = vmax.f32 %v5972_v44, 0.0  ;;  %v5971_v27 = vadd.f32 %v5939_v8, %v12831_v37  ;;  %v5942_v46 = vadd.f32 %v11956_v20, %v5903_v42  ;;  %v5902_v57 = vadd.f32 %v5799_v56, %v5621_v38  ;;  %v12844_v60 = vld [vmem:[#allocation97_spill] sm:$0xff]  ;;  %v12845_v44 = vld [vmem:[#allocation118_spill] sm:$0xff]  ;;  %v12846_v8 = vld [vmem:[#allocation120_spill] sm:$0xff]  ;;  %v5578_v2 = vpop.f32.mrf.mxu0 }
 0x406   : > { %v8569_v45 = vpop.f32.mrf.mxu1  ;;  %v5346_v25 = vadd.f32 %v12844_v60, %v5072_v12  ;;  %v5071_v42 = vadd.f32 %v12846_v8, %v12845_v44  ;;  %v5627_v58 = vadd.f32 %v12025_v7, %v5343_v63  ;;  %v12855_v7 = vld [vmem:[#allocation27_spill] sm:$0xff] }
 0x407   : > { %6036 = vst [vmem:[%s11984_s7 + $0x68] sm:$0xff] %v6004_v35  ;;  %v6003_v3 = vmax.f32 %v5971_v27, 0.0  ;;  %v5974_v9 = vadd.f32 %v5942_v46, %v12835_v5  ;;  %v5941_v24 = vadd.f32 %v11956_v20, %v5902_v57  ;;  %v5905_v22 = vadd.f32 %v8569_v45, %v5624_v47  ;;  %v12848_v35 = vld [vmem:[#allocation98_spill] sm:$0xff]  ;;  %v12849_v27 = vld [vmem:[#allocation88_spill] sm:$0xff]  ;;  %v12850_v46 = vld [vmem:[#allocation85_spill] sm:$0xff]  ;;  %v8507_v60 = vpop.f32.mrf.mxu0 }
 0x408   : > { %v5809_v52 = vpop.f32.mrf.mxu1  ;;  %v5345_v37 = vadd.f32 %v12848_v35, %v5071_v42  ;;  %v5074_v57 = vadd.f32 %v12850_v46, %v12849_v27  ;;  %v12853_v5 = vld [vmem:[#allocation90_spill] sm:$0xff]  ;;  %v5630_v26 = vadd.f32 %v12041_v19, %v5346_v25 }
 0x409   : > { %6035 = vst [vmem:[%s11984_s7 + $0x60] sm:$0xff] %v6003_v3  ;;  %v6006_v16 = vmax.f32 %v5974_v9, 0.0  ;;  %v5973_v61 = vadd.f32 %v5941_v24, %v12839_v6  ;;  %v5944_v11 = vadd.f32 %v11956_v20, %v5905_v22  ;;  %v5904_v41 = vadd.f32 %v5809_v52, %v5623_v50  ;;  %v12852_v50 = vld [vmem:[#allocation130_spill] sm:$0xff]  ;;  %v12854_v9 = vld [vmem:[#allocation91_spill] sm:$0xff] }
 0x40a   : > { %v8572_v10 = vpop.f32.mrf.mxu1  ;;  %v5348_v3 = vadd.f32 %v12852_v50, %v5074_v57  ;;  %v5073_v24 = vadd.f32 %v12854_v9, %v12853_v5  ;;  %v12857_v6 = vld [vmem:[#allocation126_spill] sm:$0xff]  ;;  %v5629_v40 = vadd.f32 %v12057_v4, %v5345_v37  ;;  %v12863_v4 = vld [vmem:[#allocation29_spill] sm:$0xff]  ;;  %v12868_v57 = vld [vmem:[#allocation136_spill] sm:$0xff] }
 0x40b   : > { %6038 = vst [vmem:[%s11984_s7 + $0x78] sm:$0xff] %v6006_v16  ;;  %v6005_v36 = vmax.f32 %v5973_v61, 0.0  ;;  %v5976_v17 = vadd.f32 %v5944_v11, %v12843_v21  ;;  %v5943_v49 = vadd.f32 %v11956_v20, %v5904_v41  ;;  %v5907_v38 = vadd.f32 %v8572_v10, %v5626_v34  ;;  %v12856_v34 = vld [vmem:[#allocation100_spill] sm:$0xff]  ;;  %v12858_v61 = vld [vmem:[#allocation123_spill] sm:$0xff]  ;;  %v12859_v19 = vld [vmem:[#allocation30_spill] sm:$0xff] }
 0x40c   : > { %v5819_v32 = vpop.f32.mrf.mxu1  ;;  %v5347_v16 = vadd.f32 %v12856_v34, %v5073_v24  ;;  %v5076_v11 = vadd.f32 %v12858_v61, %v12857_v6  ;;  %v12860_v10 = vld [vmem:[#allocation133_spill] sm:$0xff] }
 0x40d   : > { %6037 = vst [vmem:[%s11984_s7 + $0x70] sm:$0xff] %v6005_v36  ;;  %v6008_v14 = vmax.f32 %v5976_v17, 0.0  ;;  %v5975_v55 = vadd.f32 %v5943_v49, %v12847_v48  ;;  %v5946_v56 = vadd.f32 %v11956_v20, %v5907_v38  ;;  %v5906_v47 = vadd.f32 %v5819_v32, %v5625_v23  ;;  %v12861_v36 = vld [vmem:[#allocation92_spill] sm:$0xff]  ;;  %v12862_v21 = vld [vmem:[#allocation89_spill] sm:$0xff]  ;;  %v12864_v32 = vld [vmem:[#allocation103_spill] sm:$0xff] }
 0x40e   : > { %v8575_v51 = vpop.f32.mrf.mxu1  ;;  %v5350_v23 = vadd.f32 %v12860_v10, %v5076_v11  ;;  %v5075_v17 = vadd.f32 %v12862_v21, %v12861_v36  ;;  %v5632_v38 = vadd.f32 %v12073_v53, %v5348_v3  ;;  %v12866_v48 = vld [vmem:[#allocation95_spill] sm:$0xff]  ;;  %v12867_v53 = vld [vmem:[#allocation32_spill] sm:$0xff]  ;;  %v12875_v11 = vld [vmem:[#allocation122_spill] sm:$0xff] }
 0x40f   : > { %6040 = vst [vmem:[%s11984_s7 + $0x88] sm:$0xff] %v6008_v14  ;;  %v6007_v28 = vmax.f32 %v5975_v55, 0.0  ;;  %v5978_v43 = vadd.f32 %v5946_v56, %v12851_v18  ;;  %v5945_v59 = vadd.f32 %v11956_v20, %v5906_v47  ;;  %v5909_v45 = vadd.f32 %v8575_v51, %v5628_v15  ;;  %v12865_v14 = vld [vmem:[#allocation94_spill] sm:$0xff]  ;;  %v12871_v3 = vld [vmem:[#allocation31_spill] sm:$0xff] }
 0x410   : > { %v5829_v22 = vpop.f32.mrf.mxu1  ;;  %v5349_v15 = vadd.f32 %v12864_v32, %v5075_v17  ;;  %v5078_v55 = vadd.f32 %v12866_v48, %v12865_v14  ;;  %v5631_v47 = vadd.f32 %v12089_v0, %v5347_v16  ;;  %v12878_v17 = vld [vmem:[#allocation36_spill] sm:$0xff] }
 0x411   : > { %6039 = vst [vmem:[%s11984_s7 + $0x80] sm:$0xff] %v6007_v28  ;;  %v6010_v33 = vmax.f32 %v5978_v43, 0.0  ;;  %v5977_v54 = vadd.f32 %v5945_v59, %v12855_v7  ;;  %v5948_v31 = vadd.f32 %v11956_v20, %v5909_v45  ;;  %v5908_v52 = vadd.f32 %v5829_v22, %v5627_v58  ;;  %v12869_v58 = vld [vmem:[#allocation129_spill] sm:$0xff]  ;;  %v12870_v28 = vld [vmem:[#allocation119_spill] sm:$0xff]  ;;  %v5588_v45 = vpop.f32.mrf.mxu0  ;;  %v12872_v22 = vld [vmem:[#allocation96_spill] sm:$0xff] }
 0x412   : > { %v8578_v41 = vpop.f32.mrf.mxu1  ;;  %v5352_v51 = vadd.f32 %v12868_v57, %v5078_v55  ;;  %v5077_v18 = vadd.f32 %v12870_v28, %v12869_v58  ;;  %v5634_v59 = vadd.f32 %v8504_v62, %v5350_v23  ;;  %v12874_v62 = vld [vmem:[#allocation34_spill] sm:$0xff]  ;;  %v12882_v28 = vld [vmem:[#allocation49_spill] sm:$0xff] }
 0x413   : > { %6042 = vst [vmem:[%s11984_s7 + $0x98] sm:$0xff] %v6010_v33  ;;  %v6009_v63 = vmax.f32 %v5977_v54, 0.0  ;;  %v5980_v29 = vadd.f32 %v5948_v31, %v12859_v19  ;;  %v5947_v39 = vadd.f32 %v11956_v20, %v5908_v52  ;;  %v5911_v12 = vadd.f32 %v8578_v41, %v5630_v26  ;;  %v12873_v26 = vld [vmem:[#allocation93_spill] sm:$0xff]  ;;  %v8510_v31 = vpop.f32.mrf.mxu0  ;;  %v12880_v55 = vld [vmem:[#allocation38_spill] sm:$0xff] }
 0x414   : > { %v5839_v49 = vpop.f32.mrf.mxu1  ;;  %v5351_v24 = vadd.f32 %v11934_v1, %v5077_v18  ;;  %v5080_v33 = vadd.f32 %v12873_v26, %v12872_v22  ;;  %v5633_v54 = vadd.f32 %v5578_v2, %v5349_v15  ;;  %v12876_v41 = vld [vmem:[#allocation121_spill] sm:$0xff] }
 0x415   : > { %6041 = vst [vmem:[%s11984_s7 + $0x90] sm:$0xff] %v6009_v63  ;;  %v6012_v25 = vmax.f32 %v5980_v29, 0.0  ;;  %v5979_v44 = vadd.f32 %v5947_v39, %v12863_v4  ;;  %v5950_v8 = vadd.f32 %v11956_v20, %v5911_v12  ;;  %v5910_v42 = vadd.f32 %v5839_v49, %v5629_v40  ;;  %v12877_v2 = vld [vmem:[#allocation33_spill] sm:$0xff]  ;;  %v5598_v21 = vpop.f32.mrf.mxu0 }
 0x416   : > { %v8581_v56 = vpop.f32.mrf.mxu1  ;;  %v5354_v61 = vadd.f32 %v11940_v13, %v5080_v33  ;;  %v5079_v40 = vadd.f32 %v12876_v41, %v12875_v11  ;;  %v5636_v63 = vadd.f32 %v8507_v60, %v5352_v51  ;;  %v5635_v36 = vadd.f32 %v5588_v45, %v5351_v24  ;;  %v12883_v45 = vld [vmem:[#allocation47_spill] sm:$0xff] }
 0x417   : > { %6044 = vst [vmem:[%s11984_s7 + $0xa8] sm:$0xff] %v6012_v25  ;;  %v6011_v35 = vmax.f32 %v5979_v44, 0.0  ;;  %v5982_v37 = vadd.f32 %v5950_v8, %v12867_v53  ;;  %v5949_v27 = vadd.f32 %v11956_v20, %v5910_v42  ;;  %v5913_v46 = vadd.f32 %v8581_v56, %v5632_v38  ;;  %v12879_v8 = vld [vmem:[#allocation35_spill] sm:$0xff] }
 0x418   : > { %v5849_v43 = vpop.f32.mrf.mxu1  ;;  %v5353_v10 = vadd.f32 %v11944_v30, %v5079_v40  ;;  %v5638_v25 = vadd.f32 %v8510_v31, %v5354_v61 }
 0x419   : > { %6043 = vst [vmem:[%s11984_s7 + $0xa0] sm:$0xff] %v6011_v35  ;;  %v6014_v50 = vmax.f32 %v5982_v37, 0.0  ;;  %v5981_v0 = vadd.f32 %v5949_v27, %v12871_v3  ;;  %v5952_v5 = vadd.f32 %v11956_v20, %v5913_v46  ;;  %v5912_v9 = vadd.f32 %v5849_v43, %v5631_v47  ;;  %v12881_v27 = vld [vmem:[#allocation37_spill] sm:$0xff] }
 0x41a   : > { %v8584_v7 = vpop.f32.mrf.mxu1  ;;  %v5637_v15 = vadd.f32 %v5598_v21, %v5353_v10 }
 0x41b   : > { %6046 = vst [vmem:[%s11984_s7 + $0xb8] sm:$0xff] %v6014_v50  ;;  %v6013_v52 = vmax.f32 %v5981_v0, 0.0  ;;  %v5984_v34 = vadd.f32 %v5952_v5, %v12874_v62  ;;  %v5951_v16 = vadd.f32 %v11956_v20, %v5912_v9  ;;  %v5915_v6 = vadd.f32 %v8584_v7, %v5634_v59 }
 0x41c   : > { %v5859_v1 = vpop.f32.mrf.mxu1 }
 0x41d   : > { %6045 = vst [vmem:[%s11984_s7 + $0xb0] sm:$0xff] %v6013_v52  ;;  %v6016_v19 = vmax.f32 %v5984_v34, 0.0  ;;  %v5983_v29 = vadd.f32 %v5951_v16, %v12877_v2  ;;  %v5954_v39 = vadd.f32 %v11956_v20, %v5915_v6  ;;  %v5914_v12 = vadd.f32 %v5859_v1, %v5633_v54 }
 0x41e   : > { %v8587_v23 = vpop.f32.mrf.mxu1 }
 0x41f   : > { %6048 = vst [vmem:[%s11984_s7 + $0xc8] sm:$0xff] %v6016_v19  ;;  %v6015_v13 = vmax.f32 %v5983_v29, 0.0  ;;  %v5986_v49 = vadd.f32 %v5954_v39, %v12878_v17  ;;  %v5953_v38 = vadd.f32 %v11956_v20, %v5914_v12  ;;  %v5917_v60 = vadd.f32 %v8587_v23, %v5636_v63 }
 0x420   : > { %v5869_v4 = vpop.f32.mrf.mxu1 }
 0x421   : > { %6047 = vst [vmem:[%s11984_s7 + $0xc0] sm:$0xff] %v6015_v13  ;;  %v6018_v44 = vmax.f32 %v5986_v49, 0.0  ;;  %v5985_v42 = vadd.f32 %v5953_v38, %v12879_v8  ;;  %v5956_v30 = vadd.f32 %v11956_v20, %v5917_v60  ;;  %v5916_v32 = vadd.f32 %v5869_v4, %v5635_v36 }
 0x422   : > { %v8590_v14 = vpop.f32.mrf.mxu1 }
 0x423   : > { %6050 = vst [vmem:[%s11984_s7 + $0xd8] sm:$0xff] %v6018_v44  ;;  %v6017_v48 = vmax.f32 %v5985_v42, 0.0  ;;  %v5988_v56 = vadd.f32 %v5956_v30, %v12880_v55  ;;  %v5955_v47 = vadd.f32 %v11956_v20, %v5916_v32  ;;  %v5919_v35 = vadd.f32 %v8590_v14, %v5638_v25 }
 0x424   : > { %v5879_v53 = vpop.f32.mrf.mxu1 }
 0x425   : > { %6049 = vst [vmem:[%s11984_s7 + $0xd0] sm:$0xff] %v6017_v48  ;;  %v6020_v37 = vmax.f32 %v5988_v56, 0.0  ;;  %v5987_v46 = vadd.f32 %v5955_v47, %v12881_v27  ;;  %v5958_v57 = vadd.f32 %v11956_v20, %v5919_v35  ;;  %v5918_v51 = vadd.f32 %v5879_v53, %v5637_v15 }
 0x427   : > { %6052 = vst [vmem:[%s11984_s7 + $0xe8] sm:$0xff] %v6020_v37  ;;  %v6019_v58 = vmax.f32 %v5987_v46, 0.0  ;;  %v5990_v18 = vadd.f32 %v5958_v57, %v12882_v28  ;;  %v5957_v43 = vadd.f32 %v11956_v20, %v5918_v51 }
 0x429   : > { %6051 = vst [vmem:[%s11984_s7 + $0xe0] sm:$0xff] %v6019_v58  ;;  %v6022_v59 = vmax.f32 %v5990_v18, 0.0  ;;  %v5989_v50 = vadd.f32 %v5957_v43, %v12883_v45 }
 0x42b   : > { %6054 = vst [vmem:[%s11984_s7 + $0xf8] sm:$0xff] %v6022_v59  ;;  %v6021_v3 = vmax.f32 %v5989_v50, 0.0 }
 0x42d   : > { %6053 = vst [vmem:[%s11984_s7 + $0xf0] sm:$0xff] %v6021_v3 }
 0x42e   : > { %8747 = shalt.err (!%p8744_p0)
}
 0x42f   : > { %s8748_s13 = scalar_lea.hbm %s12184_s12, 4096  ;;  %s8752_s23 = scalar_lea.hbm %s12237_s5, 8192 }
 0x430   : > { %p8749_p1 = scmp.ne.s32.totalorder %s12184_s12, %s8748_s13  ;;  %p8753_p4 = scmp.lt.s32.totalorder %s12184_s12, %s12237_s5 }
 0x431   : > { %p8754_p7 = scmp.lt.s32.totalorder %s8752_s23, %s8748_s13 }
 0x432   : > { %p8750_p2 = pnand %p8749_p1, %p8875_p5 }
 0x433   : > { %p8755_p6 = por %p8754_p7, %p8753_p4 }
 0x434   : > { %p8751_p3 = pneg %p8750_p2 }
 0x436   : > { %p8756_p8 = pnand %p8755_p6, %p8751_p3 }
 0x438   : > { %8759 = shalt.err (!%p8756_p8)
}
 0x439   : > { %s8805_s7 = smov 128   ;;  %s8806_s8 = smov 8  }
 0x43a   : > { %8596 = dma.vmem_to_hbm [thread:$0]  (%p8875_p5), %s12186_s10, 4096, %s12184_s12, %s12192_s22, %s8805_s7, %s8805_s7, %s8806_s8  }
 0x43b PF: > { %p8608_p9 = scmp.ge.s32.totalorder %s8798_s21, 2  ;;  %s6084_s9 = sand.u32 1, %s8786_s18  }
 0x43c   : > { %p12884_p10 = scmp.ne.s32.totalorder %s12387_s29, 0  ;;  %s6085_s11 = scalar_lea.sflag [#allocation5], %s6084_s9 }
 0x43e   : > { %p8603_p11 = pnand %p8608_p9, %p12884_p10 }
 0x440   : > { %p8604_p12 = pneg %p8603_p11 }
 0x442   : > { %8781 = dma.done.wait (%p8604_p12), %s6085_s11, 4096  }
 0x443   : > { %8783 = vsyncadd (%p8604_p12), %s6085_s11, 4294963200  ;;  %p16_p13 = scmp.ge.s32.totalorder %s8862_s24, 4   ;;  %s12885_s18 = smov %s8790_s19 }
 0x444   : > { %s12886_s19 = smov %s8794_s20  ;;  %s12887_s20 = smov %s8873_s27 }
 0x445   : > { %s12888_s21 = smov %s8862_s24  ;;  %18 = sbr.rel (!%p16_p13) target bundleno = 4 (0x4), region = 97 }
 0x44a   :  { %6090 = vsyncpa [#allocation4], 1 }
 0x44b   :  { %6092 = vsyncpa [#allocation4 + $0x1], 1 }
 0x44c   :  { %6093 = vsyncpa [#allocation5], 1 }
 0x44d   :  { %6095 = vsyncpa [#allocation5 + $0x1], 1 }

</bundles_post_ra>
